<compile_context>
chip_gen: v5e
topology: v5e:2x2
jax: 0.10.0
libtpu: 0.0.40
codegen_flags: <defaults>
</compile_context>

<pallas_src>
import functools

import numpy as np

import jax
import jax.numpy as jnp
from jax.experimental import pallas as pl
from jax.experimental.pallas import tpu as pltpu

LANE = 128          # channel padding target (TPU lane width)
NUM_CLASSES = 2     # nn.Linear(n_features, 2)

# scaled-down EfficientNet-B style config
STEM_C = 8
BLOCKS = [
    # (expand_ratio, kernel, stride, out_channels)
    (1, 3, 1, 12),
    (4, 3, 2, 16),
    (4, 3, 1, 16),
]
HEAD_C = 32


# --------------------------- in-kernel helpers ------------------------------

def _sigmoid(x):
    # numerically robust sigmoid via tanh (EUP-friendly)
    return 0.5 * (jnp.tanh(0.5 * x) + 1.0)


def _silu(x):
    return x * _sigmoid(x)


def _const_spec(shape):
    nd = len(shape)
    return pl.BlockSpec(shape, lambda b: (0,) * nd)


# ------------------------------ fused kernel --------------------------------

def _mbconv_body(x, it, *, n_taps, mo, has_expand, has_residual):
    """One MBConv block on a VMEM-resident (rows, 128) slab; consumes its
    weight refs from the shared iterator (order must match the wrapper)."""
    if has_expand:
        exp_w, exp_b = next(it)[...], next(it)[...]
    sel = next(it)[...]
    dw_w = next(it)[...]
    dw_b = next(it)[...]
    se_w1, se_b1 = next(it)[...], next(it)[...]
    se_w2, se_b2 = next(it)[...], next(it)[...]
    pw, pb = next(it)[...], next(it)[...]

    if has_expand:                                              # expand + BN + SiLU
        h = jnp.dot(x, exp_w, preferred_element_type=jnp.float32)
        h = _silu(h + exp_b).astype(jnp.bfloat16)
    else:
        h = x

    # depthwise 3x3 conv: gather all taps with one stacked 0/1 selection matmul
    # (MXU), then an unrolled per-tap, per-channel FMA on full (mo, C) slabs.
    p = jnp.dot(sel, h, preferred_element_type=jnp.float32)     # (T*mo, C)
    acc = p[0:mo, :] * dw_w[0]
    for t in range(1, n_taps):
        acc = acc + p[t * mo:(t + 1) * mo, :] * dw_w[t]
    y = _silu(acc + dw_b)                                       # (mo, C) f32

    # squeeze-excite: squeeze is a small sublane reduce, gate applied row-wise
    # right before the projection matmul.
    s = jnp.mean(y, axis=0, keepdims=True)                      # (1, C)
    s = _silu(jnp.dot(s.astype(jnp.bfloat16), se_w1,
                      preferred_element_type=jnp.float32) + se_b1)
    g = _sigmoid(jnp.dot(s.astype(jnp.bfloat16), se_w2,
                         preferred_element_type=jnp.float32) + se_b2)
    y = y * g                                                   # excite

    # projection + folded-BN bias (+ residual)
    out = jnp.dot(y.astype(jnp.bfloat16), pw,
                  preferred_element_type=jnp.float32) + pb
    if has_residual:
        out = out + x.astype(jnp.float32)
    return out.astype(jnp.bfloat16)


def _effnet_kernel(*refs, block_meta):
    it = iter(refs)
    cols_ref = next(it)
    stem_w, stem_b = next(it), next(it)

    # stem conv (im2col matmul) + folded-BN bias + SiLU
    h = jnp.dot(cols_ref[...], stem_w[...], preferred_element_type=jnp.float32)
    h = _silu(h + stem_b[...]).astype(jnp.bfloat16)

    # MBConv blocks — all intermediates stay in VMEM
    for meta in block_meta:
        h = _mbconv_body(h, it, **meta)

    # head 1x1 conv + BN(SiLU) -> global average pool -> 2-class classifier
    head_w, head_b = next(it), next(it)
    fc_w, fc_b = next(it), next(it)
    y = jnp.dot(h, head_w[...], preferred_element_type=jnp.float32)
    y = _silu(y + head_b[...])
    s = jnp.mean(y, axis=0, keepdims=True)                      # GAP -> (1, C)
    logits = jnp.dot(s.astype(jnp.bfloat16), fc_w[...],
                     preferred_element_type=jnp.float32) + fc_b[...]

    # lane-dense, sublane-full unmasked store; wrapper slices row 0 / lanes :2
    o_ref = next(it)
    o_ref[...] = jnp.broadcast_to(logits, o_ref.shape)


# ------------------------------- JAX/host glue --------------------------------

def _tf_same_pad(size, k, s):
    out = -(-size // s)
    pad = max((out - 1) * s + k - size, 0)
    return pad // 2, pad - pad // 2


def _pad_same(x, kh, kw, stride):
    _, H, W, _ = x.shape
    pt, pb = _tf_same_pad(H, kh, stride)
    plft, prgt = _tf_same_pad(W, kw, stride)
    return jnp.pad(x, ((0, 0), (pt, pb), (plft, prgt), (0, 0)))


def _extract_patches(x, kh, kw, stride):
    # Layout glue for the tiny 3-channel stem input only (im2col).
    N, H, W, C = x.shape
    Ho = (H - kh) // stride + 1
    Wo = (W - kw) // stride + 1
    taps = []
    for i in range(kh):
        for j in range(kw):
            taps.append(jax.lax.slice(
                x,
                (0, i, j, 0),
                (N, i + (Ho - 1) * stride + 1, j + (Wo - 1) * stride + 1, C),
                (1, stride, stride, 1)))
    p = jnp.stack(taps, axis=3)                       # (N, Ho, Wo, T, C)
    return p.reshape(N * Ho * Wo, kh * kw * C), (N, Ho, Wo)


def _build_dw_selection(h, w, k, stride):
    # Static 0/1 tap-gather matrix for a depthwise conv with TF-SAME padding.
    pt, _ = _tf_same_pad(h, k, stride)
    plft, _ = _tf_same_pad(w, k, stride)
    ho, wo = -(-h // stride), -(-w // stride)
    sel = np.zeros((k * k * ho * wo, h * w), np.float32)
    for di in range(k):
        for dj in range(k):
            t = di * k + dj
            for oi in range(ho):
                for oj in range(wo):
                    ih = stride * oi + di - pt
                    iw = stride * oj + dj - plft
                    if 0 <= ih < h and 0 <= iw < w:
                        sel[t * ho * wo + oi * wo + oj, ih * w + iw] = 1.0
    return sel, ho, wo


# ------------------------------ parameter init --------------------------------

def init_params(in_hw):
    base = jax.random.PRNGKey(42)
    ctr = [0]

    def rnd(shape, scale=0.1):
        ctr[0] += 1
        return scale * jax.random.normal(jax.random.fold_in(base, ctr[0]),
                                         shape, jnp.float32)

    def bn(c):
        return 1.0 + rnd((c,), 0.05), rnd((c,), 0.05)

    def pad_mat(w):                            # 2-D weight -> (128, 128) bf16
        w = jnp.pad(w, ((0, LANE - w.shape[0]), (0, LANE - w.shape[1])))
        return w.astype(jnp.bfloat16)

    def pad_bias(b):                           # (c,) -> (1, 128) f32
        return jnp.pad(b, (0, LANE - b.shape[0])).reshape(1, LANE)

    params = {}

    # stem 3x3 s2 conv, BN scale folded into weight columns
    w = rnd((3, 3, 3, STEM_C))
    sc, bi = bn(STEM_C)
    wf = (w * sc[None, None, None, :]).reshape(9 * 3, STEM_C)
    wf = jnp.pad(wf, ((0, 32 - wf.shape[0]), (0, LANE - STEM_C)))
    params["stem_w"] = wf.astype(jnp.bfloat16)          # (32, 128)
    params["stem_b"] = pad_bias(bi)

    H = -(-in_hw[0] // 2)
    W = -(-in_hw[1] // 2)
    cin = STEM_C
    blocks = []
    for (expand, k, stride, cout) in BLOCKS:
        mid = cin * expand
        se_mid = max(1, int(cin * 0.25))
        bp = {"has_expand": expand != 1,
              "has_residual": stride == 1 and cin == cout}
        if expand != 1:
            ew = rnd((cin, mid))
            esc, ebi = bn(mid)
            bp["exp_w"] = pad_mat(ew * esc[None, :])
            bp["exp_b"] = pad_bias(ebi)
        dw = rnd((k, k, mid))
        dsc, dbi = bn(mid)
        dww = (dw * dsc[None, None, :]).reshape(k * k, 1, mid)
        bp["dw_w"] = jnp.pad(dww, ((0, 0), (0, 0), (0, LANE - mid)))
        bp["dw_b"] = pad_bias(dbi)
        w1 = rnd((mid, se_mid)); b1 = rnd((se_mid,), 0.05)
        w2 = rnd((se_mid, mid)); b2 = rnd((mid,), 0.05)
        bp["se_w1"] = pad_mat(w1); bp["se_b1"] = pad_bias(b1)
        bp["se_w2"] = pad_mat(w2); bp["se_b2"] = pad_bias(b2)
        pw = rnd((mid, cout))
        psc, pbi = bn(cout)
        bp["proj_w"] = pad_mat(pw * psc[None, :])
        bp["proj_b"] = pad_bias(pbi)
        sel, ho, wo = _build_dw_selection(H, W, k, stride)
        bp["sel"] = jnp.asarray(sel, jnp.bfloat16)
        bp["mi"] = H * W
        bp["mo"] = ho * wo
        blocks.append(bp)
        cin, H, W = cout, ho, wo
    params["blocks"] = blocks

    # head conv + classifier (GAP is done in-kernel; no pool matrix needed)
    hw_ = rnd((cin, HEAD_C))
    hsc, hbi = bn(HEAD_C)
    params["head_w"] = pad_mat(hw_ * hsc[None, :])
    params["head_b"] = pad_bias(hbi)
    fw = rnd((HEAD_C, NUM_CLASSES))
    fb = rnd((NUM_CLASSES,), 0.05)
    params["fc_w"] = pad_mat(fw)                         # (128, 128) bf16
    params["fc_b"] = pad_bias(fb)                        # (1, 128) f32
    return params


# --------------------------------- forward ------------------------------------

def efficientnet_b_forward(x_nchw, params):
    n = x_nchw.shape[0]
    x = jnp.transpose(x_nchw, (0, 2, 3, 1))                      # NCHW -> NHWC
    # stem im2col stays in plain-XLA glue (3-channel input is tiny);
    # all MACs run inside the fused Pallas kernel.
    xp = _pad_same(x, 3, 3, 2)
    cols, (_, ho, wo) = _extract_patches(xp, 3, 3, 2)            # (n*ho*wo, 27)
    kdim = params["stem_w"].shape[0]
    cols = jnp.pad(cols, ((0, 0), (0, kdim - cols.shape[1]))).astype(jnp.bfloat16)
    mo_stem = ho * wo

    # flat weight list + static per-block metadata, in the kernel's order
    weights = [params["stem_w"], params["stem_b"]]
    block_meta = []
    for bp in params["blocks"]:
        if bp["has_expand"]:
            weights += [bp["exp_w"], bp["exp_b"]]
        weights += [bp["sel"], bp["dw_w"], bp["dw_b"],
                    bp["se_w1"], bp["se_b1"], bp["se_w2"], bp["se_b2"],
                    bp["proj_w"], bp["proj_b"]]
        block_meta.append(dict(n_taps=bp["dw_w"].shape[0], mo=bp["mo"],
                               has_expand=bp["has_expand"],
                               has_residual=bp["has_residual"]))
    weights += [params["head_w"], params["head_b"],
                params["fc_w"], params["fc_b"]]

    kern = functools.partial(_effnet_kernel, block_meta=tuple(block_meta))
    in_specs = [pl.BlockSpec((mo_stem, kdim), lambda b: (b, 0))] + \
               [_const_spec(w.shape) for w in weights]

    out = pl.pallas_call(
        kern,
        out_shape=jax.ShapeDtypeStruct((n * 8, LANE), jnp.float32),
        grid=(n,),
        in_specs=in_specs,
        out_specs=pl.BlockSpec((8, LANE), lambda b: (b, 0)),
        compiler_params=pltpu.CompilerParams(dimension_semantics=("parallel",)),
    )(cols, *weights)

    # layout plumbing only: logits live in row 0, lanes [0, 2) of each tile
    return out.reshape(n, 8, LANE)[:, 0, :NUM_CLASSES]           # (N, 2) f32


if __name__ == "__main__":
    N, H_IN, W_IN = 2, 16, 16
    params = init_params((H_IN, W_IN))
    x = jax.random.normal(jax.random.PRNGKey(0), (N, 3, H_IN, W_IN), jnp.float32)
    fwd = jax.jit(lambda inp: efficientnet_b_forward(inp, params))
    out = jax.block_until_ready(fwd(x))
    assert out.shape == (N, NUM_CLASSES) and out.dtype == jnp.float32
    print("KERNEL_OK")
</pallas_src>

<mosaic_0001>
module attributes {stable_mosaic.version = 11 : i64} {
  func.func @_effnet_kernel(%arg0: i32, %arg1: memref<64x32xbf16, #tpu.memory_space<vmem>>, %arg2: memref<32x128xbf16, #tpu.memory_space<vmem>>, %arg3: memref<1x128xf32, #tpu.memory_space<vmem>>, %arg4: memref<576x64xbf16, #tpu.memory_space<vmem>>, %arg5: memref<9x1x128xf32, #tpu.memory_space<vmem>>, %arg6: memref<1x128xf32, #tpu.memory_space<vmem>>, %arg7: memref<128x128xbf16, #tpu.memory_space<vmem>>, %arg8: memref<1x128xf32, #tpu.memory_space<vmem>>, %arg9: memref<128x128xbf16, #tpu.memory_space<vmem>>, %arg10: memref<1x128xf32, #tpu.memory_space<vmem>>, %arg11: memref<128x128xbf16, #tpu.memory_space<vmem>>, %arg12: memref<1x128xf32, #tpu.memory_space<vmem>>, %arg13: memref<128x128xbf16, #tpu.memory_space<vmem>>, %arg14: memref<1x128xf32, #tpu.memory_space<vmem>>, %arg15: memref<144x64xbf16, #tpu.memory_space<vmem>>, %arg16: memref<9x1x128xf32, #tpu.memory_space<vmem>>, %arg17: memref<1x128xf32, #tpu.memory_space<vmem>>, %arg18: memref<128x128xbf16, #tpu.memory_space<vmem>>, %arg19: memref<1x128xf32, #tpu.memory_space<vmem>>, %arg20: memref<128x128xbf16, #tpu.memory_space<vmem>>, %arg21: memref<1x128xf32, #tpu.memory_space<vmem>>, %arg22: memref<128x128xbf16, #tpu.memory_space<vmem>>, %arg23: memref<1x128xf32, #tpu.memory_space<vmem>>, %arg24: memref<128x128xbf16, #tpu.memory_space<vmem>>, %arg25: memref<1x128xf32, #tpu.memory_space<vmem>>, %arg26: memref<144x16xbf16, #tpu.memory_space<vmem>>, %arg27: memref<9x1x128xf32, #tpu.memory_space<vmem>>, %arg28: memref<1x128xf32, #tpu.memory_space<vmem>>, %arg29: memref<128x128xbf16, #tpu.memory_space<vmem>>, %arg30: memref<1x128xf32, #tpu.memory_space<vmem>>, %arg31: memref<128x128xbf16, #tpu.memory_space<vmem>>, %arg32: memref<1x128xf32, #tpu.memory_space<vmem>>, %arg33: memref<128x128xbf16, #tpu.memory_space<vmem>>, %arg34: memref<1x128xf32, #tpu.memory_space<vmem>>, %arg35: memref<128x128xbf16, #tpu.memory_space<vmem>>, %arg36: memref<1x128xf32, #tpu.memory_space<vmem>>, %arg37: memref<128x128xbf16, #tpu.memory_space<vmem>>, %arg38: memref<1x128xf32, #tpu.memory_space<vmem>>, %arg39: memref<8x128xf32, #tpu.memory_space<vmem>>) attributes {dimension_semantics = [#tpu.dimension_semantics<parallel>], iteration_bounds = array<i64: 2>, scalar_prefetch = 0 : i64, scratch_operands = 0 : i64, tpu.core_type = #tpu.core_type<tc>, window_params = [{transform_indices = @transform_0, window_bounds = array<i64: 64, 32>}, {pipeline_mode = #tpu.pipeline_mode<synchronous>, transform_indices = @transform_1, window_bounds = array<i64: 32, 128>}, {pipeline_mode = #tpu.pipeline_mode<synchronous>, transform_indices = @transform_2, window_bounds = array<i64: 1, 128>}, {pipeline_mode = #tpu.pipeline_mode<synchronous>, transform_indices = @transform_3, window_bounds = array<i64: 576, 64>}, {pipeline_mode = #tpu.pipeline_mode<synchronous>, transform_indices = @transform_4, window_bounds = array<i64: 9, 1, 128>}, {pipeline_mode = #tpu.pipeline_mode<synchronous>, transform_indices = @transform_5, window_bounds = array<i64: 1, 128>}, {pipeline_mode = #tpu.pipeline_mode<synchronous>, transform_indices = @transform_6, window_bounds = array<i64: 128, 128>}, {pipeline_mode = #tpu.pipeline_mode<synchronous>, transform_indices = @transform_7, window_bounds = array<i64: 1, 128>}, {pipeline_mode = #tpu.pipeline_mode<synchronous>, transform_indices = @transform_8, window_bounds = array<i64: 128, 128>}, {pipeline_mode = #tpu.pipeline_mode<synchronous>, transform_indices = @transform_9, window_bounds = array<i64: 1, 128>}, {pipeline_mode = #tpu.pipeline_mode<synchronous>, transform_indices = @transform_10, window_bounds = array<i64: 128, 128>}, {pipeline_mode = #tpu.pipeline_mode<synchronous>, transform_indices = @transform_11, window_bounds = array<i64: 1, 128>}, {pipeline_mode = #tpu.pipeline_mode<synchronous>, transform_indices = @transform_12, window_bounds = array<i64: 128, 128>}, {pipeline_mode = #tpu.pipeline_mode<synchronous>, transform_indices = @transform_13, window_bounds = array<i64: 1, 128>}, {pipeline_mode = #tpu.pipeline_mode<synchronous>, transform_indices = @transform_14, window_bounds = array<i64: 144, 64>}, {pipeline_mode = #tpu.pipeline_mode<synchronous>, transform_indices = @transform_15, window_bounds = array<i64: 9, 1, 128>}, {pipeline_mode = #tpu.pipeline_mode<synchronous>, transform_indices = @transform_16, window_bounds = array<i64: 1, 128>}, {pipeline_mode = #tpu.pipeline_mode<synchronous>, transform_indices = @transform_17, window_bounds = array<i64: 128, 128>}, {pipeline_mode = #tpu.pipeline_mode<synchronous>, transform_indices = @transform_18, window_bounds = array<i64: 1, 128>}, {pipeline_mode = #tpu.pipeline_mode<synchronous>, transform_indices = @transform_19, window_bounds = array<i64: 128, 128>}, {pipeline_mode = #tpu.pipeline_mode<synchronous>, transform_indices = @transform_20, window_bounds = array<i64: 1, 128>}, {pipeline_mode = #tpu.pipeline_mode<synchronous>, transform_indices = @transform_21, window_bounds = array<i64: 128, 128>}, {pipeline_mode = #tpu.pipeline_mode<synchronous>, transform_indices = @transform_22, window_bounds = array<i64: 1, 128>}, {pipeline_mode = #tpu.pipeline_mode<synchronous>, transform_indices = @transform_23, window_bounds = array<i64: 128, 128>}, {pipeline_mode = #tpu.pipeline_mode<synchronous>, transform_indices = @transform_24, window_bounds = array<i64: 1, 128>}, {pipeline_mode = #tpu.pipeline_mode<synchronous>, transform_indices = @transform_25, window_bounds = array<i64: 144, 16>}, {pipeline_mode = #tpu.pipeline_mode<synchronous>, transform_indices = @transform_26, window_bounds = array<i64: 9, 1, 128>}, {pipeline_mode = #tpu.pipeline_mode<synchronous>, transform_indices = @transform_27, window_bounds = array<i64: 1, 128>}, {pipeline_mode = #tpu.pipeline_mode<synchronous>, transform_indices = @transform_28, window_bounds = array<i64: 128, 128>}, {pipeline_mode = #tpu.pipeline_mode<synchronous>, transform_indices = @transform_29, window_bounds = array<i64: 1, 128>}, {pipeline_mode = #tpu.pipeline_mode<synchronous>, transform_indices = @transform_30, window_bounds = array<i64: 128, 128>}, {pipeline_mode = #tpu.pipeline_mode<synchronous>, transform_indices = @transform_31, window_bounds = array<i64: 1, 128>}, {pipeline_mode = #tpu.pipeline_mode<synchronous>, transform_indices = @transform_32, window_bounds = array<i64: 128, 128>}, {pipeline_mode = #tpu.pipeline_mode<synchronous>, transform_indices = @transform_33, window_bounds = array<i64: 1, 128>}, {pipeline_mode = #tpu.pipeline_mode<synchronous>, transform_indices = @transform_34, window_bounds = array<i64: 128, 128>}, {pipeline_mode = #tpu.pipeline_mode<synchronous>, transform_indices = @transform_35, window_bounds = array<i64: 1, 128>}, {pipeline_mode = #tpu.pipeline_mode<synchronous>, transform_indices = @transform_36, window_bounds = array<i64: 128, 128>}, {pipeline_mode = #tpu.pipeline_mode<synchronous>, transform_indices = @transform_37, window_bounds = array<i64: 1, 128>}, {transform_indices = @transform_38, window_bounds = array<i64: 8, 128>}]} {
    %c0 = arith.constant 0 : index
    %c0_0 = arith.constant 0 : index
    %0 = vector.load %arg1[%c0, %c0_0] : memref<64x32xbf16, #tpu.memory_space<vmem>>, vector<64x32xbf16>
    %c0_1 = arith.constant 0 : index
    %c0_2 = arith.constant 0 : index
    %1 = vector.load %arg2[%c0_1, %c0_2] : memref<32x128xbf16, #tpu.memory_space<vmem>>, vector<32x128xbf16>
    %cst = arith.constant dense<0.000000e+00> : vector<64x128xf32>
    %2 = tpu.matmul %0, %1, %cst {dimension_numbers = #tpu.dot_dimension_numbers<[1], [0], [0], [1], [0, 0, 1, 1], [], []>} : vector<64x32xbf16>, vector<32x128xbf16>, vector<64x128xf32> -> vector<64x128xf32>
    %c0_3 = arith.constant 0 : index
    %c0_4 = arith.constant 0 : index
    %3 = vector.load %arg3[%c0_3, %c0_4] : memref<1x128xf32, #tpu.memory_space<vmem>>, vector<1x128xf32>
    %4 = vector.broadcast %3 : vector<1x128xf32> to vector<64x128xf32>
    %5 = arith.addf %2, %4 : vector<64x128xf32>
    %cst_5 = arith.constant 5.000000e-01 : f32
    %6 = vector.broadcast %cst_5 : f32 to vector<64x128xf32>
    %7 = arith.mulf %6, %5 : vector<64x128xf32>
    %8 = math.tanh %7 : vector<64x128xf32>
    %cst_6 = arith.constant 1.000000e+00 : f32
    %9 = vector.broadcast %cst_6 : f32 to vector<64x128xf32>
    %10 = arith.addf %8, %9 : vector<64x128xf32>
    %cst_7 = arith.constant 5.000000e-01 : f32
    %11 = vector.broadcast %cst_7 : f32 to vector<64x128xf32>
    %12 = arith.mulf %11, %10 : vector<64x128xf32>
    %13 = arith.mulf %5, %12 : vector<64x128xf32>
    %14 = arith.truncf %13 : vector<64x128xf32> to vector<64x128xbf16>
    %c0_8 = arith.constant 0 : index
    %c0_9 = arith.constant 0 : index
    %15 = vector.load %arg4[%c0_8, %c0_9] : memref<576x64xbf16, #tpu.memory_space<vmem>>, vector<576x64xbf16>
    %c0_10 = arith.constant 0 : index
    %c0_11 = arith.constant 0 : index
    %c0_12 = arith.constant 0 : index
    %16 = vector.load %arg5[%c0_10, %c0_11, %c0_12] : memref<9x1x128xf32, #tpu.memory_space<vmem>>, vector<9x1x128xf32>
    %c0_13 = arith.constant 0 : index
    %c0_14 = arith.constant 0 : index
    %17 = vector.load %arg6[%c0_13, %c0_14] : memref<1x128xf32, #tpu.memory_space<vmem>>, vector<1x128xf32>
    %c0_15 = arith.constant 0 : index
    %c0_16 = arith.constant 0 : index
    %18 = vector.load %arg7[%c0_15, %c0_16] : memref<128x128xbf16, #tpu.memory_space<vmem>>, vector<128x128xbf16>
    %c0_17 = arith.constant 0 : index
    %c0_18 = arith.constant 0 : index
    %19 = vector.load %arg8[%c0_17, %c0_18] : memref<1x128xf32, #tpu.memory_space<vmem>>, vector<1x128xf32>
    %c0_19 = arith.constant 0 : index
    %c0_20 = arith.constant 0 : index
    %20 = vector.load %arg9[%c0_19, %c0_20] : memref<128x128xbf16, #tpu.memory_space<vmem>>, vector<128x128xbf16>
    %c0_21 = arith.constant 0 : index
    %c0_22 = arith.constant 0 : index
    %21 = vector.load %arg10[%c0_21, %c0_22] : memref<1x128xf32, #tpu.memory_space<vmem>>, vector<1x128xf32>
    %c0_23 = arith.constant 0 : index
    %c0_24 = arith.constant 0 : index
    %22 = vector.load %arg11[%c0_23, %c0_24] : memref<128x128xbf16, #tpu.memory_space<vmem>>, vector<128x128xbf16>
    %c0_25 = arith.constant 0 : index
    %c0_26 = arith.constant 0 : index
    %23 = vector.load %arg12[%c0_25, %c0_26] : memref<1x128xf32, #tpu.memory_space<vmem>>, vector<1x128xf32>
    %cst_27 = arith.constant dense<0.000000e+00> : vector<576x128xf32>
    %24 = tpu.matmul %15, %14, %cst_27 {dimension_numbers = #tpu.dot_dimension_numbers<[1], [0], [0], [1], [0, 0, 1, 1], [], []>} : vector<576x64xbf16>, vector<64x128xbf16>, vector<576x128xf32> -> vector<576x128xf32>
    %25 = vector.extract_strided_slice %24 {offsets = [0, 0], sizes = [64, 128], strides = [1, 1]} : vector<576x128xf32> to vector<64x128xf32>
    %26 = vector.extract_strided_slice %16 {offsets = [0, 0, 0], sizes = [1, 1, 128], strides = [1, 1, 1]} : vector<9x1x128xf32> to vector<1x1x128xf32>
    %27 = vector.shape_cast %26 : vector<1x1x128xf32> to vector<1x128xf32>
    %28 = vector.broadcast %27 : vector<1x128xf32> to vector<64x128xf32>
    %29 = arith.mulf %25, %28 : vector<64x128xf32>
    %30 = vector.extract_strided_slice %24 {offsets = [64, 0], sizes = [64, 128], strides = [1, 1]} : vector<576x128xf32> to vector<64x128xf32>
    %31 = vector.extract_strided_slice %16 {offsets = [1, 0, 0], sizes = [1, 1, 128], strides = [1, 1, 1]} : vector<9x1x128xf32> to vector<1x1x128xf32>
    %32 = vector.shape_cast %31 : vector<1x1x128xf32> to vector<1x128xf32>
    %33 = vector.broadcast %32 : vector<1x128xf32> to vector<64x128xf32>
    %34 = arith.mulf %30, %33 : vector<64x128xf32>
    %35 = arith.addf %29, %34 : vector<64x128xf32>
    %36 = vector.extract_strided_slice %24 {offsets = [128, 0], sizes = [64, 128], strides = [1, 1]} : vector<576x128xf32> to vector<64x128xf32>
    %37 = vector.extract_strided_slice %16 {offsets = [2, 0, 0], sizes = [1, 1, 128], strides = [1, 1, 1]} : vector<9x1x128xf32> to vector<1x1x128xf32>
    %38 = vector.shape_cast %37 : vector<1x1x128xf32> to vector<1x128xf32>
    %39 = vector.broadcast %38 : vector<1x128xf32> to vector<64x128xf32>
    %40 = arith.mulf %36, %39 : vector<64x128xf32>
    %41 = arith.addf %35, %40 : vector<64x128xf32>
    %42 = vector.extract_strided_slice %24 {offsets = [192, 0], sizes = [64, 128], strides = [1, 1]} : vector<576x128xf32> to vector<64x128xf32>
    %43 = vector.extract_strided_slice %16 {offsets = [3, 0, 0], sizes = [1, 1, 128], strides = [1, 1, 1]} : vector<9x1x128xf32> to vector<1x1x128xf32>
    %44 = vector.shape_cast %43 : vector<1x1x128xf32> to vector<1x128xf32>
    %45 = vector.broadcast %44 : vector<1x128xf32> to vector<64x128xf32>
    %46 = arith.mulf %42, %45 : vector<64x128xf32>
    %47 = arith.addf %41, %46 : vector<64x128xf32>
    %48 = vector.extract_strided_slice %24 {offsets = [256, 0], sizes = [64, 128], strides = [1, 1]} : vector<576x128xf32> to vector<64x128xf32>
    %49 = vector.extract_strided_slice %16 {offsets = [4, 0, 0], sizes = [1, 1, 128], strides = [1, 1, 1]} : vector<9x1x128xf32> to vector<1x1x128xf32>
    %50 = vector.shape_cast %49 : vector<1x1x128xf32> to vector<1x128xf32>
    %51 = vector.broadcast %50 : vector<1x128xf32> to vector<64x128xf32>
    %52 = arith.mulf %48, %51 : vector<64x128xf32>
    %53 = arith.addf %47, %52 : vector<64x128xf32>
    %54 = vector.extract_strided_slice %24 {offsets = [320, 0], sizes = [64, 128], strides = [1, 1]} : vector<576x128xf32> to vector<64x128xf32>
    %55 = vector.extract_strided_slice %16 {offsets = [5, 0, 0], sizes = [1, 1, 128], strides = [1, 1, 1]} : vector<9x1x128xf32> to vector<1x1x128xf32>
    %56 = vector.shape_cast %55 : vector<1x1x128xf32> to vector<1x128xf32>
    %57 = vector.broadcast %56 : vector<1x128xf32> to vector<64x128xf32>
    %58 = arith.mulf %54, %57 : vector<64x128xf32>
    %59 = arith.addf %53, %58 : vector<64x128xf32>
    %60 = vector.extract_strided_slice %24 {offsets = [384, 0], sizes = [64, 128], strides = [1, 1]} : vector<576x128xf32> to vector<64x128xf32>
    %61 = vector.extract_strided_slice %16 {offsets = [6, 0, 0], sizes = [1, 1, 128], strides = [1, 1, 1]} : vector<9x1x128xf32> to vector<1x1x128xf32>
    %62 = vector.shape_cast %61 : vector<1x1x128xf32> to vector<1x128xf32>
    %63 = vector.broadcast %62 : vector<1x128xf32> to vector<64x128xf32>
    %64 = arith.mulf %60, %63 : vector<64x128xf32>
    %65 = arith.addf %59, %64 : vector<64x128xf32>
    %66 = vector.extract_strided_slice %24 {offsets = [448, 0], sizes = [64, 128], strides = [1, 1]} : vector<576x128xf32> to vector<64x128xf32>
    %67 = vector.extract_strided_slice %16 {offsets = [7, 0, 0], sizes = [1, 1, 128], strides = [1, 1, 1]} : vector<9x1x128xf32> to vector<1x1x128xf32>
    %68 = vector.shape_cast %67 : vector<1x1x128xf32> to vector<1x128xf32>
    %69 = vector.broadcast %68 : vector<1x128xf32> to vector<64x128xf32>
    %70 = arith.mulf %66, %69 : vector<64x128xf32>
    %71 = arith.addf %65, %70 : vector<64x128xf32>
    %72 = vector.extract_strided_slice %24 {offsets = [512, 0], sizes = [64, 128], strides = [1, 1]} : vector<576x128xf32> to vector<64x128xf32>
    %73 = vector.extract_strided_slice %16 {offsets = [8, 0, 0], sizes = [1, 1, 128], strides = [1, 1, 1]} : vector<9x1x128xf32> to vector<1x1x128xf32>
    %74 = vector.shape_cast %73 : vector<1x1x128xf32> to vector<1x128xf32>
    %75 = vector.broadcast %74 : vector<1x128xf32> to vector<64x128xf32>
    %76 = arith.mulf %72, %75 : vector<64x128xf32>
    %77 = arith.addf %71, %76 : vector<64x128xf32>
    %78 = vector.broadcast %17 : vector<1x128xf32> to vector<64x128xf32>
    %79 = arith.addf %77, %78 : vector<64x128xf32>
    %cst_28 = arith.constant 5.000000e-01 : f32
    %80 = vector.broadcast %cst_28 : f32 to vector<64x128xf32>
    %81 = arith.mulf %80, %79 : vector<64x128xf32>
    %82 = math.tanh %81 : vector<64x128xf32>
    %cst_29 = arith.constant 1.000000e+00 : f32
    %83 = vector.broadcast %cst_29 : f32 to vector<64x128xf32>
    %84 = arith.addf %82, %83 : vector<64x128xf32>
    %cst_30 = arith.constant 5.000000e-01 : f32
    %85 = vector.broadcast %cst_30 : f32 to vector<64x128xf32>
    %86 = arith.mulf %85, %84 : vector<64x128xf32>
    %87 = arith.mulf %79, %86 : vector<64x128xf32>
    %cst_31 = arith.constant dense<0.000000e+00> : vector<128xf32>
    %88 = vector.multi_reduction <add>, %87, %cst_31 [0] : vector<64x128xf32> to vector<128xf32>
    %89 = vector.shape_cast %88 : vector<128xf32> to vector<1x128xf32>
    %cst_32 = arith.constant 6.400000e+01 : f32
    %90 = vector.broadcast %cst_32 : f32 to vector<1x128xf32>
    %91 = arith.divf %89, %90 : vector<1x128xf32>
    %92 = arith.truncf %91 : vector<1x128xf32> to vector<1x128xbf16>
    %cst_33 = arith.constant dense<0.000000e+00> : vector<1x128xf32>
    %93 = tpu.matmul %92, %18, %cst_33 {dimension_numbers = #tpu.dot_dimension_numbers<[1], [0], [0], [1], [0, 0, 1, 1], [], []>} : vector<1x128xbf16>, vector<128x128xbf16>, vector<1x128xf32> -> vector<1x128xf32>
    %94 = arith.addf %93, %19 : vector<1x128xf32>
    %cst_34 = arith.constant 5.000000e-01 : f32
    %95 = vector.broadcast %cst_34 : f32 to vector<1x128xf32>
    %96 = arith.mulf %95, %94 : vector<1x128xf32>
    %97 = math.tanh %96 : vector<1x128xf32>
    %cst_35 = arith.constant 1.000000e+00 : f32
    %98 = vector.broadcast %cst_35 : f32 to vector<1x128xf32>
    %99 = arith.addf %97, %98 : vector<1x128xf32>
    %cst_36 = arith.constant 5.000000e-01 : f32
    %100 = vector.broadcast %cst_36 : f32 to vector<1x128xf32>
    %101 = arith.mulf %100, %99 : vector<1x128xf32>
    %102 = arith.mulf %94, %101 : vector<1x128xf32>
    %103 = arith.truncf %102 : vector<1x128xf32> to vector<1x128xbf16>
    %cst_37 = arith.constant dense<0.000000e+00> : vector<1x128xf32>
    %104 = tpu.matmul %103, %20, %cst_37 {dimension_numbers = #tpu.dot_dimension_numbers<[1], [0], [0], [1], [0, 0, 1, 1], [], []>} : vector<1x128xbf16>, vector<128x128xbf16>, vector<1x128xf32> -> vector<1x128xf32>
    %105 = arith.addf %104, %21 : vector<1x128xf32>
    %cst_38 = arith.constant 5.000000e-01 : f32
    %106 = vector.broadcast %cst_38 : f32 to vector<1x128xf32>
    %107 = arith.mulf %106, %105 : vector<1x128xf32>
    %108 = math.tanh %107 : vector<1x128xf32>
    %cst_39 = arith.constant 1.000000e+00 : f32
    %109 = vector.broadcast %cst_39 : f32 to vector<1x128xf32>
    %110 = arith.addf %108, %109 : vector<1x128xf32>
    %cst_40 = arith.constant 5.000000e-01 : f32
    %111 = vector.broadcast %cst_40 : f32 to vector<1x128xf32>
    %112 = arith.mulf %111, %110 : vector<1x128xf32>
    %113 = vector.broadcast %112 : vector<1x128xf32> to vector<64x128xf32>
    %114 = arith.mulf %87, %113 : vector<64x128xf32>
    %115 = arith.truncf %114 : vector<64x128xf32> to vector<64x128xbf16>
    %cst_41 = arith.constant dense<0.000000e+00> : vector<64x128xf32>
    %116 = tpu.matmul %115, %22, %cst_41 {dimension_numbers = #tpu.dot_dimension_numbers<[1], [0], [0], [1], [0, 0, 1, 1], [], []>} : vector<64x128xbf16>, vector<128x128xbf16>, vector<64x128xf32> -> vector<64x128xf32>
    %117 = vector.broadcast %23 : vector<1x128xf32> to vector<64x128xf32>
    %118 = arith.addf %116, %117 : vector<64x128xf32>
    %119 = arith.truncf %118 : vector<64x128xf32> to vector<64x128xbf16>
    %c0_42 = arith.constant 0 : index
    %c0_43 = arith.constant 0 : index
    %120 = vector.load %arg13[%c0_42, %c0_43] : memref<128x128xbf16, #tpu.memory_space<vmem>>, vector<128x128xbf16>
    %c0_44 = arith.constant 0 : index
    %c0_45 = arith.constant 0 : index
    %121 = vector.load %arg14[%c0_44, %c0_45] : memref<1x128xf32, #tpu.memory_space<vmem>>, vector<1x128xf32>
    %c0_46 = arith.constant 0 : index
    %c0_47 = arith.constant 0 : index
    %122 = vector.load %arg15[%c0_46, %c0_47] : memref<144x64xbf16, #tpu.memory_space<vmem>>, vector<144x64xbf16>
    %c0_48 = arith.constant 0 : index
    %c0_49 = arith.constant 0 : index
    %c0_50 = arith.constant 0 : index
    %123 = vector.load %arg16[%c0_48, %c0_49, %c0_50] : memref<9x1x128xf32, #tpu.memory_space<vmem>>, vector<9x1x128xf32>
    %c0_51 = arith.constant 0 : index
    %c0_52 = arith.constant 0 : index
    %124 = vector.load %arg17[%c0_51, %c0_52] : memref<1x128xf32, #tpu.memory_space<vmem>>, vector<1x128xf32>
    %c0_53 = arith.constant 0 : index
    %c0_54 = arith.constant 0 : index
    %125 = vector.load %arg18[%c0_53, %c0_54] : memref<128x128xbf16, #tpu.memory_space<vmem>>, vector<128x128xbf16>
    %c0_55 = arith.constant 0 : index
    %c0_56 = arith.constant 0 : index
    %126 = vector.load %arg19[%c0_55, %c0_56] : memref<1x128xf32, #tpu.memory_space<vmem>>, vector<1x128xf32>
    %c0_57 = arith.constant 0 : index
    %c0_58 = arith.constant 0 : index
    %127 = vector.load %arg20[%c0_57, %c0_58] : memref<128x128xbf16, #tpu.memory_space<vmem>>, vector<128x128xbf16>
    %c0_59 = arith.constant 0 : index
    %c0_60 = arith.constant 0 : index
    %128 = vector.load %arg21[%c0_59, %c0_60] : memref<1x128xf32, #tpu.memory_space<vmem>>, vector<1x128xf32>
    %c0_61 = arith.constant 0 : index
    %c0_62 = arith.constant 0 : index
    %129 = vector.load %arg22[%c0_61, %c0_62] : memref<128x128xbf16, #tpu.memory_space<vmem>>, vector<128x128xbf16>
    %c0_63 = arith.constant 0 : index
    %c0_64 = arith.constant 0 : index
    %130 = vector.load %arg23[%c0_63, %c0_64] : memref<1x128xf32, #tpu.memory_space<vmem>>, vector<1x128xf32>
    %cst_65 = arith.constant dense<0.000000e+00> : vector<64x128xf32>
    %131 = tpu.matmul %119, %120, %cst_65 {dimension_numbers = #tpu.dot_dimension_numbers<[1], [0], [0], [1], [0, 0, 1, 1], [], []>} : vector<64x128xbf16>, vector<128x128xbf16>, vector<64x128xf32> -> vector<64x128xf32>
    %132 = vector.broadcast %121 : vector<1x128xf32> to vector<64x128xf32>
    %133 = arith.addf %131, %132 : vector<64x128xf32>
    %cst_66 = arith.constant 5.000000e-01 : f32
    %134 = vector.broadcast %cst_66 : f32 to vector<64x128xf32>
    %135 = arith.mulf %134, %133 : vector<64x128xf32>
    %136 = math.tanh %135 : vector<64x128xf32>
    %cst_67 = arith.constant 1.000000e+00 : f32
    %137 = vector.broadcast %cst_67 : f32 to vector<64x128xf32>
    %138 = arith.addf %136, %137 : vector<64x128xf32>
    %cst_68 = arith.constant 5.000000e-01 : f32
    %139 = vector.broadcast %cst_68 : f32 to vector<64x128xf32>
    %140 = arith.mulf %139, %138 : vector<64x128xf32>
    %141 = arith.mulf %133, %140 : vector<64x128xf32>
    %142 = arith.truncf %141 : vector<64x128xf32> to vector<64x128xbf16>
    %cst_69 = arith.constant dense<0.000000e+00> : vector<144x128xf32>
    %143 = tpu.matmul %122, %142, %cst_69 {dimension_numbers = #tpu.dot_dimension_numbers<[1], [0], [0], [1], [0, 0, 1, 1], [], []>} : vector<144x64xbf16>, vector<64x128xbf16>, vector<144x128xf32> -> vector<144x128xf32>
    %144 = vector.extract_strided_slice %143 {offsets = [0, 0], sizes = [16, 128], strides = [1, 1]} : vector<144x128xf32> to vector<16x128xf32>
    %145 = vector.extract_strided_slice %123 {offsets = [0, 0, 0], sizes = [1, 1, 128], strides = [1, 1, 1]} : vector<9x1x128xf32> to vector<1x1x128xf32>
    %146 = vector.shape_cast %145 : vector<1x1x128xf32> to vector<1x128xf32>
    %147 = vector.broadcast %146 : vector<1x128xf32> to vector<16x128xf32>
    %148 = arith.mulf %144, %147 : vector<16x128xf32>
    %149 = vector.extract_strided_slice %143 {offsets = [16, 0], sizes = [16, 128], strides = [1, 1]} : vector<144x128xf32> to vector<16x128xf32>
    %150 = vector.extract_strided_slice %123 {offsets = [1, 0, 0], sizes = [1, 1, 128], strides = [1, 1, 1]} : vector<9x1x128xf32> to vector<1x1x128xf32>
    %151 = vector.shape_cast %150 : vector<1x1x128xf32> to vector<1x128xf32>
    %152 = vector.broadcast %151 : vector<1x128xf32> to vector<16x128xf32>
    %153 = arith.mulf %149, %152 : vector<16x128xf32>
    %154 = arith.addf %148, %153 : vector<16x128xf32>
    %155 = vector.extract_strided_slice %143 {offsets = [32, 0], sizes = [16, 128], strides = [1, 1]} : vector<144x128xf32> to vector<16x128xf32>
    %156 = vector.extract_strided_slice %123 {offsets = [2, 0, 0], sizes = [1, 1, 128], strides = [1, 1, 1]} : vector<9x1x128xf32> to vector<1x1x128xf32>
    %157 = vector.shape_cast %156 : vector<1x1x128xf32> to vector<1x128xf32>
    %158 = vector.broadcast %157 : vector<1x128xf32> to vector<16x128xf32>
    %159 = arith.mulf %155, %158 : vector<16x128xf32>
    %160 = arith.addf %154, %159 : vector<16x128xf32>
    %161 = vector.extract_strided_slice %143 {offsets = [48, 0], sizes = [16, 128], strides = [1, 1]} : vector<144x128xf32> to vector<16x128xf32>
    %162 = vector.extract_strided_slice %123 {offsets = [3, 0, 0], sizes = [1, 1, 128], strides = [1, 1, 1]} : vector<9x1x128xf32> to vector<1x1x128xf32>
    %163 = vector.shape_cast %162 : vector<1x1x128xf32> to vector<1x128xf32>
    %164 = vector.broadcast %163 : vector<1x128xf32> to vector<16x128xf32>
    %165 = arith.mulf %161, %164 : vector<16x128xf32>
    %166 = arith.addf %160, %165 : vector<16x128xf32>
    %167 = vector.extract_strided_slice %143 {offsets = [64, 0], sizes = [16, 128], strides = [1, 1]} : vector<144x128xf32> to vector<16x128xf32>
    %168 = vector.extract_strided_slice %123 {offsets = [4, 0, 0], sizes = [1, 1, 128], strides = [1, 1, 1]} : vector<9x1x128xf32> to vector<1x1x128xf32>
    %169 = vector.shape_cast %168 : vector<1x1x128xf32> to vector<1x128xf32>
    %170 = vector.broadcast %169 : vector<1x128xf32> to vector<16x128xf32>
    %171 = arith.mulf %167, %170 : vector<16x128xf32>
    %172 = arith.addf %166, %171 : vector<16x128xf32>
    %173 = vector.extract_strided_slice %143 {offsets = [80, 0], sizes = [16, 128], strides = [1, 1]} : vector<144x128xf32> to vector<16x128xf32>
    %174 = vector.extract_strided_slice %123 {offsets = [5, 0, 0], sizes = [1, 1, 128], strides = [1, 1, 1]} : vector<9x1x128xf32> to vector<1x1x128xf32>
    %175 = vector.shape_cast %174 : vector<1x1x128xf32> to vector<1x128xf32>
    %176 = vector.broadcast %175 : vector<1x128xf32> to vector<16x128xf32>
    %177 = arith.mulf %173, %176 : vector<16x128xf32>
    %178 = arith.addf %172, %177 : vector<16x128xf32>
    %179 = vector.extract_strided_slice %143 {offsets = [96, 0], sizes = [16, 128], strides = [1, 1]} : vector<144x128xf32> to vector<16x128xf32>
    %180 = vector.extract_strided_slice %123 {offsets = [6, 0, 0], sizes = [1, 1, 128], strides = [1, 1, 1]} : vector<9x1x128xf32> to vector<1x1x128xf32>
    %181 = vector.shape_cast %180 : vector<1x1x128xf32> to vector<1x128xf32>
    %182 = vector.broadcast %181 : vector<1x128xf32> to vector<16x128xf32>
    %183 = arith.mulf %179, %182 : vector<16x128xf32>
    %184 = arith.addf %178, %183 : vector<16x128xf32>
    %185 = vector.extract_strided_slice %143 {offsets = [112, 0], sizes = [16, 128], strides = [1, 1]} : vector<144x128xf32> to vector<16x128xf32>
    %186 = vector.extract_strided_slice %123 {offsets = [7, 0, 0], sizes = [1, 1, 128], strides = [1, 1, 1]} : vector<9x1x128xf32> to vector<1x1x128xf32>
    %187 = vector.shape_cast %186 : vector<1x1x128xf32> to vector<1x128xf32>
    %188 = vector.broadcast %187 : vector<1x128xf32> to vector<16x128xf32>
    %189 = arith.mulf %185, %188 : vector<16x128xf32>
    %190 = arith.addf %184, %189 : vector<16x128xf32>
    %191 = vector.extract_strided_slice %143 {offsets = [128, 0], sizes = [16, 128], strides = [1, 1]} : vector<144x128xf32> to vector<16x128xf32>
    %192 = vector.extract_strided_slice %123 {offsets = [8, 0, 0], sizes = [1, 1, 128], strides = [1, 1, 1]} : vector<9x1x128xf32> to vector<1x1x128xf32>
    %193 = vector.shape_cast %192 : vector<1x1x128xf32> to vector<1x128xf32>
    %194 = vector.broadcast %193 : vector<1x128xf32> to vector<16x128xf32>
    %195 = arith.mulf %191, %194 : vector<16x128xf32>
    %196 = arith.addf %190, %195 : vector<16x128xf32>
    %197 = vector.broadcast %124 : vector<1x128xf32> to vector<16x128xf32>
    %198 = arith.addf %196, %197 : vector<16x128xf32>
    %cst_70 = arith.constant 5.000000e-01 : f32
    %199 = vector.broadcast %cst_70 : f32 to vector<16x128xf32>
    %200 = arith.mulf %199, %198 : vector<16x128xf32>
    %201 = math.tanh %200 : vector<16x128xf32>
    %cst_71 = arith.constant 1.000000e+00 : f32
    %202 = vector.broadcast %cst_71 : f32 to vector<16x128xf32>
    %203 = arith.addf %201, %202 : vector<16x128xf32>
    %cst_72 = arith.constant 5.000000e-01 : f32
    %204 = vector.broadcast %cst_72 : f32 to vector<16x128xf32>
    %205 = arith.mulf %204, %203 : vector<16x128xf32>
    %206 = arith.mulf %198, %205 : vector<16x128xf32>
    %cst_73 = arith.constant dense<0.000000e+00> : vector<128xf32>
    %207 = vector.multi_reduction <add>, %206, %cst_73 [0] : vector<16x128xf32> to vector<128xf32>
    %208 = vector.shape_cast %207 : vector<128xf32> to vector<1x128xf32>
    %cst_74 = arith.constant 1.600000e+01 : f32
    %209 = vector.broadcast %cst_74 : f32 to vector<1x128xf32>
    %210 = arith.divf %208, %209 : vector<1x128xf32>
    %211 = arith.truncf %210 : vector<1x128xf32> to vector<1x128xbf16>
    %cst_75 = arith.constant dense<0.000000e+00> : vector<1x128xf32>
    %212 = tpu.matmul %211, %125, %cst_75 {dimension_numbers = #tpu.dot_dimension_numbers<[1], [0], [0], [1], [0, 0, 1, 1], [], []>} : vector<1x128xbf16>, vector<128x128xbf16>, vector<1x128xf32> -> vector<1x128xf32>
    %213 = arith.addf %212, %126 : vector<1x128xf32>
    %cst_76 = arith.constant 5.000000e-01 : f32
    %214 = vector.broadcast %cst_76 : f32 to vector<1x128xf32>
    %215 = arith.mulf %214, %213 : vector<1x128xf32>
    %216 = math.tanh %215 : vector<1x128xf32>
    %cst_77 = arith.constant 1.000000e+00 : f32
    %217 = vector.broadcast %cst_77 : f32 to vector<1x128xf32>
    %218 = arith.addf %216, %217 : vector<1x128xf32>
    %cst_78 = arith.constant 5.000000e-01 : f32
    %219 = vector.broadcast %cst_78 : f32 to vector<1x128xf32>
    %220 = arith.mulf %219, %218 : vector<1x128xf32>
    %221 = arith.mulf %213, %220 : vector<1x128xf32>
    %222 = arith.truncf %221 : vector<1x128xf32> to vector<1x128xbf16>
    %cst_79 = arith.constant dense<0.000000e+00> : vector<1x128xf32>
    %223 = tpu.matmul %222, %127, %cst_79 {dimension_numbers = #tpu.dot_dimension_numbers<[1], [0], [0], [1], [0, 0, 1, 1], [], []>} : vector<1x128xbf16>, vector<128x128xbf16>, vector<1x128xf32> -> vector<1x128xf32>
    %224 = arith.addf %223, %128 : vector<1x128xf32>
    %cst_80 = arith.constant 5.000000e-01 : f32
    %225 = vector.broadcast %cst_80 : f32 to vector<1x128xf32>
    %226 = arith.mulf %225, %224 : vector<1x128xf32>
    %227 = math.tanh %226 : vector<1x128xf32>
    %cst_81 = arith.constant 1.000000e+00 : f32
    %228 = vector.broadcast %cst_81 : f32 to vector<1x128xf32>
    %229 = arith.addf %227, %228 : vector<1x128xf32>
    %cst_82 = arith.constant 5.000000e-01 : f32
    %230 = vector.broadcast %cst_82 : f32 to vector<1x128xf32>
    %231 = arith.mulf %230, %229 : vector<1x128xf32>
    %232 = vector.broadcast %231 : vector<1x128xf32> to vector<16x128xf32>
    %233 = arith.mulf %206, %232 : vector<16x128xf32>
    %234 = arith.truncf %233 : vector<16x128xf32> to vector<16x128xbf16>
    %cst_83 = arith.constant dense<0.000000e+00> : vector<16x128xf32>
    %235 = tpu.matmul %234, %129, %cst_83 {dimension_numbers = #tpu.dot_dimension_numbers<[1], [0], [0], [1], [0, 0, 1, 1], [], []>} : vector<16x128xbf16>, vector<128x128xbf16>, vector<16x128xf32> -> vector<16x128xf32>
    %236 = vector.broadcast %130 : vector<1x128xf32> to vector<16x128xf32>
    %237 = arith.addf %235, %236 : vector<16x128xf32>
    %238 = arith.truncf %237 : vector<16x128xf32> to vector<16x128xbf16>
    %c0_84 = arith.constant 0 : index
    %c0_85 = arith.constant 0 : index
    %239 = vector.load %arg24[%c0_84, %c0_85] : memref<128x128xbf16, #tpu.memory_space<vmem>>, vector<128x128xbf16>
    %c0_86 = arith.constant 0 : index
    %c0_87 = arith.constant 0 : index
    %240 = vector.load %arg25[%c0_86, %c0_87] : memref<1x128xf32, #tpu.memory_space<vmem>>, vector<1x128xf32>
    %c0_88 = arith.constant 0 : index
    %c0_89 = arith.constant 0 : index
    %241 = vector.load %arg26[%c0_88, %c0_89] : memref<144x16xbf16, #tpu.memory_space<vmem>>, vector<144x16xbf16>
    %c0_90 = arith.constant 0 : index
    %c0_91 = arith.constant 0 : index
    %c0_92 = arith.constant 0 : index
    %242 = vector.load %arg27[%c0_90, %c0_91, %c0_92] : memref<9x1x128xf32, #tpu.memory_space<vmem>>, vector<9x1x128xf32>
    %c0_93 = arith.constant 0 : index
    %c0_94 = arith.constant 0 : index
    %243 = vector.load %arg28[%c0_93, %c0_94] : memref<1x128xf32, #tpu.memory_space<vmem>>, vector<1x128xf32>
    %c0_95 = arith.constant 0 : index
    %c0_96 = arith.constant 0 : index
    %244 = vector.load %arg29[%c0_95, %c0_96] : memref<128x128xbf16, #tpu.memory_space<vmem>>, vector<128x128xbf16>
    %c0_97 = arith.constant 0 : index
    %c0_98 = arith.constant 0 : index
    %245 = vector.load %arg30[%c0_97, %c0_98] : memref<1x128xf32, #tpu.memory_space<vmem>>, vector<1x128xf32>
    %c0_99 = arith.constant 0 : index
    %c0_100 = arith.constant 0 : index
    %246 = vector.load %arg31[%c0_99, %c0_100] : memref<128x128xbf16, #tpu.memory_space<vmem>>, vector<128x128xbf16>
    %c0_101 = arith.constant 0 : index
    %c0_102 = arith.constant 0 : index
    %247 = vector.load %arg32[%c0_101, %c0_102] : memref<1x128xf32, #tpu.memory_space<vmem>>, vector<1x128xf32>
    %c0_103 = arith.constant 0 : index
    %c0_104 = arith.constant 0 : index
    %248 = vector.load %arg33[%c0_103, %c0_104] : memref<128x128xbf16, #tpu.memory_space<vmem>>, vector<128x128xbf16>
    %c0_105 = arith.constant 0 : index
    %c0_106 = arith.constant 0 : index
    %249 = vector.load %arg34[%c0_105, %c0_106] : memref<1x128xf32, #tpu.memory_space<vmem>>, vector<1x128xf32>
    %cst_107 = arith.constant dense<0.000000e+00> : vector<16x128xf32>
    %250 = tpu.matmul %238, %239, %cst_107 {dimension_numbers = #tpu.dot_dimension_numbers<[1], [0], [0], [1], [0, 0, 1, 1], [], []>} : vector<16x128xbf16>, vector<128x128xbf16>, vector<16x128xf32> -> vector<16x128xf32>
    %251 = vector.broadcast %240 : vector<1x128xf32> to vector<16x128xf32>
    %252 = arith.addf %250, %251 : vector<16x128xf32>
    %cst_108 = arith.constant 5.000000e-01 : f32
    %253 = vector.broadcast %cst_108 : f32 to vector<16x128xf32>
    %254 = arith.mulf %253, %252 : vector<16x128xf32>
    %255 = math.tanh %254 : vector<16x128xf32>
    %cst_109 = arith.constant 1.000000e+00 : f32
    %256 = vector.broadcast %cst_109 : f32 to vector<16x128xf32>
    %257 = arith.addf %255, %256 : vector<16x128xf32>
    %cst_110 = arith.constant 5.000000e-01 : f32
    %258 = vector.broadcast %cst_110 : f32 to vector<16x128xf32>
    %259 = arith.mulf %258, %257 : vector<16x128xf32>
    %260 = arith.mulf %252, %259 : vector<16x128xf32>
    %261 = arith.truncf %260 : vector<16x128xf32> to vector<16x128xbf16>
    %cst_111 = arith.constant dense<0.000000e+00> : vector<144x128xf32>
    %262 = tpu.matmul %241, %261, %cst_111 {dimension_numbers = #tpu.dot_dimension_numbers<[1], [0], [0], [1], [0, 0, 1, 1], [], []>} : vector<144x16xbf16>, vector<16x128xbf16>, vector<144x128xf32> -> vector<144x128xf32>
    %263 = vector.extract_strided_slice %262 {offsets = [0, 0], sizes = [16, 128], strides = [1, 1]} : vector<144x128xf32> to vector<16x128xf32>
    %264 = vector.extract_strided_slice %242 {offsets = [0, 0, 0], sizes = [1, 1, 128], strides = [1, 1, 1]} : vector<9x1x128xf32> to vector<1x1x128xf32>
    %265 = vector.shape_cast %264 : vector<1x1x128xf32> to vector<1x128xf32>
    %266 = vector.broadcast %265 : vector<1x128xf32> to vector<16x128xf32>
    %267 = arith.mulf %263, %266 : vector<16x128xf32>
    %268 = vector.extract_strided_slice %262 {offsets = [16, 0], sizes = [16, 128], strides = [1, 1]} : vector<144x128xf32> to vector<16x128xf32>
    %269 = vector.extract_strided_slice %242 {offsets = [1, 0, 0], sizes = [1, 1, 128], strides = [1, 1, 1]} : vector<9x1x128xf32> to vector<1x1x128xf32>
    %270 = vector.shape_cast %269 : vector<1x1x128xf32> to vector<1x128xf32>
    %271 = vector.broadcast %270 : vector<1x128xf32> to vector<16x128xf32>
    %272 = arith.mulf %268, %271 : vector<16x128xf32>
    %273 = arith.addf %267, %272 : vector<16x128xf32>
    %274 = vector.extract_strided_slice %262 {offsets = [32, 0], sizes = [16, 128], strides = [1, 1]} : vector<144x128xf32> to vector<16x128xf32>
    %275 = vector.extract_strided_slice %242 {offsets = [2, 0, 0], sizes = [1, 1, 128], strides = [1, 1, 1]} : vector<9x1x128xf32> to vector<1x1x128xf32>
    %276 = vector.shape_cast %275 : vector<1x1x128xf32> to vector<1x128xf32>
    %277 = vector.broadcast %276 : vector<1x128xf32> to vector<16x128xf32>
    %278 = arith.mulf %274, %277 : vector<16x128xf32>
    %279 = arith.addf %273, %278 : vector<16x128xf32>
    %280 = vector.extract_strided_slice %262 {offsets = [48, 0], sizes = [16, 128], strides = [1, 1]} : vector<144x128xf32> to vector<16x128xf32>
    %281 = vector.extract_strided_slice %242 {offsets = [3, 0, 0], sizes = [1, 1, 128], strides = [1, 1, 1]} : vector<9x1x128xf32> to vector<1x1x128xf32>
    %282 = vector.shape_cast %281 : vector<1x1x128xf32> to vector<1x128xf32>
    %283 = vector.broadcast %282 : vector<1x128xf32> to vector<16x128xf32>
    %284 = arith.mulf %280, %283 : vector<16x128xf32>
    %285 = arith.addf %279, %284 : vector<16x128xf32>
    %286 = vector.extract_strided_slice %262 {offsets = [64, 0], sizes = [16, 128], strides = [1, 1]} : vector<144x128xf32> to vector<16x128xf32>
    %287 = vector.extract_strided_slice %242 {offsets = [4, 0, 0], sizes = [1, 1, 128], strides = [1, 1, 1]} : vector<9x1x128xf32> to vector<1x1x128xf32>
    %288 = vector.shape_cast %287 : vector<1x1x128xf32> to vector<1x128xf32>
    %289 = vector.broadcast %288 : vector<1x128xf32> to vector<16x128xf32>
    %290 = arith.mulf %286, %289 : vector<16x128xf32>
    %291 = arith.addf %285, %290 : vector<16x128xf32>
    %292 = vector.extract_strided_slice %262 {offsets = [80, 0], sizes = [16, 128], strides = [1, 1]} : vector<144x128xf32> to vector<16x128xf32>
    %293 = vector.extract_strided_slice %242 {offsets = [5, 0, 0], sizes = [1, 1, 128], strides = [1, 1, 1]} : vector<9x1x128xf32> to vector<1x1x128xf32>
    %294 = vector.shape_cast %293 : vector<1x1x128xf32> to vector<1x128xf32>
    %295 = vector.broadcast %294 : vector<1x128xf32> to vector<16x128xf32>
    %296 = arith.mulf %292, %295 : vector<16x128xf32>
    %297 = arith.addf %291, %296 : vector<16x128xf32>
    %298 = vector.extract_strided_slice %262 {offsets = [96, 0], sizes = [16, 128], strides = [1, 1]} : vector<144x128xf32> to vector<16x128xf32>
    %299 = vector.extract_strided_slice %242 {offsets = [6, 0, 0], sizes = [1, 1, 128], strides = [1, 1, 1]} : vector<9x1x128xf32> to vector<1x1x128xf32>
    %300 = vector.shape_cast %299 : vector<1x1x128xf32> to vector<1x128xf32>
    %301 = vector.broadcast %300 : vector<1x128xf32> to vector<16x128xf32>
    %302 = arith.mulf %298, %301 : vector<16x128xf32>
    %303 = arith.addf %297, %302 : vector<16x128xf32>
    %304 = vector.extract_strided_slice %262 {offsets = [112, 0], sizes = [16, 128], strides = [1, 1]} : vector<144x128xf32> to vector<16x128xf32>
    %305 = vector.extract_strided_slice %242 {offsets = [7, 0, 0], sizes = [1, 1, 128], strides = [1, 1, 1]} : vector<9x1x128xf32> to vector<1x1x128xf32>
    %306 = vector.shape_cast %305 : vector<1x1x128xf32> to vector<1x128xf32>
    %307 = vector.broadcast %306 : vector<1x128xf32> to vector<16x128xf32>
    %308 = arith.mulf %304, %307 : vector<16x128xf32>
    %309 = arith.addf %303, %308 : vector<16x128xf32>
    %310 = vector.extract_strided_slice %262 {offsets = [128, 0], sizes = [16, 128], strides = [1, 1]} : vector<144x128xf32> to vector<16x128xf32>
    %311 = vector.extract_strided_slice %242 {offsets = [8, 0, 0], sizes = [1, 1, 128], strides = [1, 1, 1]} : vector<9x1x128xf32> to vector<1x1x128xf32>
    %312 = vector.shape_cast %311 : vector<1x1x128xf32> to vector<1x128xf32>
    %313 = vector.broadcast %312 : vector<1x128xf32> to vector<16x128xf32>
    %314 = arith.mulf %310, %313 : vector<16x128xf32>
    %315 = arith.addf %309, %314 : vector<16x128xf32>
    %316 = vector.broadcast %243 : vector<1x128xf32> to vector<16x128xf32>
    %317 = arith.addf %315, %316 : vector<16x128xf32>
    %cst_112 = arith.constant 5.000000e-01 : f32
    %318 = vector.broadcast %cst_112 : f32 to vector<16x128xf32>
    %319 = arith.mulf %318, %317 : vector<16x128xf32>
    %320 = math.tanh %319 : vector<16x128xf32>
    %cst_113 = arith.constant 1.000000e+00 : f32
    %321 = vector.broadcast %cst_113 : f32 to vector<16x128xf32>
    %322 = arith.addf %320, %321 : vector<16x128xf32>
    %cst_114 = arith.constant 5.000000e-01 : f32
    %323 = vector.broadcast %cst_114 : f32 to vector<16x128xf32>
    %324 = arith.mulf %323, %322 : vector<16x128xf32>
    %325 = arith.mulf %317, %324 : vector<16x128xf32>
    %cst_115 = arith.constant dense<0.000000e+00> : vector<128xf32>
    %326 = vector.multi_reduction <add>, %325, %cst_115 [0] : vector<16x128xf32> to vector<128xf32>
    %327 = vector.shape_cast %326 : vector<128xf32> to vector<1x128xf32>
    %cst_116 = arith.constant 1.600000e+01 : f32
    %328 = vector.broadcast %cst_116 : f32 to vector<1x128xf32>
    %329 = arith.divf %327, %328 : vector<1x128xf32>
    %330 = arith.truncf %329 : vector<1x128xf32> to vector<1x128xbf16>
    %cst_117 = arith.constant dense<0.000000e+00> : vector<1x128xf32>
    %331 = tpu.matmul %330, %244, %cst_117 {dimension_numbers = #tpu.dot_dimension_numbers<[1], [0], [0], [1], [0, 0, 1, 1], [], []>} : vector<1x128xbf16>, vector<128x128xbf16>, vector<1x128xf32> -> vector<1x128xf32>
    %332 = arith.addf %331, %245 : vector<1x128xf32>
    %cst_118 = arith.constant 5.000000e-01 : f32
    %333 = vector.broadcast %cst_118 : f32 to vector<1x128xf32>
    %334 = arith.mulf %333, %332 : vector<1x128xf32>
    %335 = math.tanh %334 : vector<1x128xf32>
    %cst_119 = arith.constant 1.000000e+00 : f32
    %336 = vector.broadcast %cst_119 : f32 to vector<1x128xf32>
    %337 = arith.addf %335, %336 : vector<1x128xf32>
    %cst_120 = arith.constant 5.000000e-01 : f32
    %338 = vector.broadcast %cst_120 : f32 to vector<1x128xf32>
    %339 = arith.mulf %338, %337 : vector<1x128xf32>
    %340 = arith.mulf %332, %339 : vector<1x128xf32>
    %341 = arith.truncf %340 : vector<1x128xf32> to vector<1x128xbf16>
    %cst_121 = arith.constant dense<0.000000e+00> : vector<1x128xf32>
    %342 = tpu.matmul %341, %246, %cst_121 {dimension_numbers = #tpu.dot_dimension_numbers<[1], [0], [0], [1], [0, 0, 1, 1], [], []>} : vector<1x128xbf16>, vector<128x128xbf16>, vector<1x128xf32> -> vector<1x128xf32>
    %343 = arith.addf %342, %247 : vector<1x128xf32>
    %cst_122 = arith.constant 5.000000e-01 : f32
    %344 = vector.broadcast %cst_122 : f32 to vector<1x128xf32>
    %345 = arith.mulf %344, %343 : vector<1x128xf32>
    %346 = math.tanh %345 : vector<1x128xf32>
    %cst_123 = arith.constant 1.000000e+00 : f32
    %347 = vector.broadcast %cst_123 : f32 to vector<1x128xf32>
    %348 = arith.addf %346, %347 : vector<1x128xf32>
    %cst_124 = arith.constant 5.000000e-01 : f32
    %349 = vector.broadcast %cst_124 : f32 to vector<1x128xf32>
    %350 = arith.mulf %349, %348 : vector<1x128xf32>
    %351 = vector.broadcast %350 : vector<1x128xf32> to vector<16x128xf32>
    %352 = arith.mulf %325, %351 : vector<16x128xf32>
    %353 = arith.truncf %352 : vector<16x128xf32> to vector<16x128xbf16>
    %cst_125 = arith.constant dense<0.000000e+00> : vector<16x128xf32>
    %354 = tpu.matmul %353, %248, %cst_125 {dimension_numbers = #tpu.dot_dimension_numbers<[1], [0], [0], [1], [0, 0, 1, 1], [], []>} : vector<16x128xbf16>, vector<128x128xbf16>, vector<16x128xf32> -> vector<16x128xf32>
    %355 = vector.broadcast %249 : vector<1x128xf32> to vector<16x128xf32>
    %356 = arith.addf %354, %355 : vector<16x128xf32>
    %357 = arith.extf %238 : vector<16x128xbf16> to vector<16x128xf32>
    %358 = arith.addf %356, %357 : vector<16x128xf32>
    %359 = arith.truncf %358 : vector<16x128xf32> to vector<16x128xbf16>
    %c0_126 = arith.constant 0 : index
    %c0_127 = arith.constant 0 : index
    %360 = vector.load %arg35[%c0_126, %c0_127] : memref<128x128xbf16, #tpu.memory_space<vmem>>, vector<128x128xbf16>
    %cst_128 = arith.constant dense<0.000000e+00> : vector<16x128xf32>
    %361 = tpu.matmul %359, %360, %cst_128 {dimension_numbers = #tpu.dot_dimension_numbers<[1], [0], [0], [1], [0, 0, 1, 1], [], []>} : vector<16x128xbf16>, vector<128x128xbf16>, vector<16x128xf32> -> vector<16x128xf32>
    %c0_129 = arith.constant 0 : index
    %c0_130 = arith.constant 0 : index
    %362 = vector.load %arg36[%c0_129, %c0_130] : memref<1x128xf32, #tpu.memory_space<vmem>>, vector<1x128xf32>
    %363 = vector.broadcast %362 : vector<1x128xf32> to vector<16x128xf32>
    %364 = arith.addf %361, %363 : vector<16x128xf32>
    %cst_131 = arith.constant 5.000000e-01 : f32
    %365 = vector.broadcast %cst_131 : f32 to vector<16x128xf32>
    %366 = arith.mulf %365, %364 : vector<16x128xf32>
    %367 = math.tanh %366 : vector<16x128xf32>
    %cst_132 = arith.constant 1.000000e+00 : f32
    %368 = vector.broadcast %cst_132 : f32 to vector<16x128xf32>
    %369 = arith.addf %367, %368 : vector<16x128xf32>
    %cst_133 = arith.constant 5.000000e-01 : f32
    %370 = vector.broadcast %cst_133 : f32 to vector<16x128xf32>
    %371 = arith.mulf %370, %369 : vector<16x128xf32>
    %372 = arith.mulf %364, %371 : vector<16x128xf32>
    %cst_134 = arith.constant dense<0.000000e+00> : vector<128xf32>
    %373 = vector.multi_reduction <add>, %372, %cst_134 [0] : vector<16x128xf32> to vector<128xf32>
    %374 = vector.shape_cast %373 : vector<128xf32> to vector<1x128xf32>
    %cst_135 = arith.constant 1.600000e+01 : f32
    %375 = vector.broadcast %cst_135 : f32 to vector<1x128xf32>
    %376 = arith.divf %374, %375 : vector<1x128xf32>
    %377 = arith.truncf %376 : vector<1x128xf32> to vector<1x128xbf16>
    %c0_136 = arith.constant 0 : index
    %c0_137 = arith.constant 0 : index
    %378 = vector.load %arg37[%c0_136, %c0_137] : memref<128x128xbf16, #tpu.memory_space<vmem>>, vector<128x128xbf16>
    %cst_138 = arith.constant dense<0.000000e+00> : vector<1x128xf32>
    %379 = tpu.matmul %377, %378, %cst_138 {dimension_numbers = #tpu.dot_dimension_numbers<[1], [0], [0], [1], [0, 0, 1, 1], [], []>} : vector<1x128xbf16>, vector<128x128xbf16>, vector<1x128xf32> -> vector<1x128xf32>
    %c0_139 = arith.constant 0 : index
    %c0_140 = arith.constant 0 : index
    %380 = vector.load %arg38[%c0_139, %c0_140] : memref<1x128xf32, #tpu.memory_space<vmem>>, vector<1x128xf32>
    %381 = arith.addf %379, %380 : vector<1x128xf32>
    %382 = vector.shape_cast %381 : vector<1x128xf32> to vector<1x128xf32>
    %383 = vector.broadcast %382 : vector<1x128xf32> to vector<8x128xf32>
    %c0_141 = arith.constant 0 : index
    %c0_142 = arith.constant 0 : index
    %384 = vector.load %arg39[%c0_141, %c0_142] : memref<8x128xf32, #tpu.memory_space<vmem>>, vector<8x128xf32>
    tpu.vector_store %arg39[%c0_141, %c0_142], %383 {strides = array<i32>} : memref<8x128xf32, #tpu.memory_space<vmem>>, vector<8x128xf32>,
    return
  }
  func.func @transform_0(%arg0: i32) -> (i32, i32) {
    %c0_i32 = arith.constant 0 : i32
    %c0_i32_0 = arith.constant 0 : i32
    return %arg0, %c0_i32 : i32, i32
  }
  func.func @transform_1(%arg0: i32) -> (i32, i32) {
    %c0_i32 = arith.constant 0 : i32
    %c0_i32_0 = arith.constant 0 : i32
    %c0_i32_1 = arith.constant 0 : i32
    return %c0_i32, %c0_i32_0 : i32, i32
  }
  func.func @transform_2(%arg0: i32) -> (i32, i32) {
    %c0_i32 = arith.constant 0 : i32
    %c0_i32_0 = arith.constant 0 : i32
    %c0_i32_1 = arith.constant 0 : i32
    return %c0_i32, %c0_i32_0 : i32, i32
  }
  func.func @transform_3(%arg0: i32) -> (i32, i32) {
    %c0_i32 = arith.constant 0 : i32
    %c0_i32_0 = arith.constant 0 : i32
    %c0_i32_1 = arith.constant 0 : i32
    return %c0_i32, %c0_i32_0 : i32, i32
  }
  func.func @transform_4(%arg0: i32) -> (i32, i32, i32) {
    %c0_i32 = arith.constant 0 : i32
    %c0_i32_0 = arith.constant 0 : i32
    %c0_i32_1 = arith.constant 0 : i32
    %c0_i32_2 = arith.constant 0 : i32
    return %c0_i32, %c0_i32_0, %c0_i32_1 : i32, i32, i32
  }
  func.func @transform_5(%arg0: i32) -> (i32, i32) {
    %c0_i32 = arith.constant 0 : i32
    %c0_i32_0 = arith.constant 0 : i32
    %c0_i32_1 = arith.constant 0 : i32
    return %c0_i32, %c0_i32_0 : i32, i32
  }
  func.func @transform_6(%arg0: i32) -> (i32, i32) {
    %c0_i32 = arith.constant 0 : i32
    %c0_i32_0 = arith.constant 0 : i32
    %c0_i32_1 = arith.constant 0 : i32
    return %c0_i32, %c0_i32_0 : i32, i32
  }
  func.func @transform_7(%arg0: i32) -> (i32, i32) {
    %c0_i32 = arith.constant 0 : i32
    %c0_i32_0 = arith.constant 0 : i32
    %c0_i32_1 = arith.constant 0 : i32
    return %c0_i32, %c0_i32_0 : i32, i32
  }
  func.func @transform_8(%arg0: i32) -> (i32, i32) {
    %c0_i32 = arith.constant 0 : i32
    %c0_i32_0 = arith.constant 0 : i32
    %c0_i32_1 = arith.constant 0 : i32
    return %c0_i32, %c0_i32_0 : i32, i32
  }
  func.func @transform_9(%arg0: i32) -> (i32, i32) {
    %c0_i32 = arith.constant 0 : i32
    %c0_i32_0 = arith.constant 0 : i32
    %c0_i32_1 = arith.constant 0 : i32
    return %c0_i32, %c0_i32_0 : i32, i32
  }
  func.func @transform_10(%arg0: i32) -> (i32, i32) {
    %c0_i32 = arith.constant 0 : i32
    %c0_i32_0 = arith.constant 0 : i32
    %c0_i32_1 = arith.constant 0 : i32
    return %c0_i32, %c0_i32_0 : i32, i32
  }
  func.func @transform_11(%arg0: i32) -> (i32, i32) {
    %c0_i32 = arith.constant 0 : i32
    %c0_i32_0 = arith.constant 0 : i32
    %c0_i32_1 = arith.constant 0 : i32
    return %c0_i32, %c0_i32_0 : i32, i32
  }
  func.func @transform_12(%arg0: i32) -> (i32, i32) {
    %c0_i32 = arith.constant 0 : i32
    %c0_i32_0 = arith.constant 0 : i32
    %c0_i32_1 = arith.constant 0 : i32
    return %c0_i32, %c0_i32_0 : i32, i32
  }
  func.func @transform_13(%arg0: i32) -> (i32, i32) {
    %c0_i32 = arith.constant 0 : i32
    %c0_i32_0 = arith.constant 0 : i32
    %c0_i32_1 = arith.constant 0 : i32
    return %c0_i32, %c0_i32_0 : i32, i32
  }
  func.func @transform_14(%arg0: i32) -> (i32, i32) {
    %c0_i32 = arith.constant 0 : i32
    %c0_i32_0 = arith.constant 0 : i32
    %c0_i32_1 = arith.constant 0 : i32
    return %c0_i32, %c0_i32_0 : i32, i32
  }
  func.func @transform_15(%arg0: i32) -> (i32, i32, i32) {
    %c0_i32 = arith.constant 0 : i32
    %c0_i32_0 = arith.constant 0 : i32
    %c0_i32_1 = arith.constant 0 : i32
    %c0_i32_2 = arith.constant 0 : i32
    return %c0_i32, %c0_i32_0, %c0_i32_1 : i32, i32, i32
  }
  func.func @transform_16(%arg0: i32) -> (i32, i32) {
    %c0_i32 = arith.constant 0 : i32
    %c0_i32_0 = arith.constant 0 : i32
    %c0_i32_1 = arith.constant 0 : i32
    return %c0_i32, %c0_i32_0 : i32, i32
  }
  func.func @transform_17(%arg0: i32) -> (i32, i32) {
    %c0_i32 = arith.constant 0 : i32
    %c0_i32_0 = arith.constant 0 : i32
    %c0_i32_1 = arith.constant 0 : i32
    return %c0_i32, %c0_i32_0 : i32, i32
  }
  func.func @transform_18(%arg0: i32) -> (i32, i32) {
    %c0_i32 = arith.constant 0 : i32
    %c0_i32_0 = arith.constant 0 : i32
    %c0_i32_1 = arith.constant 0 : i32
    return %c0_i32, %c0_i32_0 : i32, i32
  }
  func.func @transform_19(%arg0: i32) -> (i32, i32) {
    %c0_i32 = arith.constant 0 : i32
    %c0_i32_0 = arith.constant 0 : i32
    %c0_i32_1 = arith.constant 0 : i32
    return %c0_i32, %c0_i32_0 : i32, i32
  }
  func.func @transform_20(%arg0: i32) -> (i32, i32) {
    %c0_i32 = arith.constant 0 : i32
    %c0_i32_0 = arith.constant 0 : i32
    %c0_i32_1 = arith.constant 0 : i32
    return %c0_i32, %c0_i32_0 : i32, i32
  }
  func.func @transform_21(%arg0: i32) -> (i32, i32) {
    %c0_i32 = arith.constant 0 : i32
    %c0_i32_0 = arith.constant 0 : i32
    %c0_i32_1 = arith.constant 0 : i32
    return %c0_i32, %c0_i32_0 : i32, i32
  }
  func.func @transform_22(%arg0: i32) -> (i32, i32) {
    %c0_i32 = arith.constant 0 : i32
    %c0_i32_0 = arith.constant 0 : i32
    %c0_i32_1 = arith.constant 0 : i32
    return %c0_i32, %c0_i32_0 : i32, i32
  }
  func.func @transform_23(%arg0: i32) -> (i32, i32) {
    %c0_i32 = arith.constant 0 : i32
    %c0_i32_0 = arith.constant 0 : i32
    %c0_i32_1 = arith.constant 0 : i32
    return %c0_i32, %c0_i32_0 : i32, i32
  }
  func.func @transform_24(%arg0: i32) -> (i32, i32) {
    %c0_i32 = arith.constant 0 : i32
    %c0_i32_0 = arith.constant 0 : i32
    %c0_i32_1 = arith.constant 0 : i32
    return %c0_i32, %c0_i32_0 : i32, i32
  }
  func.func @transform_25(%arg0: i32) -> (i32, i32) {
    %c0_i32 = arith.constant 0 : i32
    %c0_i32_0 = arith.constant 0 : i32
    %c0_i32_1 = arith.constant 0 : i32
    return %c0_i32, %c0_i32_0 : i32, i32
  }
  func.func @transform_26(%arg0: i32) -> (i32, i32, i32) {
    %c0_i32 = arith.constant 0 : i32
    %c0_i32_0 = arith.constant 0 : i32
    %c0_i32_1 = arith.constant 0 : i32
    %c0_i32_2 = arith.constant 0 : i32
    return %c0_i32, %c0_i32_0, %c0_i32_1 : i32, i32, i32
  }
  func.func @transform_27(%arg0: i32) -> (i32, i32) {
    %c0_i32 = arith.constant 0 : i32
    %c0_i32_0 = arith.constant 0 : i32
    %c0_i32_1 = arith.constant 0 : i32
    return %c0_i32, %c0_i32_0 : i32, i32
  }
  func.func @transform_28(%arg0: i32) -> (i32, i32) {
    %c0_i32 = arith.constant 0 : i32
    %c0_i32_0 = arith.constant 0 : i32
    %c0_i32_1 = arith.constant 0 : i32
    return %c0_i32, %c0_i32_0 : i32, i32
  }
  func.func @transform_29(%arg0: i32) -> (i32, i32) {
    %c0_i32 = arith.constant 0 : i32
    %c0_i32_0 = arith.constant 0 : i32
    %c0_i32_1 = arith.constant 0 : i32
    return %c0_i32, %c0_i32_0 : i32, i32
  }
  func.func @transform_30(%arg0: i32) -> (i32, i32) {
    %c0_i32 = arith.constant 0 : i32
    %c0_i32_0 = arith.constant 0 : i32
    %c0_i32_1 = arith.constant 0 : i32
    return %c0_i32, %c0_i32_0 : i32, i32
  }
  func.func @transform_31(%arg0: i32) -> (i32, i32) {
    %c0_i32 = arith.constant 0 : i32
    %c0_i32_0 = arith.constant 0 : i32
    %c0_i32_1 = arith.constant 0 : i32
    return %c0_i32, %c0_i32_0 : i32, i32
  }
  func.func @transform_32(%arg0: i32) -> (i32, i32) {
    %c0_i32 = arith.constant 0 : i32
    %c0_i32_0 = arith.constant 0 : i32
    %c0_i32_1 = arith.constant 0 : i32
    return %c0_i32, %c0_i32_0 : i32, i32
  }
  func.func @transform_33(%arg0: i32) -> (i32, i32) {
    %c0_i32 = arith.constant 0 : i32
    %c0_i32_0 = arith.constant 0 : i32
    %c0_i32_1 = arith.constant 0 : i32
    return %c0_i32, %c0_i32_0 : i32, i32
  }
  func.func @transform_34(%arg0: i32) -> (i32, i32) {
    %c0_i32 = arith.constant 0 : i32
    %c0_i32_0 = arith.constant 0 : i32
    %c0_i32_1 = arith.constant 0 : i32
    return %c0_i32, %c0_i32_0 : i32, i32
  }
  func.func @transform_35(%arg0: i32) -> (i32, i32) {
    %c0_i32 = arith.constant 0 : i32
    %c0_i32_0 = arith.constant 0 : i32
    %c0_i32_1 = arith.constant 0 : i32
    return %c0_i32, %c0_i32_0 : i32, i32
  }
  func.func @transform_36(%arg0: i32) -> (i32, i32) {
    %c0_i32 = arith.constant 0 : i32
    %c0_i32_0 = arith.constant 0 : i32
    %c0_i32_1 = arith.constant 0 : i32
    return %c0_i32, %c0_i32_0 : i32, i32
  }
  func.func @transform_37(%arg0: i32) -> (i32, i32) {
    %c0_i32 = arith.constant 0 : i32
    %c0_i32_0 = arith.constant 0 : i32
    %c0_i32_1 = arith.constant 0 : i32
    return %c0_i32, %c0_i32_0 : i32, i32
  }
  func.func @transform_38(%arg0: i32) -> (i32, i32) {
    %c0_i32 = arith.constant 0 : i32
    %c0_i32_0 = arith.constant 0 : i32
    return %arg0, %c0_i32 : i32, i32
  }
}

</mosaic_0001>

<bundles_post_ra>
// kernel: _lambda_.1
= control target key start
LH: loop header
LB: loop body
LE: loop exit
PB: predicated region body
PF: predicated region fallthrough
CT: control target
= control target key end

     0   :  { %s4944_s6 = smov 1   ;;  %s4945_s10 = smov 2   ;;  %s5661_s0 = inlined_call_operand.smem [shape: u32[39], index: -1, kind: input, shape index: {}] }
   0x1   :  { %s4992_s5 = sld [smem:[%s5661_s0]]   ;;  %s4946_s14 = smov 3  }
   0x2   :  { %s4997_s9 = sld [smem:[%s5661_s0 + %s4944_s6]]   ;;  %s4947_s18 = smov 4  }
   0x3   :  { %s5002_s13 = sld [smem:[%s5661_s0 + %s4945_s10]]   ;;  %s4948_s22 = smov 5  }
   0x4   :  { %s5007_s17 = sld [smem:[%s5661_s0 + %s4946_s14]]   ;;  %s4949_s26 = smov 6  }
   0x5   :  { %s5012_s21 = sld [smem:[%s5661_s0 + %s4947_s18]]   ;;  %s4950_s30 = smov 7  }
   0x6   :  { %s5017_s25 = sld [smem:[%s5661_s0 + %s4948_s22]]   ;;  %s4951_s4 = smov 8  }
   0x7   :  { %s5022_s29 = sld [smem:[%s5661_s0 + %s4949_s26]]   ;;  %s4952_s10 = smov 9  }
   0x8   :  { %s5027_s3 = sld [smem:[%s5661_s0 + %s4950_s30]]   ;;  %s4953_s15 = smov 10  }
   0x9   :  { %s5032_s8 = sld [smem:[%s5661_s0 + %s4951_s4]]   ;;  %s4954_s20 = smov 11  }
   0xa   :  { %s5037_s14 = sld [smem:[%s5661_s0 + %s4952_s10]]   ;;  %s4955_s26 = smov 12  }
   0xb   :  { %s5042_s19 = sld [smem:[%s5661_s0 + %s4953_s15]]   ;;  %s4956_s1 = smov 13  }
   0xc   :  { %s5047_s24 = sld [smem:[%s5661_s0 + %s4954_s20]]   ;;  %s4957_s7 = smov 14  }
   0xd   :  { %s5052_s30 = sld [smem:[%s5661_s0 + %s4955_s26]]   ;;  %s4958_s15 = smov 15  }
   0xe   :  { %s5057_s6 = sld [smem:[%s5661_s0 + %s4956_s1]]   ;;  %s4959_s22 = smov 16  }
   0xf   :  { %s5062_s12 = sld [smem:[%s5661_s0 + %s4957_s7]]   ;;  %s4960_s28 = smov 17  }
  0x10   :  { %s5067_s20 = sld [smem:[%s5661_s0 + %s4958_s15]]   ;;  %s4961_s7 = smov 18  }
  0x11   :  { %s5072_s27 = sld [smem:[%s5661_s0 + %s4959_s22]]   ;;  %s4962_s15 = smov 19  }
  0x12   :  { %s5077_s4 = sld [smem:[%s5661_s0 + %s4960_s28]]   ;;  %s4963_s22 = smov 20  }
  0x13   :  { %s4964_s28 = smov 21  }
  0x15   :  { %5677 = sst [smem:[#allocation2_spill]] %s5062_s12 }
  0x16   :  { %5678 = sst [smem:[#allocation3_spill]] %s5067_s20 }
  0x17   :  { %5679 = sst [smem:[#allocation4_spill]] %s5072_s27 }
  0x18   :  { %5680 = sst [smem:[#allocation5_spill]] %s5077_s4 }
  0x19   :  { %s5082_s12 = sld [smem:[%s5661_s0 + %s4961_s7]]   ;;  %s4965_s7 = smov 22  }
  0x1a   :  { %s5087_s20 = sld [smem:[%s5661_s0 + %s4962_s15]]   ;;  %s4966_s15 = smov 23  }
  0x1b   :  { %s5092_s27 = sld [smem:[%s5661_s0 + %s4963_s22]]   ;;  %s4967_s22 = smov 24  }
  0x1c   :  { %s5097_s4 = sld [smem:[%s5661_s0 + %s4964_s28]]   ;;  %s4968_s28 = smov 25  }
  0x1f   :  { %5681 = sst [smem:[#allocation6_spill]] %s5082_s12 }
  0x20   :  { %5682 = sst [smem:[#allocation7_spill]] %s5087_s20 }
  0x21   :  { %5683 = sst [smem:[#allocation8_spill]] %s5092_s27 }
  0x22   :  { %5684 = sst [smem:[#allocation9_spill]] %s5097_s4 }
  0x23   :  { %s5102_s12 = sld [smem:[%s5661_s0 + %s4965_s7]]   ;;  %s4969_s7 = smov 26  }
  0x24   :  { %s5107_s20 = sld [smem:[%s5661_s0 + %s4966_s15]]   ;;  %s4970_s15 = smov 27  }
  0x25   :  { %s5112_s27 = sld [smem:[%s5661_s0 + %s4967_s22]]   ;;  %s4971_s22 = smov 28  }
  0x26   :  { %s5117_s4 = sld [smem:[%s5661_s0 + %s4968_s28]]   ;;  %s4972_s28 = smov 29  }
  0x29   :  { %5685 = sst [smem:[#allocation10_spill]] %s5102_s12 }
  0x2a   :  { %5686 = sst [smem:[#allocation11_spill]] %s5107_s20 }
  0x2b   :  { %5687 = sst [smem:[#allocation12_spill]] %s5112_s27 }
  0x2c   :  { %5688 = sst [smem:[#allocation13_spill]] %s5117_s4 }
  0x2d   :  { %s5122_s12 = sld [smem:[%s5661_s0 + %s4969_s7]]   ;;  %s4973_s7 = smov 30  }
  0x2e   :  { %s5127_s20 = sld [smem:[%s5661_s0 + %s4970_s15]]   ;;  %s4974_s15 = smov 31  }
  0x2f   :  { %s5132_s27 = sld [smem:[%s5661_s0 + %s4971_s22]]   ;;  %s4975_s22 = smov 32  }
  0x30   :  { %s5137_s4 = sld [smem:[%s5661_s0 + %s4972_s28]]   ;;  %s4976_s28 = smov 33  }
  0x33   :  { %5689 = sst [smem:[#allocation14_spill]] %s5122_s12 }
  0x34   :  { %5690 = sst [smem:[#allocation15_spill]] %s5127_s20 }
  0x35   :  { %5691 = sst [smem:[#allocation16_spill]] %s5132_s27 }
  0x36   :  { %5692 = sst [smem:[#allocation17_spill]] %s5137_s4 }
  0x37   :  { %s5142_s12 = sld [smem:[%s5661_s0 + %s4973_s7]]   ;;  %s4977_s7 = smov 34  }
  0x38   :  { %s5147_s20 = sld [smem:[%s5661_s0 + %s4974_s15]]   ;;  %s4978_s15 = smov 35  }
  0x39   :  { %s5152_s27 = sld [smem:[%s5661_s0 + %s4975_s22]]   ;;  %s4979_s22 = smov 36  }
  0x3a   :  { %s5157_s4 = sld [smem:[%s5661_s0 + %s4976_s28]]   ;;  %s4980_s28 = smov 37  }
  0x3d   :  { %5693 = sst [smem:[#allocation18_spill]] %s5142_s12 }
  0x3e   :  { %5694 = sst [smem:[#allocation19_spill]] %s5147_s20 }
  0x3f   :  { %5695 = sst [smem:[#allocation20_spill]] %s5152_s27 }
  0x40   :  { %5696 = sst [smem:[#allocation21_spill]] %s5157_s4 }
  0x41   :  { %s5162_s12 = sld [smem:[%s5661_s0 + %s4977_s7]]   ;;  %s4981_s7 = smov 38  }
  0x42   :  { %s5167_s20 = sld [smem:[%s5661_s0 + %s4978_s15]]   ;;  %s5184_s15 = smov 0  }
  0x43   :  { %s5172_s27 = sld [smem:[%s5661_s0 + %s4979_s22]]  }
  0x44   :  { %s5177_s4 = sld [smem:[%s5661_s0 + %s4980_s28]]  }
  0x47   :  { %5697 = sst [smem:[#allocation22_spill]] %s5162_s12 }
  0x48   :  { %s5182_s12 = sld [smem:[%s5661_s0 + %s4981_s7]]  }
  0x49 LB: > { %s5190_s16 = sadd.s32 4294967295, %s4942_s15   ;;  %p3879_p0 = scmp.ge.s32.totalorder %s4942_s15, 1  ;;  %s4942_s15 = sphi %s5184_s15, %s87_s15  }
  0x4a   : > { %p1052_p1 = scmp.lt.s32.totalorder %s4942_s15, 3 }
  0x4c   : > { %p1053_p2 = pnand %p3879_p0, %p1052_p1 }
  0x4d   : > { %s3880_s0 = sshll.u32 (!%p1053_p2), %s5190_s16, 3  ;;  %s5698_s23 = sld [smem:[#allocation2_spill]] (!%p1053_p2) }
  0x4e   : > { %1056 = sbr.rel (%p1053_p2) target bundleno = 3465 (0xd89), region = 172  ;;  %p1146_p3 = scmp.lt.s32.totalorder (!%p1053_p2), %s3880_s0, 15 }
  0x4f   : > { %s5699_s26 = sld [smem:[#allocation3_spill]] (!%p1053_p2)  ;;  %p1151_p4 = scmp.lt.s32.totalorder (!%p1053_p2), %s5190_s16, 1 }
  0x50   : > { %s5700_s28 = sld [smem:[#allocation5_spill]] (!%p1053_p2) }
  0x51   : > { %s5701_s1 = sld [smem:[#allocation4_spill]] (!%p1053_p2) }
  0x52   : > { %s5702_s2 = sld [smem:[#allocation7_spill]] (!%p1053_p2) }
  0x53   : > { %v4604_v0 = vld [vmem:[%s4997_s9 + $0x8] sm:$0xff]  ;;  %v4603_v1 = vld [vmem:[%s4997_s9] sm:$0xff]  ;;  %s5720_s0 = smov (!%p1146_p3, %s3880_s0), 15  ;;  %vm1204_vm0 = vcmask 261120   ;;  %vm1603_vm1 = vcmask 523264   ;;  %s5703_s7 = sld [smem:[#allocation9_spill]] }
  0x54   : > { %1223 = vmatpush.bf16.msra.mxu0 %v4604_v0  ;;  %s3881_s18 = sshll.u32 %s5720_s0, 2  ;;  %v4819_v12 = vld [vmem:[%s5002_s13] ss:$0 sm:$0xff]  ;;  %s5704_s10 = sld [smem:[#allocation6_spill]]  ;;  %vm3230_vm4 = vcmask 130048  }
  0x55   : > { %s1149_s22 = scalar_lea.vmem %s4992_s5, %s3881_s18  ;;  %s5705_s11 = sld [smem:[#allocation11_spill]] }
  0x56   : > { %v4599_v2 = vld [vmem:[%s1149_s22] sm:$0xff]  ;;  %v4600_v3 = vld [vmem:[%s1149_s22 + $0x8] sm:$0xff]  ;;  %v4601_v4 = vld [vmem:[%s1149_s22 + $0x10] sm:$0xff]  ;;  %s5706_s0 = sld [smem:[#allocation8_spill]]  ;;  %s5722_s16 = smov (!%p1151_p4, %s5190_s16), 1 }
  0x57   : > { %v4602_v5 = vld [vmem:[%s1149_s22 + $0x18] sm:$0xff]  ;;  %s5707_s18 = sld [smem:[#allocation10_spill]] }
  0x58   : > { %1224 = vmatpush.bf16.msra.mxu0 %v4603_v1  ;;  %s5708_s22 = sld [smem:[#allocation12_spill]] }
  0x5b   : > { %3907 = vmatmul.msk.bf16.vlgmr.msra.gmra.mxu0 %vm1204_vm0, %v4599_v2 }
  0x6b   : > { %3908 = vmatmul.msk.bf16.gmra.mxu0 %vm1204_vm0, %v4600_v3  ;;  %v4605_v3 = vld [vmem:[%s5007_s17] sm:$0xff] }
  0x7b   : > { %3909 = vmatmul.msk.bf16.gmra.mxu0 %vm1204_vm0, %v4601_v4  ;;  %v4611_v4 = vld [vmem:[%s5007_s17 + $0x30] sm:$0xff] }
  0x8b   : > { %3910 = vmatmul.msk.bf16.gmra.mxu0 %vm1204_vm0, %v4602_v5  ;;  %v4606_v5 = vld [vmem:[%s5007_s17 + $0x8] sm:$0xff] }
  0xd8   : > { %v1226_v6 = vpop.f32.mrf.mxu0 }
  0xd9   : > { %v1227_v26 = vadd.f32 %v4819_v12, %v1226_v6  ;;  %v4612_v6 = vld [vmem:[%s5007_s17 + $0x38] sm:$0xff] }
  0xdb   : > { %v1246_v32 = vmul.f32 0.5, %v1227_v26 }
  0xe0   : > { %v1228_v7 = vpop.f32.mrf.mxu0 }
  0xe1   : > { %v1229_v24 = vadd.f32 %v4819_v12, %v1228_v7  ;;  %v4607_v7 = vld [vmem:[%s5007_s17 + $0x10] sm:$0xff] }
  0xe3   : > { %v1247_v30 = vmul.f32 0.5, %v1229_v24 }
  0xe8   : > { %v1231_v8 = vpop.f32.mrf.mxu0 }
  0xe9   : > { %v1232_v20 = vadd.f32 %v4819_v12, %v1231_v8  ;;  %v4613_v8 = vld [vmem:[%s5007_s17 + $0x40] sm:$0xff] }
  0xeb   : > { %v1248_v27 = vmul.f32 0.5, %v1232_v20 }
  0xf0   : > { %v1233_v9 = vpop.f32.mrf.mxu0 }
  0xf1   : > { %v1234_v18 = vadd.f32 %v4819_v12, %v1233_v9  ;;  %v4608_v9 = vld [vmem:[%s5007_s17 + $0x18] sm:$0xff] }
  0xf3   : > { %v1249_v22 = vmul.f32 0.5, %v1234_v18 }
  0xf8   : > { %v1236_v10 = vpop.f32.mrf.mxu0 }
  0xf9   : > { %v1237_v16 = vadd.f32 %v4819_v12, %v1236_v10  ;;  %v4614_v10 = vld [vmem:[%s5007_s17 + $0x48] sm:$0xff] }
  0xfb   : > { %v1250_v21 = vmul.f32 0.5, %v1237_v16 }
 0x100   : > { %v1238_v11 = vpop.f32.mrf.mxu0 }
 0x101   : > { %v1239_v14 = vadd.f32 %v4819_v12, %v1238_v11  ;;  %v4609_v11 = vld [vmem:[%s5007_s17 + $0x20] sm:$0xff] }
 0x103   : > { %v1251_v19 = vmul.f32 0.5, %v1239_v14 }
 0x108   : > { %v1241_v13 = vpop.f32.mrf.mxu0 }
 0x109   : > { %v1242_v15 = vadd.f32 %v4819_v12, %v1241_v13  ;;  %v4610_v13 = vld [vmem:[%s5007_s17 + $0x28] sm:$0xff] }
 0x10b   : > { %v1252_v17 = vmul.f32 0.5, %v1242_v15 }
 0x10d   : > { %4856 = vtanh.f32 %v1252_v17  ;;  %v4619_v17 = vld [vmem:[%s5007_s17 + $0x70] sm:$0xff] }
 0x10e   : > { %4858 = vtanh.f32 %v1251_v19 }
 0x10f   : > { %4860 = vtanh.f32 %v1250_v21 }
 0x110   : > { %v1243_v23 = vpop.f32.mrf.mxu0  ;;  %4862 = vtanh.f32 %v1249_v22  ;;  %v4620_v22 = vld [vmem:[%s5007_s17 + $0x78] sm:$0xff] }
 0x111   : > { %v1244_v25 = vadd.f32 %v4819_v12, %v1243_v23  ;;  %v4615_v12 = vld [vmem:[%s5007_s17 + $0x50] sm:$0xff] }
 0x113   : > { %v1253_v28 = vmul.f32 0.5, %v1244_v25  ;;  %v4857_v29 = vpop.eup %4856 }
 0x114   : > { %v4859_v31 = vpop.eup %4858  ;;  %v1268_v33 = vadd.f32 1.0, %v4857_v29 }
 0x115   : > { %4864 = vtanh.f32 %v1253_v28  ;;  %v4861_v34 = vpop.eup %4860  ;;  %v1267_v36 = vadd.f32 1.0, %v4859_v31 }
 0x116   : > { %4866 = vtanh.f32 %v1248_v27  ;;  %v4863_v35 = vpop.eup %4862  ;;  %v1266_v38 = vadd.f32 1.0, %v4861_v34  ;;  %v1276_v39 = vmul.f32 0.5, %v1268_v33  ;;  %v4621_v27 = vld [vmem:[%s5007_s17 + $0x80] sm:$0xff] }
 0x117   : > { %4868 = vtanh.f32 %v1247_v30  ;;  %v1265_v42 = vadd.f32 1.0, %v4863_v35  ;;  %v1275_v43 = vmul.f32 0.5, %v1267_v36 }
 0x118   : > { %4870 = vtanh.f32 %v1246_v32  ;;  %v1274_v47 = vmul.f32 0.5, %v1266_v38  ;;  %v1284_v48 = vmul.f32 %v1276_v39, %v1242_v15  ;;  %v4617_v15 = vld [vmem:[%s5007_s17 + $0x60] sm:$0xff]  ;;  %v4622_v32 = vld [vmem:[%s5007_s17 + $0x88] sm:$0xff] }
 0x119   : > { %v1273_v52 = vmul.f32 0.5, %v1265_v42  ;;  %v1283_v53 = vmul.f32 %v1275_v43, %v1239_v14  ;;  %v4616_v14 = vld [vmem:[%s5007_s17 + $0x58] sm:$0xff]  ;;  %v5245_v38 = vld [vmem:[%s5012_s21] ss:$0 sm:$0xff]  ;;  %v5249_v39 = vld [vmem:[%s5012_s21 + $0x1] ss:$0 sm:$0xff] }
 0x11a   : > { %v1282_v57 = vmul.f32 %v1274_v47, %v1237_v16  ;;  %v4618_v16 = vld [vmem:[%s5007_s17 + $0x68] sm:$0xff]  ;;  %v5255_v43 = vld [vmem:[%s5012_s21 + $0x2] ss:$0 sm:$0xff] }
 0x11b   : > { %v4865_v37 = vpop.eup %4864  ;;  %v1281_v59 = vmul.f32 %v1273_v52, %v1234_v18 }
 0x11c   : > { %v1269_v40 = vadd.f32 1.0, %v4865_v37  ;;  %v4867_v41 = vpop.eup %4866  ;;  %v1288_v60 = vpack.c.bf16 %v1283_v53, %v1282_v57  ;;  %v4633_v37 = vld [vmem:[%s5007_s17 + $0xe0] sm:$0xff] }
 0x11d   : > { %v4869_v45 = vpop.eup %4868  ;;  %v1264_v46 = vadd.f32 1.0, %v4867_v41 }
 0x11e   : > { %v1277_v44 = vmul.f32 0.5, %v1269_v40  ;;  %v4871_v50 = vpop.eup %4870  ;;  %v1263_v51 = vadd.f32 1.0, %v4869_v45 }
 0x11f   : > { %v1262_v55 = vadd.f32 1.0, %v4871_v50  ;;  %v1272_v56 = vmul.f32 0.5, %v1264_v46 }
 0x120   : > { %v1285_v49 = vmul.f32 %v1277_v44, %v1244_v25  ;;  %v1271_v58 = vmul.f32 0.5, %v1263_v51  ;;  %v4623_v44 = vld [vmem:[%s5007_s17 + $0x90] sm:$0xff] }
 0x121   : > { %v1270_v61 = vmul.f32 0.5, %v1262_v55  ;;  %v1280_v62 = vmul.f32 %v1272_v56, %v1232_v20 }
 0x122   : > { %v1289_v54 = vpack.c.bf16 %v1285_v49, %v1284_v48  ;;  %v1279_v63 = vmul.f32 %v1271_v58, %v1229_v24  ;;  %v4634_v58 = vld [vmem:[%s5007_s17 + $0xe8] sm:$0xff] }
 0x123   : > { %v1287_v0 = vpack.c.bf16 %v1281_v59, %v1280_v62  ;;  %v1278_v1 = vmul.f32 %v1270_v61, %v1227_v26 }
 0x124   : > { %1716 = vmatpush.bf16.msrb.mxu0 %v1289_v54  ;;  %4763 = vmatpush.bf16.msra.mxu1 %v1289_v54 }
 0x125   : > { %4764 = vmatpush.bf16.msra.mxu3 %v1289_v54  ;;  %v1286_v2 = vpack.c.bf16 %v1279_v63, %v1278_v1  ;;  %v4624_v1 = vld [vmem:[%s5007_s17 + $0x98] sm:$0xff] }
 0x128   : > { %1717 = vmatpush.bf16.msrb.mxu0 %v1288_v60  ;;  %4765 = vmatpush.bf16.msra.mxu1 %v1288_v60 }
 0x129   : > { %4766 = vmatpush.bf16.msra.mxu3 %v1288_v60 }
 0x12c   : > { %1718 = vmatpush.bf16.msrb.mxu0 %v1287_v0  ;;  %4767 = vmatpush.bf16.msra.mxu1 %v1287_v0 }
 0x12d   : > { %4768 = vmatpush.bf16.msra.mxu3 %v1287_v0 }
 0x130   : > { %1719 = vmatpush.bf16.msrb.mxu0 %v1286_v2  ;;  %4769 = vmatpush.bf16.msra.mxu1 %v1286_v2 }
 0x131   : > { %4770 = vmatpush.bf16.msra.mxu3 %v1286_v2 }
 0x133   : > { %4055 = vmatmul.msk.bf16.vlgmr.msrb.gmra.mxu0 %vm1603_vm1, %v4605_v3  ;;  %4061 = vmatmul.msk.bf16.vlgmr.msra.gmra.mxu1 %vm1603_vm1, %v4611_v4 }
 0x134   : > { %4083 = vmatmul.msk.bf16.vlgmr.msra.gmra.mxu3 %vm1603_vm1, %v4633_v37 }
 0x143   : > { %4056 = vmatmul.msk.bf16.gmra.mxu0 %vm1603_vm1, %v4606_v5  ;;  %4062 = vmatmul.msk.bf16.gmra.mxu1 %vm1603_vm1, %v4612_v6 }
 0x144   : > { %4084 = vmatmul.msk.bf16.gmra.mxu3 %vm1603_vm1, %v4634_v58 }
 0x153   : > { %4057 = vmatmul.msk.bf16.gmra.mxu0 %vm1603_vm1, %v4607_v7  ;;  %4063 = vmatmul.msk.bf16.gmra.mxu1 %vm1603_vm1, %v4613_v8 }
 0x163   : > { %4058 = vmatmul.msk.bf16.gmra.mxu0 %vm1603_vm1, %v4608_v9  ;;  %4064 = vmatmul.msk.bf16.gmra.mxu1 %vm1603_vm1, %v4614_v10 }
 0x173   : > { %4059 = vmatmul.msk.bf16.gmra.mxu0 %vm1603_vm1, %v4609_v11  ;;  %4065 = vmatmul.msk.bf16.gmra.mxu1 %vm1603_vm1, %v4615_v12 }
 0x183   : > { %4060 = vmatmul.msk.bf16.gmra.mxu0 %vm1603_vm1, %v4610_v13  ;;  %4066 = vmatmul.msk.bf16.gmra.mxu1 %vm1603_vm1, %v4616_v14  ;;  %v4635_v14 = vld [vmem:[%s5007_s17 + $0xf0] sm:$0xff] }
 0x184   : > { %4085 = vmatmul.msk.bf16.gmra.mxu3 %vm1603_vm1, %v4635_v14  ;;  %v4631_v14 = vld [vmem:[%s5007_s17 + $0xd0] sm:$0xff] }
 0x193   : > { %4067 = vmatmul.msk.bf16.gmra.mxu1 %vm1603_vm1, %v4617_v15 }
 0x1a3   : > { %4068 = vmatmul.msk.bf16.gmra.mxu1 %vm1603_vm1, %v4618_v16 }
 0x1b0   : > { %v1721_v18 = vpop.f32.mrf.mxu0  ;;  %v1751_v19 = vpop.f32.mrf.mxu1 }
 0x1b1   : > { %v1904_v41 = vmul.f32 %v5245_v38, %v1721_v18  ;;  %v1919_v42 = vmul.f32 %v5249_v39, %v1751_v19  ;;  %v4823_v18 = vld [vmem:[%s5012_s21 + $0x3] ss:$0 sm:$0xff] }
 0x1b2   : > { %v4625_v19 = vld [vmem:[%s5007_s17 + $0xa0] sm:$0xff] }
 0x1b3   : > { %4069 = vmatmul.msk.bf16.gmra.mxu1 %vm1603_vm1, %v4619_v17 }
 0x1b8   : > { %v5229_v20 = vpop.f32.mrf.mxu0  ;;  %v1753_v21 = vpop.f32.mrf.mxu1 }
 0x1b9   : > { %v1920_v55 = vmul.f32 %v5249_v39, %v1753_v21 }
 0x1c0   : > { %v1726_v23 = vpop.f32.mrf.mxu0  ;;  %v1756_v24 = vpop.f32.mrf.mxu1 }
 0x1c1   : > { %v1906_v63 = vmul.f32 %v5245_v38, %v1726_v23  ;;  %v1921_v0 = vmul.f32 %v5249_v39, %v1756_v24 }
 0x1c3   : > { %4070 = vmatmul.msk.bf16.gmra.mxu1 %vm1603_vm1, %v4620_v22  ;;  %v1905_v22 = vmul.f32 %v5245_v38, %v5229_v20  ;;  %v4626_v20 = vld [vmem:[%s5007_s17 + $0xa8] sm:$0xff] }
 0x1c8   : > { %v5233_v25 = vpop.f32.mrf.mxu0  ;;  %v1758_v26 = vpop.f32.mrf.mxu1 }
 0x1c9   : > { %v1922_v12 = vmul.f32 %v5249_v39, %v1758_v26 }
 0x1d0   : > { %v1731_v28 = vpop.f32.mrf.mxu0  ;;  %v1761_v29 = vpop.f32.mrf.mxu1 }
 0x1d1   : > { %v1908_v40 = vmul.f32 %v5245_v38, %v1731_v28  ;;  %v1934_v50 = vmul.f32 %v5255_v43, %v1761_v29 }
 0x1d3   : > { %4071 = vmatmul.msk.bf16.gmra.mxu1 %vm1603_vm1, %v4621_v27  ;;  %v1927_v47 = vadd.f32 %v1919_v42, %v1908_v40  ;;  %v1907_v40 = vmul.f32 %v5245_v38, %v5233_v25  ;;  %v4627_v25 = vld [vmem:[%s5007_s17 + $0xb0] sm:$0xff] }
 0x1d8   : > { %v1733_v30 = vpop.f32.mrf.mxu0  ;;  %v5237_v31 = vpop.f32.mrf.mxu1 }
 0x1d9   : > { %v1909_v53 = vmul.f32 %v5245_v38, %v1733_v30  ;;  %v1935_v28 = vmul.f32 %v5255_v43, %v5237_v31  ;;  %v4636_v30 = vld [vmem:[%s5007_s17 + $0xf8] sm:$0xff] }
 0x1da   : > { %4086 = vmatmul.msk.bf16.gmra.mxu3 %vm1603_vm1, %v4636_v30 }
 0x1db   : > { %v1928_v59 = vadd.f32 %v1920_v55, %v1909_v53  ;;  %v4628_v55 = vld [vmem:[%s5007_s17 + $0xb8] sm:$0xff] }
 0x1e0   : > { %v1736_v33 = vpop.f32.mrf.mxu0  ;;  %v1766_v34 = vpop.f32.mrf.mxu1 }
 0x1e1   : > { %v1910_v62 = vmul.f32 %v5245_v38, %v1736_v33  ;;  %v1936_v7 = vmul.f32 %v5255_v43, %v1766_v34 }
 0x1e3   : > { %4072 = vmatmul.msk.bf16.gmra.mxu1 %vm1603_vm1, %v4622_v32  ;;  %v1929_v4 = vadd.f32 %v1921_v0, %v1910_v62  ;;  %v4629_v0 = vld [vmem:[%s5007_s17 + $0xc0] sm:$0xff] }
 0x1e8   : > { %v1738_v35 = vpop.f32.mrf.mxu0  ;;  %v5241_v36 = vpop.f32.mrf.mxu1 }
 0x1e9   : > { %v1911_v10 = vmul.f32 %v5245_v38, %v1738_v35 }
 0x1eb   : > { %v1930_v15 = vadd.f32 %v1922_v12, %v1911_v10 }
 0x1f0   : > { %v1741_v45 = vpop.f32.mrf.mxu0  ;;  %v1771_v46 = vpop.f32.mrf.mxu1 }
 0x1f1   : > { %v1915_v48 = vmul.f32 %v5249_v39, %v1741_v45  ;;  %v1938_v49 = vmul.f32 %v5255_v43, %v1771_v46  ;;  %v1937_v45 = vmul.f32 %v5255_v43, %v5241_v36  ;;  %v4638_v36 = vld [vmem:[%s5007_s17 + $0x108] sm:$0xff] }
 0x1f3   : > { %v1923_v51 = vadd.f32 %v1915_v48, %v1904_v41  ;;  %v5261_v52 = vadd.f32 %v1938_v49, %v1927_v47  ;;  %4073 = vmatmul.msk.bf16.gmra.mxu1 %vm1603_vm1, %v4623_v44  ;;  %v4637_v47 = vld [vmem:[%s5007_s17 + $0x100] sm:$0xff] }
 0x1f4   : > { %4087 = vmatmul.msk.bf16.gmra.mxu3 %vm1603_vm1, %v4637_v47 }
 0x1f5   : > { %v1942_v54 = vadd.f32 %v1934_v50, %v1923_v51 }
 0x1f8   : > { %v1743_v56 = vpop.f32.mrf.mxu0  ;;  %v1773_v57 = vpop.f32.mrf.mxu1 }
 0x1f9   : > { %v1939_v60 = vmul.f32 %v5255_v43, %v1773_v57  ;;  %v1916_v23 = vmul.f32 %v5249_v39, %v1743_v56 }
 0x1fb   : > { %v5269_v61 = vadd.f32 %v1939_v60, %v1928_v59  ;;  %v1924_v27 = vadd.f32 %v1916_v23, %v1905_v22 }
 0x1fd   : > { %v1943_v32 = vadd.f32 %v1935_v28, %v1924_v27 }
 0x200   : > { %v1746_v2 = vpop.f32.mrf.mxu0  ;;  %v1776_v3 = vpop.f32.mrf.mxu1 }
 0x201   : > { %v1917_v5 = vmul.f32 %v5249_v39, %v1746_v2  ;;  %v1940_v6 = vmul.f32 %v5255_v43, %v1776_v3 }
 0x203   : > { %v1925_v8 = vadd.f32 %v1917_v5, %v1906_v63  ;;  %v1948_v9 = vadd.f32 %v1940_v6, %v1929_v4  ;;  %4074 = vmatmul.msk.bf16.gmra.mxu1 %vm1603_vm1, %v4624_v1  ;;  %v4824_v63 = vld [vmem:[%s5012_s21 + $0x4] ss:$0 sm:$0xff]  ;;  %v4640_v4 = vld [vmem:[%s5007_s17 + $0x118] sm:$0xff] }
 0x204   : > { %4088 = vmatmul.msk.bf16.gmra.mxu3 %vm1603_vm1, %v4638_v36 }
 0x205   : > { %v1944_v11 = vadd.f32 %v1936_v7, %v1925_v8  ;;  %v4630_v7 = vld [vmem:[%s5007_s17 + $0xc8] sm:$0xff] }
 0x208   : > { %v1778_v13 = vpop.f32.mrf.mxu1  ;;  %v1748_v35 = vpop.f32.mrf.mxu0 }
 0x209   : > { %v1941_v16 = vmul.f32 %v5255_v43, %v1778_v13  ;;  %v1918_v41 = vmul.f32 %v5249_v39, %v1748_v35 }
 0x20b   : > { %v1949_v17 = vadd.f32 %v1941_v16, %v1930_v15  ;;  %v1926_v31 = vadd.f32 %v1918_v41, %v1907_v40 }
 0x20d   : > { %v1945_v48 = vadd.f32 %v1937_v45, %v1926_v31 }
 0x210   : > { %v1781_v21 = vpop.f32.mrf.mxu1 }
 0x211   : > { %v1953_v24 = vmul.f32 %v4823_v18, %v1781_v21 }
 0x213   : > { %v1961_v26 = vadd.f32 %v1953_v24, %v1942_v54  ;;  %4075 = vmatmul.msk.bf16.gmra.mxu1 %vm1603_vm1, %v4625_v19  ;;  %v4632_v24 = vld [vmem:[%s5007_s17 + $0xd8] sm:$0xff] }
 0x218   : > { %v1783_v29 = vpop.f32.mrf.mxu1 }
 0x219   : > { %v1954_v33 = vmul.f32 %v4823_v18, %v1783_v29 }
 0x21b   : > { %v1962_v34 = vadd.f32 %v1954_v33, %v1943_v32 }
 0x220   : > { %v1786_v37 = vpop.f32.mrf.mxu1 }
 0x221   : > { %v1955_v42 = vmul.f32 %v4823_v18, %v1786_v37 }
 0x223   : > { %v1963_v44 = vadd.f32 %v1955_v42, %v1944_v11  ;;  %4076 = vmatmul.msk.bf16.gmra.mxu1 %vm1603_vm1, %v4626_v20 }
 0x228   : > { %v1788_v46 = vpop.f32.mrf.mxu1 }
 0x229   : > { %v1956_v49 = vmul.f32 %v4823_v18, %v1788_v46 }
 0x22b   : > { %v1964_v50 = vadd.f32 %v1956_v49, %v1945_v48 }
 0x230   : > { %v1791_v38 = vpop.f32.mrf.mxu1 }
 0x231   : > { %v1957_v39 = vmul.f32 %v4823_v18, %v1791_v38 }
 0x233   : > { %v1965_v51 = vadd.f32 %v1957_v39, %v5261_v52  ;;  %4077 = vmatmul.msk.bf16.gmra.mxu1 %vm1603_vm1, %v4627_v25  ;;  %v4639_v52 = vld [vmem:[%s5007_s17 + $0x110] sm:$0xff] }
 0x234   : > { %4089 = vmatmul.msk.bf16.gmra.mxu3 %vm1603_vm1, %v4639_v52 }
 0x238   : > { %v1793_v53 = vpop.f32.mrf.mxu1 }
 0x239   : > { %v1958_v43 = vmul.f32 %v4823_v18, %v1793_v53 }
 0x23b   : > { %v1966_v54 = vadd.f32 %v1958_v43, %v5269_v61 }
 0x240   : > { %v1796_v56 = vpop.f32.mrf.mxu1 }
 0x241   : > { %v1959_v57 = vmul.f32 %v4823_v18, %v1796_v56 }
 0x243   : > { %v1967_v58 = vadd.f32 %v1959_v57, %v1948_v9  ;;  %4078 = vmatmul.msk.bf16.gmra.mxu1 %vm1603_vm1, %v4628_v55 }
 0x244   : > { %4090 = vmatmul.msk.bf16.gmra.mxu3 %vm1603_vm1, %v4640_v4 }
 0x248   : > { %v1798_v59 = vpop.f32.mrf.mxu1 }
 0x249   : > { %v1960_v60 = vmul.f32 %v4823_v18, %v1798_v59  ;;  %v1861_v18 = vpop.f32.mrf.mxu3 }
 0x24b   : > { %v1968_v62 = vadd.f32 %v1960_v60, %v1949_v17  ;;  %v5347_v60 = vld [vmem:[%s5012_s21 + $0x6] ss:$0 sm:$0xff] }
 0x250   : > { %v1801_v1 = vpop.f32.mrf.mxu1 }
 0x251   : > { %v1972_v2 = vmul.f32 %v4824_v63, %v1801_v1  ;;  %v1863_v23 = vpop.f32.mrf.mxu3 }
 0x253   : > { %v1980_v61 = vadd.f32 %v1972_v2, %v1961_v26  ;;  %4079 = vmatmul.msk.bf16.gmra.mxu1 %vm1603_vm1, %v4629_v0 }
 0x258   : > { %v1803_v3 = vpop.f32.mrf.mxu1 }
 0x259   : > { %v1973_v5 = vmul.f32 %v4824_v63, %v1803_v3  ;;  %v1866_v30 = vpop.f32.mrf.mxu3 }
 0x25b   : > { %v1981_v6 = vadd.f32 %v1973_v5, %v1962_v34  ;;  %v5327_v34 = vld [vmem:[%s5012_s21 + $0x5] ss:$0 sm:$0xff] }
 0x260   : > { %v1806_v8 = vpop.f32.mrf.mxu1 }
 0x261   : > { %v1974_v9 = vmul.f32 %v4824_v63, %v1806_v8  ;;  %v1868_v37 = vpop.f32.mrf.mxu3 }
 0x263   : > { %v1982_v10 = vadd.f32 %v1974_v9, %v1963_v44  ;;  %4080 = vmatmul.msk.bf16.gmra.mxu1 %vm1603_vm1, %v4630_v7 }
 0x268   : > { %v1808_v11 = vpop.f32.mrf.mxu1 }
 0x269   : > { %v1975_v12 = vmul.f32 %v4824_v63, %v1808_v11  ;;  %v1871_v31 = vpop.f32.mrf.mxu3 }
 0x26b   : > { %v1983_v13 = vadd.f32 %v1975_v12, %v1964_v50 }
 0x270   : > { %v1811_v15 = vpop.f32.mrf.mxu1 }
 0x271   : > { %v1976_v16 = vmul.f32 %v4824_v63, %v1811_v15  ;;  %v5332_v48 = vpop.f32.mrf.mxu3 }
 0x273   : > { %v1984_v17 = vadd.f32 %v1976_v16, %v1965_v51  ;;  %4081 = vmatmul.msk.bf16.gmra.mxu1 %vm1603_vm1, %v4631_v14 }
 0x278   : > { %v1813_v19 = vpop.f32.mrf.mxu1 }
 0x279   : > { %v1977_v21 = vmul.f32 %v4824_v63, %v1813_v19  ;;  %v5335_v39 = vpop.f32.mrf.mxu3 }
 0x27b   : > { %v1985_v22 = vadd.f32 %v1977_v21, %v1966_v54 }
 0x280   : > { %v1816_v26 = vpop.f32.mrf.mxu1 }
 0x281   : > { %v1978_v27 = vmul.f32 %v4824_v63, %v1816_v26  ;;  %v5339_v54 = vpop.f32.mrf.mxu3 }
 0x283   : > { %v1986_v28 = vadd.f32 %v1978_v27, %v1967_v58  ;;  %4082 = vmatmul.msk.bf16.gmra.mxu1 %vm1603_vm1, %v4632_v24 }
 0x288   : > { %v1818_v29 = vpop.f32.mrf.mxu1 }
 0x289   : > { %v1979_v32 = vmul.f32 %v4824_v63, %v1818_v29  ;;  %v1881_v59 = vpop.f32.mrf.mxu3  ;;  %v5350_v63 = vld [vmem:[%s5012_s21 + $0x7] ss:$0 sm:$0xff] }
 0x28a   : > { %v2029_v2 = vmul.f32 %v5350_v63, %v1861_v18  ;;  %v2031_v9 = vmul.f32 %v5350_v63, %v1866_v30  ;;  %v2030_v18 = vmul.f32 %v5350_v63, %v1863_v23  ;;  %v2032_v26 = vmul.f32 %v5350_v63, %v1868_v37 }
 0x28b   : > { %v5324_v33 = vadd.f32 %v1979_v32, %v1968_v62 }
 0x290   : > { %v1821_v35 = vpop.f32.mrf.mxu1 }
 0x291   : > { %v1991_v20 = vmul.f32 %v5327_v34, %v1821_v35  ;;  %v1883_v62 = vpop.f32.mrf.mxu3  ;;  %v4648_v35 = vld [vmem:[%s5022_s29 + $0x38] sm:$0xff] }
 0x292   : > { %2185 = vmatpush.bf16.msra.mxu2 %v4648_v35 }
 0x293   : > { %v1999_v40 = vadd.f32 %v1991_v20, %v1980_v61 }
 0x298   : > { %v1823_v41 = vpop.f32.mrf.mxu1 }
 0x299   : > { %v1992_v42 = vmul.f32 %v5327_v34, %v1823_v41  ;;  %v1886_v5 = vpop.f32.mrf.mxu3 }
 0x29b   : > { %v2000_v44 = vadd.f32 %v1992_v42, %v1981_v6  ;;  %v5370_v42 = vld [vmem:[%s5017_s25] ss:$0 sm:$0xff] }
 0x2a0   : > { %v1826_v45 = vpop.f32.mrf.mxu1 }
 0x2a1   : > { %v1993_v46 = vmul.f32 %v5327_v34, %v1826_v45  ;;  %v1888_v8 = vpop.f32.mrf.mxu3 }
 0x2a3   : > { %v2001_v47 = vadd.f32 %v1993_v46, %v1982_v10 }
 0x2a8   : > { %v1828_v49 = vpop.f32.mrf.mxu1 }
 0x2a9   : > { %v1994_v50 = vmul.f32 %v5327_v34, %v1828_v49 }
 0x2ab   : > { %v2002_v25 = vadd.f32 %v1994_v50, %v1983_v13 }
 0x2b0   : > { %v1831_v38 = vpop.f32.mrf.mxu1 }
 0x2b1   : > { %v1995_v51 = vmul.f32 %v5327_v34, %v1831_v38 }
 0x2b3   : > { %v2003_v53 = vadd.f32 %v1995_v51, %v1984_v17  ;;  %v5359_v17 = vld [vmem:[%s5012_s21 + $0x8] ss:$0 sm:$0xff]  ;;  %v2034_v51 = vmul.f32 %v5350_v63, %v5332_v48 }
 0x2b4   : > { %v2048_v27 = vmul.f32 %v5359_v17, %v1881_v59  ;;  %v2049_v29 = vmul.f32 %v5359_v17, %v1883_v62  ;;  %v2050_v30 = vmul.f32 %v5359_v17, %v1886_v5  ;;  %v2051_v45 = vmul.f32 %v5359_v17, %v1888_v8 }
 0x2b5   : > { %v2035_v8 = vmul.f32 %v5350_v63, %v5335_v39  ;;  %v4643_v39 = vld [vmem:[%s5022_s29 + $0x10] sm:$0xff] }
 0x2b7   : > { %v1891_v14 = vpop.f32.mrf.mxu3 }
 0x2b8   : > { %v1833_v36 = vpop.f32.mrf.mxu1 }
 0x2b9   : > { %v1996_v43 = vmul.f32 %v5327_v34, %v1833_v36 }
 0x2bb   : > { %v2004_v55 = vadd.f32 %v1996_v43, %v1985_v22 }
 0x2c0   : > { %v1836_v56 = vpop.f32.mrf.mxu1 }
 0x2c1   : > { %v1997_v57 = vmul.f32 %v5327_v34, %v1836_v56  ;;  %v4646_v56 = vld [vmem:[%s5022_s29 + $0x28] sm:$0xff] }
 0x2c3   : > { %v5342_v58 = vadd.f32 %v1997_v57, %v1986_v28  ;;  %v2033_v28 = vmul.f32 %v5350_v63, %v1871_v31  ;;  %v2052_v31 = vmul.f32 %v5359_v17, %v1891_v14 }
 0x2c8   : > { %v5344_v52 = vpop.f32.mrf.mxu1 }
 0x2d0   : > { %v1841_v0 = vpop.f32.mrf.mxu1 }
 0x2d1   : > { %v2010_v1 = vmul.f32 %v5347_v60, %v1841_v0 }
 0x2d3   : > { %v2018_v61 = vadd.f32 %v2010_v1, %v1999_v40 }
 0x2d5   : > { %v2037_v3 = vadd.f32 %v2029_v2, %v2018_v61 }
 0x2d7   : > { %v2056_v41 = vadd.f32 %v2048_v27, %v2037_v3  ;;  %v4642_v27 = vld [vmem:[%s5022_s29 + $0x8] sm:$0xff] }
 0x2d8   : > { %v1843_v4 = vpop.f32.mrf.mxu1 }
 0x2d9   : > { %v2011_v13 = vmul.f32 %v5347_v60, %v1843_v4  ;;  %v5380_v38 = vadd.f32 %v5370_v42, %v2056_v41  ;;  %v4645_v4 = vld [vmem:[%s5022_s29 + $0x20] sm:$0xff] }
 0x2db   : > { %v2019_v15 = vadd.f32 %v2011_v13, %v2000_v44  ;;  %v1893_v44 = vpop.f32.mrf.mxu3  ;;  %v2075_v1 = vmul.f32 0.5, %v5380_v38  ;;  %v1998_v13 = vmul.f32 %v5327_v34, %v5344_v52 }
 0x2dc   : > { %v2053_v62 = vmul.f32 %v5359_v17, %v1893_v44  ;;  %v4641_v44 = vld [vmem:[%s5022_s29] sm:$0xff] }
 0x2dd   : > { %v2038_v21 = vadd.f32 %v2030_v18, %v2019_v15 }
 0x2df   : > { %v2057_v23 = vadd.f32 %v2049_v29, %v2038_v21  ;;  %v2036_v29 = vmul.f32 %v5350_v63, %v5339_v54 }
 0x2e0   : > { %v1846_v6 = vpop.f32.mrf.mxu1 }
 0x2e1   : > { %v2012_v7 = vmul.f32 %v5347_v60, %v1846_v6  ;;  %v5376_v49 = vadd.f32 %v5370_v42, %v2057_v23 }
 0x2e3   : > { %v2020_v10 = vadd.f32 %v2012_v7, %v2001_v47  ;;  %v4647_v47 = vld [vmem:[%s5022_s29 + $0x30] sm:$0xff]  ;;  %v2076_v57 = vmul.f32 0.5, %v5376_v49 }
 0x2e4   : > { %2186 = vmatpush.bf16.msra.mxu2 %v4647_v47 }
 0x2e5   : > { %v2039_v11 = vadd.f32 %v2031_v9, %v2020_v10  ;;  %4872 = vtanh.f32 %v2076_v57  ;;  %v4644_v9 = vld [vmem:[%s5022_s29 + $0x18] sm:$0xff] }
 0x2e6   : > { %4874 = vtanh.f32 %v2075_v1 }
 0x2e7   : > { %v2058_v37 = vadd.f32 %v2050_v30, %v2039_v11 }
 0x2e8   : > { %v1848_v12 = vpop.f32.mrf.mxu1  ;;  %2187 = vmatpush.bf16.msra.mxu2 %v4646_v56 }
 0x2e9   : > { %v2013_v16 = vmul.f32 %v5347_v60, %v1848_v12 }
 0x2eb   : > { %v2021_v22 = vadd.f32 %v2013_v16, %v2002_v25  ;;  %v4873_v16 = vpop.eup %4872 }
 0x2ec   : > { %2188 = vmatpush.bf16.msra.mxu2 %v4645_v4  ;;  %v2092_v52 = vadd.f32 1.0, %v4873_v16 }
 0x2ed   : > { %v2040_v20 = vadd.f32 %v2032_v26, %v2021_v22 }
 0x2ee   : > { %v2100_v41 = vmul.f32 0.5, %v2092_v52 }
 0x2ef   : > { %v2059_v50 = vadd.f32 %v2051_v45, %v2040_v20 }
 0x2f0   : > { %v1851_v19 = vpop.f32.mrf.mxu1  ;;  %2189 = vmatpush.bf16.msra.mxu2 %v4644_v9  ;;  %v5424_v63 = vmul.f32 %v2100_v41, %v5376_v49 }
 0x2f1   : > { %v2014_v24 = vmul.f32 %v5347_v60, %v1851_v19  ;;  %v5390_v59 = vadd.f32 %v5370_v42, %v2059_v50  ;;  %v4875_v19 = vpop.eup %4874 }
 0x2f2   : > { %v2091_v30 = vadd.f32 1.0, %v4875_v19 }
 0x2f3   : > { %v2022_v32 = vadd.f32 %v2014_v24, %v2003_v53  ;;  %v5385_v53 = vadd.f32 %v5370_v42, %v2058_v37  ;;  %v2078_v5 = vmul.f32 0.5, %v5390_v59  ;;  %v2006_v24 = vadd.f32 %v1998_v13, %v5324_v33 }
 0x2f4   : > { %2190 = vmatpush.bf16.msra.mxu2 %v4643_v39  ;;  %v2099_v45 = vmul.f32 0.5, %v2091_v30  ;;  %v4649_v30 = vld [vmem:[%s5032_s8] sm:$0xff] }
 0x2f5   : > { %v2041_v40 = vadd.f32 %v2033_v28, %v2022_v32  ;;  %v2077_v48 = vmul.f32 0.5, %v5385_v53 }
 0x2f7   : > { %v2060_v36 = vadd.f32 %v2052_v31, %v2041_v40  ;;  %4876 = vtanh.f32 %v2077_v48 }
 0x2f8   : > { %v1853_v46 = vpop.f32.mrf.mxu1  ;;  %4878 = vtanh.f32 %v2078_v5  ;;  %2191 = vmatpush.bf16.msra.mxu2 %v4642_v27  ;;  %v4654_v5 = vld [vmem:[%s5032_s8 + $0x28] sm:$0xff]  ;;  %v4652_v27 = vld [vmem:[%s5032_s8 + $0x18] sm:$0xff] }
 0x2f9   : > { %v2015_v25 = vmul.f32 %v5347_v60, %v1853_v46  ;;  %v5396_v2 = vadd.f32 %v5370_v42, %v2060_v36 }
 0x2fb   : > { %v2023_v43 = vadd.f32 %v2015_v25, %v2004_v55  ;;  %v1896_v55 = vpop.f32.mrf.mxu3  ;;  %v2079_v10 = vmul.f32 0.5, %v5396_v2 }
 0x2fc   : > { %v2054_v11 = vmul.f32 %v5359_v17, %v1896_v55  ;;  %2192 = vmatpush.bf16.msra.mxu2 %v4641_v44 }
 0x2fd   : > { %v2042_v0 = vadd.f32 %v2034_v51, %v2023_v43  ;;  %4880 = vtanh.f32 %v2079_v10  ;;  %v4877_v22 = vpop.eup %4876  ;;  %v5427_v51 = vmul.f32 %v2099_v45, %v5380_v38  ;;  %v4655_v38 = vld [vmem:[%s5032_s8 + $0x30] sm:$0xff] }
 0x2fe   : > { %v4879_v28 = vpop.eup %4878  ;;  %v2093_v23 = vadd.f32 1.0, %v4877_v22 }
 0x2ff   : > { %v2061_v61 = vadd.f32 %v2053_v62, %v2042_v0  ;;  %v4982_v62 = vmov 64.0   ;;  %v2115_v49 = vadd.f32 %v5424_v63, %v5427_v51 }
 0x300   : > { %v1856_v3 = vpop.f32.mrf.mxu1  ;;  %v2101_v46 = vmul.f32 0.5, %v2093_v23  ;;  %v4662_v23 = vld [vmem:[%s5042_s19 + $0x28] sm:$0xff] }
 0x301   : > { %v5401_v6 = vadd.f32 %v5370_v42, %v2061_v61  ;;  %v2016_v7 = vmul.f32 %v5347_v60, %v1856_v3 }
 0x302   : > { %v5430_v43 = vmul.f32 %v2101_v46, %v5385_v53 }
 0x303   : > { %v2024_v12 = vadd.f32 %v2016_v7, %v5342_v58  ;;  %v2080_v14 = vmul.f32 0.5, %v5401_v6  ;;  %v1898_v26 = vpop.f32.mrf.mxu3  ;;  %v4881_v20 = vpop.eup %4880 }
 0x304   : > { %v2055_v33 = vmul.f32 %v5359_v17, %v1898_v26  ;;  %v2095_v47 = vadd.f32 1.0, %v4881_v20  ;;  %v2116_v48 = vadd.f32 %v2115_v49, %v5430_v43  ;;  %v4653_v26 = vld [vmem:[%s5032_s8 + $0x20] sm:$0xff] }
 0x305   : > { %v2043_v15 = vadd.f32 %v2035_v8, %v2024_v12  ;;  %4882 = vtanh.f32 %v2080_v14  ;;  %v1388_v20 = vld [vmem:[%s5027_s3] sm:$0x1] }
 0x306   : > { %v2103_v56 = vmul.f32 0.5, %v2095_v47  ;;  %v4661_v47 = vld [vmem:[%s5042_s19 + $0x20] sm:$0xff] }
 0x307   : > { %v2062_v18 = vadd.f32 %v2054_v11, %v2043_v15 }
 0x308   : > { %v1858_v21 = vpop.f32.mrf.mxu1  ;;  %v5441_v53 = vmul.f32 %v2103_v56, %v5396_v2 }
 0x309   : > { %v2073_v58 = vadd.f32 %v5370_v42, %v2062_v18  ;;  %v2017_v34 = vmul.f32 %v5347_v60, %v1858_v21  ;;  %v2094_v60 = vadd.f32 1.0, %v4879_v28  ;;  %v4651_v28 = vld [vmem:[%s5032_s8 + $0x10] sm:$0xff] }
 0x30b   : > { %v2081_v32 = vmul.f32 0.5, %v2073_v58  ;;  %v2025_v35 = vadd.f32 %v2017_v34, %v2006_v24  ;;  %v4883_v37 = vpop.eup %4882  ;;  %v2102_v50 = vmul.f32 0.5, %v2094_v60 }
 0x30c   : > { %v2096_v25 = vadd.f32 1.0, %v4883_v37 }
 0x30d   : > { %4884 = vtanh.f32 %v2081_v32  ;;  %v2044_v40 = vadd.f32 %v2036_v29, %v2025_v35  ;;  %v5436_v0 = vmul.f32 %v2102_v50, %v5390_v59  ;;  %v4650_v29 = vld [vmem:[%s5032_s8 + $0x8] sm:$0xff]  ;;  %v4664_v32 = vld [vmem:[%s5042_s19 + $0x38] sm:$0xff]  ;;  %v4663_v35 = vld [vmem:[%s5042_s19 + $0x30] sm:$0xff] }
 0x30e   : > { %4886 = vrcp.f32 %v4982_v62  ;;  %v2104_v1 = vmul.f32 0.5, %v2096_v25  ;;  %v4659_v50 = vld [vmem:[%s5042_s19 + $0x10] sm:$0xff]  ;;  %v4658_v25 = vld [vmem:[%s5042_s19 + $0x8] sm:$0xff] }
 0x30f   : > { %v2063_v31 = vadd.f32 %v2055_v33, %v2044_v40  ;;  %v2117_v3 = vadd.f32 %v2116_v48, %v5436_v0 }
 0x310   : > { %v5445_v4 = vmul.f32 %v2104_v1, %v5401_v6 }
 0x311   : > { %v2074_v54 = vadd.f32 %v5370_v42, %v2063_v31  ;;  %v4656_v42 = vld [vmem:[%s5032_s8 + $0x38] sm:$0xff]  ;;  %v2118_v59 = vadd.f32 %v2117_v3, %v5441_v53 }
 0x312   : > { %2252 = vmatpush.bf16.msrb.mxu2 %v4656_v42 }
 0x313   : > { %v4885_v17 = vpop.eup %4884  ;;  %v2082_v36 = vmul.f32 0.5, %v2074_v54  ;;  %v2119_v11 = vadd.f32 %v2118_v59, %v5445_v4 }
 0x314   : > { %v2097_v57 = vadd.f32 1.0, %v4885_v17  ;;  %v4887_v55 = vpop.eup %4886  ;;  %v4657_v17 = vld [vmem:[%s5042_s19] sm:$0xff] }
 0x315   : > { %4888 = vtanh.f32 %v2082_v36  ;;  %v2129_v10 = vmul.f32 64.0, %v4887_v55  ;;  %vm2133_vm2 = vweird.f32 %v4887_v55  ;;  %v1405_v36 = vld [vmem:[%s5037_s14] sm:$0x1] }
 0x316   : > { %v2105_v61 = vmul.f32 0.5, %v2097_v57  ;;  %2253 = vmatpush.bf16.msrb.mxu2 %v4655_v38 }
 0x317   : > { %v2130_v6 = vsub.f32 1.0, %v2129_v10  ;;  %v4671_v10 = vld [vmem:[%s5052_s30 + $0x30] sm:$0xff] }
 0x318   : > { %v5449_v8 = vmul.f32 %v2105_v61, %v2073_v58 }
 0x319   : > { %v2131_v39 = vmul.f32 %v4887_v55, %v2130_v6 }
 0x31a   : > { %2254 = vmatpush.bf16.msrb.mxu2 %v4654_v5  ;;  %v2120_v13 = vadd.f32 %v2119_v11, %v5449_v8  ;;  %v4670_v11 = vld [vmem:[%s5052_s30 + $0x28] sm:$0xff] }
 0x31b   : > { %v4889_v7 = vpop.eup %4888  ;;  %v2132_v19 = vadd.f32 %v4887_v55, %v2131_v39 }
 0x31c   : > { %v2098_v9 = vadd.f32 1.0, %v4889_v7 }
 0x31d   : > { %v2134_v24 = vsel %vm2133_vm2, %v4887_v55, %v2132_v19 }
 0x31e   : > { %v2106_v2 = vmul.f32 0.5, %v2098_v9  ;;  %2255 = vmatpush.bf16.msrb.mxu2 %v4653_v26  ;;  %v4672_v9 = vld [vmem:[%s5052_s30 + $0x38] sm:$0xff] }
 0x31f   : > { %2513 = vmatpush.bf16.msrb.mxu3 %v4672_v9 }
 0x320   : > { %v5452_v12 = vmul.f32 %v2106_v2, %v2074_v54  ;;  %v4660_v54 = vld [vmem:[%s5042_s19 + $0x18] sm:$0xff]  ;;  %v4669_v2 = vld [vmem:[%s5052_s30 + $0x20] sm:$0xff] }
 0x322   : > { %v2121_v14 = vadd.f32 %v2120_v13, %v5452_v12  ;;  %2256 = vmatpush.bf16.msrb.mxu2 %v4652_v27 }
 0x323   : > { %2514 = vmatpush.bf16.msrb.mxu3 %v4671_v10 }
 0x324   : > { %v2122_v15 = vrot.slane %v2121_v14, 4 }
 0x326   : > { %v2123_v16 = vadd.f32 %v2122_v15, %v2121_v14  ;;  %2257 = vmatpush.bf16.msrb.mxu2 %v4651_v28  ;;  %v4667_v15 = vld [vmem:[%s5052_s30 + $0x10] sm:$0xff] }
 0x327   : > { %2515 = vmatpush.bf16.msrb.mxu3 %v4670_v11 }
 0x328   : > { %v2124_v18 = vrot.slane %v2123_v16, 2 }
 0x32a   : > { %v2125_v21 = vadd.f32 %v2124_v18, %v2123_v16  ;;  %2258 = vmatpush.bf16.msrb.mxu2 %v4650_v29  ;;  %v4830_v16 = vld [vmem:[%s5047_s24] ss:$0 sm:$0xff] }
 0x32b   : > { %2516 = vmatpush.bf16.msrb.mxu3 %v4669_v2 }
 0x32c   : > { %v2126_v22 = vrot.slane %v2125_v21, 1 }
 0x32e   : > { %v2127_v58 = vadd.f32 %v2126_v22, %v2125_v21  ;;  %2259 = vmatpush.bf16.msrb.mxu2 %v4649_v30 }
 0x330   : > { %v2135_v34 = vmul.f32 %v2134_v24, %v2127_v58 }
 0x332   : > { %v2136_v52 = vpack.c.bf16 %v2135_v34, %v2135_v34 }
 0x334   : > { %2193 = vmatmul.bf16.vlgmr.msra.gmra.mxu2 %v2136_v52 }
 0x335   : > { %2333 = vmatpush.bf16.msra.mxu2 %v4664_v32 }
 0x339   : > { %2334 = vmatpush.bf16.msra.mxu2 %v4663_v35 }
 0x33d   : > { %2335 = vmatpush.bf16.msra.mxu2 %v4662_v23 }
 0x341   : > { %2336 = vmatpush.bf16.msra.mxu2 %v4661_v47 }
 0x345   : > { %2337 = vmatpush.bf16.msra.mxu2 %v4660_v54 }
 0x349   : > { %2338 = vmatpush.bf16.msra.mxu2 %v4659_v50 }
 0x34d   : > { %2339 = vmatpush.bf16.msra.mxu2 %v4658_v25 }
 0x351   : > { %2340 = vmatpush.bf16.msra.mxu2 %v4657_v17 }
 0x3b7   : > { %v2194_v33 = vpop.f32.mrf.mxu2 }
 0x3b8   : > { %v2195_v40 = vadd.f32 %v2194_v33, %v1388_v20 }
 0x3ba   : > { %v2198_v41 = vmul.f32 0.5, %v2195_v40 }
 0x3bc   : > { %4890 = vtanh.f32 %v2198_v41 }
 0x3bf   : > { %v2196_v60 = vpop.f32.mrf.mxu2 }
 0x3c2   : > { %v4891_v44 = vpop.eup %4890 }
 0x3c3   : > { %v2200_v37 = vadd.f32 1.0, %v4891_v44 }
 0x3c5   : > { %v2201_v45 = vmul.f32 0.5, %v2200_v37 }
 0x3c7   : > { %v2202_v31 = vmul.f32 %v2201_v45, %v2195_v40  ;;  %v4831_v45 = vld [vmem:[%s5057_s6] ss:$0 sm:$0xff] }
 0x3c9   : > { %v2203_v46 = vpack.c.bf16 %v2202_v31, %v2202_v31 }
 0x3cb   : > { %2260 = vmatmul.bf16.vlgmr.msrb.gmra.mxu2 %v2203_v46 }
 0x44e   : > { %v2261_v56 = vpop.f32.mrf.mxu2 }
 0x44f   : > { %v2262_v57 = vadd.f32 %v2261_v56, %v1405_v36 }
 0x451   : > { %v2265_v62 = vmul.f32 0.5, %v2262_v57 }
 0x453   : > { %4892 = vtanh.f32 %v2265_v62 }
 0x456   : > { %v2263_v42 = vpop.f32.mrf.mxu2 }
 0x459   : > { %v4893_v49 = vpop.eup %4892 }
 0x45a   : > { %v2267_v1 = vadd.f32 1.0, %v4893_v49 }
 0x45c   : > { %v2268_v38 = vmul.f32 0.5, %v2267_v1 }
 0x45e   : > { %v2269_v48 = vperm.slane %v2268_v38, 0 }
 0x460   : > { %v2270_v61 = vmul.f32 %v2269_v48, %v5427_v51  ;;  %v2271_v55 = vmul.f32 %v2269_v48, %v5424_v63  ;;  %v2272_v5 = vmul.f32 %v2269_v48, %v5430_v43  ;;  %v2273_v7 = vmul.f32 %v2269_v48, %v5436_v0  ;;  %v4668_v43 = vld [vmem:[%s5052_s30 + $0x18] sm:$0xff] }
 0x461   : > { %v2274_v51 = vmul.f32 %v2269_v48, %v5441_v53  ;;  %v2275_v63 = vmul.f32 %v2269_v48, %v5445_v4  ;;  %2517 = vmatpush.bf16.msrb.mxu3 %v4668_v43  ;;  %v2276_v0 = vmul.f32 %v2269_v48, %v5449_v8  ;;  %v2277_v6 = vmul.f32 %v2269_v48, %v5452_v12  ;;  %v4666_v53 = vld [vmem:[%s5052_s30 + $0x8] sm:$0xff]  ;;  %v4665_v4 = vld [vmem:[%s5052_s30] sm:$0xff] }
 0x462   : > { %v2278_v3 = vpack.c.bf16 %v2271_v55, %v2270_v61  ;;  %v2279_v59 = vpack.c.bf16 %v2273_v7, %v2272_v5 }
 0x463   : > { %v2280_v13 = vpack.c.bf16 %v2275_v63, %v2274_v51  ;;  %v2281_v14 = vpack.c.bf16 %v2277_v6, %v2276_v0 }
 0x464   : > { %2341 = vmatmul.bf16.vlgmr.msra.gmra.mxu2 %v2278_v3 }
 0x465   : > { %2518 = vmatpush.bf16.msrb.mxu3 %v4667_v15 }
 0x469   : > { %2519 = vmatpush.bf16.msrb.mxu3 %v4666_v53 }
 0x46d   : > { %2520 = vmatpush.bf16.msrb.mxu3 %v4665_v4 }
 0x474   : > { %2346 = vmatmul.bf16.gmra.mxu2 %v2279_v59 }
 0x484   : > { %2351 = vmatmul.bf16.gmra.mxu2 %v2280_v13 }
 0x494   : > { %2356 = vmatmul.bf16.gmra.mxu2 %v2281_v14 }
 0x4e7   : > { %v2342_v39 = vpop.f32.mrf.mxu2 }
 0x4e8   : > { %v2343_v19 = vadd.f32 %v4830_v16, %v2342_v39 }
 0x4ef   : > { %v2344_v18 = vpop.f32.mrf.mxu2 }
 0x4f0   : > { %v2345_v21 = vadd.f32 %v4830_v16, %v2344_v18 }
 0x4f2   : > { %v2362_v22 = vpack.c.bf16 %v2345_v21, %v2343_v19 }
 0x4f4   : > { %2521 = vmatmul.bf16.vlgmr.msrb.gmra.mxu3 %v2362_v22 }
 0x4f7   : > { %v2347_v24 = vpop.f32.mrf.mxu2 }
 0x4f8   : > { %v2348_v8 = vadd.f32 %v4830_v16, %v2347_v24 }
 0x4ff   : > { %v2349_v58 = vpop.f32.mrf.mxu2 }
 0x500   : > { %v2350_v34 = vadd.f32 %v4830_v16, %v2349_v58 }
 0x502   : > { %v2363_v12 = vpack.c.bf16 %v2350_v34, %v2348_v8 }
 0x504   : > { %2526 = vmatmul.bf16.gmra.mxu3 %v2363_v12 }
 0x507   : > { %v2352_v52 = vpop.f32.mrf.mxu2 }
 0x508   : > { %v2353_v27 = vadd.f32 %v4830_v16, %v2352_v52 }
 0x50f   : > { %v2354_v26 = vpop.f32.mrf.mxu2 }
 0x510   : > { %v2355_v28 = vadd.f32 %v4830_v16, %v2354_v26 }
 0x512   : > { %v2364_v29 = vpack.c.bf16 %v2355_v28, %v2353_v27 }
 0x514   : > { %2531 = vmatmul.bf16.gmra.mxu3 %v2364_v29 }
 0x517   : > { %v2357_v30 = vpop.f32.mrf.mxu2 }
 0x518   : > { %v2358_v35 = vadd.f32 %v4830_v16, %v2357_v30 }
 0x51f   : > { %v2359_v32 = vpop.f32.mrf.mxu2 }
 0x520   : > { %v2360_v23 = vadd.f32 %v4830_v16, %v2359_v32 }
 0x522   : > { %v2365_v20 = vpack.c.bf16 %v2360_v23, %v2358_v35  ;;  %v4673_v35 = vld [vmem:[%s5698_s23] sm:$0xff]  ;;  %v4674_v23 = vld [vmem:[%s5698_s23 + $0x8] sm:$0xff] }
 0x524   : > { %2536 = vmatmul.bf16.gmra.mxu3 %v2365_v20  ;;  %v4675_v20 = vld [vmem:[%s5698_s23 + $0x10] sm:$0xff] }
 0x577   : > { %v2522_v33 = vpop.f32.mrf.mxu3 }
 0x578   : > { %v2523_v1 = vadd.f32 %v4831_v45, %v2522_v33  ;;  %v4676_v33 = vld [vmem:[%s5698_s23 + $0x18] sm:$0xff] }
 0x57a   : > { %v2542_v5 = vmul.f32 0.5, %v2523_v1 }
 0x57f   : > { %v2524_v40 = vpop.f32.mrf.mxu3 }
 0x580   : > { %v2525_v42 = vadd.f32 %v4831_v45, %v2524_v40  ;;  %v4677_v40 = vld [vmem:[%s5698_s23 + $0x20] sm:$0xff] }
 0x582   : > { %v2543_v55 = vmul.f32 0.5, %v2525_v42 }
 0x587   : > { %v2527_v41 = vpop.f32.mrf.mxu3 }
 0x588   : > { %v2528_v36 = vadd.f32 %v4831_v45, %v2527_v41  ;;  %v4678_v41 = vld [vmem:[%s5698_s23 + $0x28] sm:$0xff] }
 0x58a   : > { %v2544_v38 = vmul.f32 0.5, %v2528_v36 }
 0x58f   : > { %v2529_v60 = vpop.f32.mrf.mxu3 }
 0x590   : > { %v2530_v25 = vadd.f32 %v4831_v45, %v2529_v60  ;;  %v4679_v60 = vld [vmem:[%s5698_s23 + $0x30] sm:$0xff] }
 0x592   : > { %v2545_v57 = vmul.f32 0.5, %v2530_v25 }
 0x597   : > { %v2532_v44 = vpop.f32.mrf.mxu3 }
 0x598   : > { %v2533_v54 = vadd.f32 %v4831_v45, %v2532_v44  ;;  %v4680_v44 = vld [vmem:[%s5698_s23 + $0x38] sm:$0xff] }
 0x59a   : > { %v2546_v56 = vmul.f32 0.5, %v2533_v54 }
 0x59f   : > { %v2534_v37 = vpop.f32.mrf.mxu3 }
 0x5a0   : > { %v2535_v46 = vadd.f32 %v4831_v45, %v2534_v37  ;;  %v4681_v37 = vld [vmem:[%s5698_s23 + $0x40] sm:$0xff] }
 0x5a2   : > { %v2547_v17 = vmul.f32 0.5, %v2535_v46 }
 0x5a7   : > { %v2537_v31 = vpop.f32.mrf.mxu3 }
 0x5a8   : > { %v2538_v47 = vadd.f32 %v4831_v45, %v2537_v31 }
 0x5aa   : > { %v2548_v50 = vmul.f32 0.5, %v2538_v47 }
 0x5ac   : > { %4894 = vtanh.f32 %v2548_v50 }
 0x5ad   : > { %4896 = vtanh.f32 %v2547_v17 }
 0x5ae   : > { %4898 = vtanh.f32 %v2546_v56 }
 0x5af   : > { %v2539_v62 = vpop.f32.mrf.mxu3  ;;  %4900 = vtanh.f32 %v2545_v57 }
 0x5b0   : > { %v2540_v49 = vadd.f32 %v4831_v45, %v2539_v62 }
 0x5b2   : > { %v2549_v48 = vmul.f32 0.5, %v2540_v49  ;;  %v4895_v61 = vpop.eup %4894 }
 0x5b3   : > { %v4897_v3 = vpop.eup %4896  ;;  %v2564_v7 = vadd.f32 1.0, %v4895_v61 }
 0x5b4   : > { %4902 = vtanh.f32 %v2549_v48  ;;  %v4899_v59 = vpop.eup %4898  ;;  %v2563_v10 = vadd.f32 1.0, %v4897_v3  ;;  %v4835_v3 = vld [vmem:[%s5699_s26 + $0x3] ss:$0 sm:$0xff] }
 0x5b5   : > { %4904 = vtanh.f32 %v2544_v38  ;;  %v4901_v9 = vpop.eup %4900  ;;  %v2562_v51 = vadd.f32 1.0, %v4899_v59  ;;  %v2572_v63 = vmul.f32 0.5, %v2564_v7 }
 0x5b6   : > { %4906 = vtanh.f32 %v2543_v55  ;;  %v2561_v43 = vadd.f32 1.0, %v4901_v9  ;;  %v2571_v0 = vmul.f32 0.5, %v2563_v10 }
 0x5b7   : > { %4908 = vtanh.f32 %v2542_v5  ;;  %v2570_v53 = vmul.f32 0.5, %v2562_v51  ;;  %v2580_v4 = vmul.f32 %v2572_v63, %v2538_v47  ;;  %v4833_v47 = vld [vmem:[%s5699_s26 + $0x1] ss:$0 sm:$0xff]  ;;  %v4836_v51 = vld [vmem:[%s5699_s26 + $0x4] ss:$0 sm:$0xff] }
 0x5b8   : > { %v2569_v19 = vmul.f32 0.5, %v2561_v43  ;;  %v2579_v21 = vmul.f32 %v2571_v0, %v2535_v46  ;;  %v4832_v46 = vld [vmem:[%s5699_s26] ss:$0 sm:$0xff] }
 0x5b9   : > { %v2578_v8 = vmul.f32 %v2570_v53, %v2533_v54 }
 0x5ba   : > { %v4903_v11 = vpop.eup %4902  ;;  %v2577_v12 = vmul.f32 %v2569_v19, %v2530_v25 }
 0x5bb   : > { %v2565_v2 = vadd.f32 1.0, %v4903_v11  ;;  %v4905_v13 = vpop.eup %4904  ;;  %v2584_v52 = vpack.c.bf16 %v2579_v21, %v2578_v8  ;;  %v4687_v21 = vld [vmem:[%s5700_s28 + $0x28] sm:$0xff]  ;;  %v4686_v8 = vld [vmem:[%s5700_s28 + $0x20] sm:$0xff] }
 0x5bc   : > { %v4907_v14 = vpop.eup %4906  ;;  %v2560_v15 = vadd.f32 1.0, %v4905_v13 }
 0x5bd   : > { %v2573_v6 = vmul.f32 0.5, %v2565_v2  ;;  %v4909_v16 = vpop.eup %4908  ;;  %v2559_v18 = vadd.f32 1.0, %v4907_v14 }
 0x5be   : > { %v2558_v24 = vadd.f32 1.0, %v4909_v16  ;;  %v2568_v58 = vmul.f32 0.5, %v2560_v15  ;;  %v4837_v16 = vld [vmem:[%s5699_s26 + $0x5] ss:$0 sm:$0xff] }
 0x5bf   : > { %v2581_v39 = vmul.f32 %v2573_v6, %v2540_v49  ;;  %v2567_v34 = vmul.f32 0.5, %v2559_v18  ;;  %v4838_v18 = vld [vmem:[%s5699_s26 + $0x6] ss:$0 sm:$0xff] }
 0x5c0   : > { %v2566_v26 = vmul.f32 0.5, %v2558_v24  ;;  %v2576_v27 = vmul.f32 %v2568_v58, %v2528_v36  ;;  %v4839_v24 = vld [vmem:[%s5699_s26 + $0x7] ss:$0 sm:$0xff] }
 0x5c1   : > { %v2585_v22 = vpack.c.bf16 %v2581_v39, %v2580_v4  ;;  %v2575_v28 = vmul.f32 %v2567_v34, %v2525_v42  ;;  %v4834_v42 = vld [vmem:[%s5699_s26 + $0x2] ss:$0 sm:$0xff]  ;;  %v4689_v4 = vld [vmem:[%s5700_s28 + $0x38] sm:$0xff]  ;;  %v4688_v39 = vld [vmem:[%s5700_s28 + $0x30] sm:$0xff] }
 0x5c2   : > { %v2583_v29 = vpack.c.bf16 %v2577_v12, %v2576_v27  ;;  %v2574_v30 = vmul.f32 %v2566_v26, %v2523_v1  ;;  %2852 = vmatpush.bf16.msrb.mxu2 %v4689_v4 }
 0x5c3   : > { %2662 = vmatpush.bf16.msra.mxu0 %v2585_v22 }
 0x5c4   : > { %v2582_v32 = vpack.c.bf16 %v2575_v28, %v2574_v30 }
 0x5c6   : > { %2853 = vmatpush.bf16.msrb.mxu2 %v4688_v39  ;;  %v4694_v39 = vld [vmem:[%s5702_s2 + $0x20] sm:$0xff] }
 0x5c7   : > { %2663 = vmatpush.bf16.msra.mxu0 %v2584_v52  ;;  %v4840_v52 = vld [vmem:[%s5699_s26 + $0x8] ss:$0 sm:$0xff] }
 0x5ca   : > { %2854 = vmatpush.bf16.msrb.mxu2 %v4687_v21  ;;  %v4690_v21 = vld [vmem:[%s5702_s2] sm:$0xff] }
 0x5cb   : > { %2664 = vmatpush.bf16.msra.mxu0 %v2583_v29  ;;  %v4685_v29 = vld [vmem:[%s5700_s28 + $0x18] sm:$0xff] }
 0x5ce   : > { %2855 = vmatpush.bf16.msrb.mxu2 %v4686_v8  ;;  %v2427_v8 = vld [vmem:[%s5704_s10] sm:$0x1]  ;;  %s5710_s10 = sld [smem:[#allocation14_spill]] }
 0x5cf   : > { %2665 = vmatpush.bf16.msra.mxu0 %v2582_v32 }
 0x5d2   : > { %4255 = vmatmul.msk.bf16.vlgmr.msra.gmra.mxu0 %vm1603_vm1, %v4673_v35  ;;  %2856 = vmatpush.bf16.msrb.mxu2 %v4685_v29 }
 0x5e2   : > { %4256 = vmatmul.msk.bf16.gmra.mxu0 %vm1603_vm1, %v4674_v23  ;;  %v4841_v23 = vld [vmem:[%s5701_s1] ss:$0 sm:$0xff]  ;;  %s5709_s1 = sld [smem:[#allocation13_spill]] }
 0x5f2   : > { %4257 = vmatmul.msk.bf16.gmra.mxu0 %vm1603_vm1, %v4675_v20 }
 0x602   : > { %4258 = vmatmul.msk.bf16.gmra.mxu0 %vm1603_vm1, %v4676_v33 }
 0x612   : > { %4259 = vmatmul.msk.bf16.gmra.mxu0 %vm1603_vm1, %v4677_v40 }
 0x622   : > { %4260 = vmatmul.msk.bf16.gmra.mxu0 %vm1603_vm1, %v4678_v41  ;;  %v4684_v41 = vld [vmem:[%s5700_s28 + $0x10] sm:$0xff] }
 0x623   : > { %2857 = vmatpush.bf16.msrb.mxu2 %v4684_v41  ;;  %v4713_v41 = vld [vmem:[%s5705_s11 + $0x38] sm:$0xff] }
 0x632   : > { %4261 = vmatmul.msk.bf16.gmra.mxu0 %vm1603_vm1, %v4679_v60 }
 0x642   : > { %4262 = vmatmul.msk.bf16.gmra.mxu0 %vm1603_vm1, %v4680_v44 }
 0x64f   : > { %v2667_v45 = vpop.f32.mrf.mxu0 }
 0x650   : > { %v2715_v50 = vmul.f32 %v4832_v46, %v2667_v45  ;;  %v4683_v45 = vld [vmem:[%s5700_s28 + $0x8] sm:$0xff] }
 0x651   : > { %2858 = vmatpush.bf16.msrb.mxu2 %v4683_v45 }
 0x652   : > { %4263 = vmatmul.msk.bf16.gmra.mxu0 %vm1603_vm1, %v4681_v37 }
 0x657   : > { %v2669_v31 = vpop.f32.mrf.mxu0 }
 0x658   : > { %v2716_v56 = vmul.f32 %v4832_v46, %v2669_v31 }
 0x65f   : > { %v2672_v54 = vpop.f32.mrf.mxu0 }
 0x660   : > { %v2720_v25 = vmul.f32 %v4833_v47, %v2672_v54 }
 0x662   : > { %v2722_v17 = vadd.f32 %v2720_v25, %v2715_v50  ;;  %v4682_v25 = vld [vmem:[%s5700_s28] sm:$0xff] }
 0x663   : > { %2859 = vmatpush.bf16.msrb.mxu2 %v4682_v25 }
 0x667   : > { %v2674_v36 = vpop.f32.mrf.mxu0 }
 0x668   : > { %v2721_v57 = vmul.f32 %v4833_v47, %v2674_v36 }
 0x66a   : > { %v2723_v62 = vadd.f32 %v2721_v57, %v2716_v56  ;;  %v4983_v57 = vmov 16.0  }
 0x66f   : > { %v2677_v49 = vpop.f32.mrf.mxu0 }
 0x670   : > { %v2727_v1 = vmul.f32 %v4834_v42, %v2677_v49  ;;  %v4696_v49 = vld [vmem:[%s5702_s2 + $0x30] sm:$0xff] }
 0x672   : > { %v2729_v38 = vadd.f32 %v2727_v1, %v2722_v17 }
 0x677   : > { %v2679_v48 = vpop.f32.mrf.mxu0 }
 0x678   : > { %v2728_v61 = vmul.f32 %v4834_v42, %v2679_v48  ;;  %v4695_v48 = vld [vmem:[%s5702_s2 + $0x28] sm:$0xff] }
 0x67a   : > { %v2730_v55 = vadd.f32 %v2728_v61, %v2723_v62  ;;  %v4697_v62 = vld [vmem:[%s5702_s2 + $0x38] sm:$0xff] }
 0x67b   : > { %2919 = vmatpush.bf16.msra.mxu3 %v4697_v62 }
 0x67f   : > { %v2682_v5 = vpop.f32.mrf.mxu0  ;;  %2920 = vmatpush.bf16.msra.mxu3 %v4696_v49  ;;  %v4708_v49 = vld [vmem:[%s5705_s11 + $0x10] sm:$0xff] }
 0x680   : > { %v2734_v7 = vmul.f32 %v4835_v3, %v2682_v5 }
 0x682   : > { %v2736_v59 = vadd.f32 %v2734_v7, %v2729_v38 }
 0x683   : > { %2921 = vmatpush.bf16.msra.mxu3 %v4695_v48 }
 0x687   : > { %v2684_v9 = vpop.f32.mrf.mxu0  ;;  %2922 = vmatpush.bf16.msra.mxu3 %v4694_v39 }
 0x688   : > { %v2735_v10 = vmul.f32 %v4835_v3, %v2684_v9 }
 0x68a   : > { %v2737_v11 = vadd.f32 %v2735_v10, %v2730_v55 }
 0x68f   : > { %v2687_v63 = vpop.f32.mrf.mxu0 }
 0x690   : > { %v2741_v2 = vmul.f32 %v4836_v51, %v2687_v63 }
 0x692   : > { %v2743_v13 = vadd.f32 %v2741_v2, %v2736_v59 }
 0x697   : > { %v2689_v43 = vpop.f32.mrf.mxu0 }
 0x698   : > { %v2742_v26 = vmul.f32 %v4836_v51, %v2689_v43 }
 0x69a   : > { %v2744_v20 = vadd.f32 %v2742_v26, %v2737_v11 }
 0x69f   : > { %v2692_v0 = vpop.f32.mrf.mxu0 }
 0x6a0   : > { %v2748_v22 = vmul.f32 %v4837_v16, %v2692_v0 }
 0x6a2   : > { %v2750_v34 = vadd.f32 %v2748_v22, %v2743_v13  ;;  %v4705_v22 = vld [vmem:[%s5703_s7 + $0x38] sm:$0xff] }
 0x6a3   : > { %2991 = vmatpush.bf16.msra.mxu2 %v4705_v22 }
 0x6a7   : > { %v2694_v6 = vpop.f32.mrf.mxu0 }
 0x6a8   : > { %v2749_v30 = vmul.f32 %v4837_v16, %v2694_v6  ;;  %v4693_v16 = vld [vmem:[%s5702_s2 + $0x18] sm:$0xff] }
 0x6a9   : > { %2923 = vmatpush.bf16.msra.mxu3 %v4693_v16 }
 0x6aa   : > { %v2751_v60 = vadd.f32 %v2749_v30, %v2744_v20  ;;  %v4700_v20 = vld [vmem:[%s5703_s7 + $0x10] sm:$0xff] }
 0x6af   : > { %v2697_v14 = vpop.f32.mrf.mxu0 }
 0x6b0   : > { %v2755_v58 = vmul.f32 %v4838_v18, %v2697_v14 }
 0x6b2   : > { %v2757_v27 = vadd.f32 %v2755_v58, %v2750_v34  ;;  %v4703_v58 = vld [vmem:[%s5703_s7 + $0x28] sm:$0xff] }
 0x6b7   : > { %v2699_v15 = vpop.f32.mrf.mxu0 }
 0x6b8   : > { %v2756_v33 = vmul.f32 %v4838_v18, %v2699_v15  ;;  %v4692_v18 = vld [vmem:[%s5702_s2 + $0x10] sm:$0xff] }
 0x6b9   : > { %2924 = vmatpush.bf16.msra.mxu3 %v4692_v18 }
 0x6ba   : > { %v2758_v31 = vadd.f32 %v2756_v33, %v2751_v60  ;;  %v4699_v33 = vld [vmem:[%s5703_s7 + $0x8] sm:$0xff]  ;;  %v4712_v60 = vld [vmem:[%s5705_s11 + $0x30] sm:$0xff] }
 0x6bf   : > { %v2702_v53 = vpop.f32.mrf.mxu0 }
 0x6c0   : > { %v2762_v12 = vmul.f32 %v4839_v24, %v2702_v53 }
 0x6c2   : > { %v2764_v32 = vadd.f32 %v2762_v12, %v2757_v27 }
 0x6c7   : > { %v2704_v19 = vpop.f32.mrf.mxu0 }
 0x6c8   : > { %v2763_v44 = vmul.f32 %v4839_v24, %v2704_v19  ;;  %v4691_v19 = vld [vmem:[%s5702_s2 + $0x8] sm:$0xff]  ;;  %v4704_v24 = vld [vmem:[%s5703_s7 + $0x30] sm:$0xff]  ;;  %s5717_s2 = sld [smem:[#allocation19_spill]] }
 0x6c9   : > { %2925 = vmatpush.bf16.msra.mxu3 %v4691_v19  ;;  %2992 = vmatpush.bf16.msra.mxu2 %v4704_v24  ;;  %v4714_v24 = vld [vmem:[%s5709_s1] sm:$0xff] }
 0x6ca   : > { %v2765_v54 = vadd.f32 %v2763_v44, %v2758_v31  ;;  %v4711_v44 = vld [vmem:[%s5705_s11 + $0x28] sm:$0xff]  ;;  %v4710_v31 = vld [vmem:[%s5705_s11 + $0x20] sm:$0xff] }
 0x6cd   : > { %2926 = vmatpush.bf16.msra.mxu3 %v4690_v21  ;;  %2993 = vmatpush.bf16.msra.mxu2 %v4703_v58  ;;  %v4715_v58 = vld [vmem:[%s5709_s1 + $0x8] sm:$0xff] }
 0x6cf   : > { %v2707_v28 = vpop.f32.mrf.mxu0 }
 0x6d0   : > { %v2769_v35 = vmul.f32 %v4840_v52, %v2707_v28 }
 0x6d1   : > { %3160 = vmatpush.bf16.msrb.mxu3 %v4713_v41 }
 0x6d2   : > { %v2771_v40 = vadd.f32 %v2769_v35, %v2764_v32  ;;  %v4702_v35 = vld [vmem:[%s5703_s7 + $0x20] sm:$0xff] }
 0x6d3   : > { %2994 = vmatpush.bf16.msra.mxu2 %v4702_v35  ;;  %v4845_v35 = vld [vmem:[%s5710_s10 + $0x1] ss:$0 sm:$0xff] }
 0x6d4   : > { %v2776_v37 = vadd.f32 %v4841_v23, %v2771_v40  ;;  %v4698_v40 = vld [vmem:[%s5703_s7] sm:$0xff] }
 0x6d5   : > { %3161 = vmatpush.bf16.msrb.mxu3 %v4712_v60 }
 0x6d6   : > { %v2778_v46 = vmul.f32 0.5, %v2776_v37 }
 0x6d7   : > { %v2709_v47 = vpop.f32.mrf.mxu0 }
 0x6d8   : > { %v2770_v50 = vmul.f32 %v4840_v52, %v2709_v47  ;;  %4910 = vtanh.f32 %v2778_v46 }
 0x6d9   : > { %4912 = vrcp.f32 %v4983_v57  ;;  %3162 = vmatpush.bf16.msrb.mxu3 %v4711_v44 }
 0x6da   : > { %v2772_v17 = vadd.f32 %v2770_v50, %v2765_v54 }
 0x6dc   : > { %v2777_v36 = vadd.f32 %v4841_v23, %v2772_v17  ;;  %v4701_v23 = vld [vmem:[%s5703_s7 + $0x18] sm:$0xff] }
 0x6dd   : > { %2995 = vmatpush.bf16.msra.mxu2 %v4701_v23  ;;  %3163 = vmatpush.bf16.msrb.mxu3 %v4710_v31 }
 0x6de   : > { %v2779_v56 = vmul.f32 0.5, %v2777_v36  ;;  %v4911_v42 = vpop.eup %4910 }
 0x6df   : > { %v2782_v1 = vadd.f32 1.0, %v4911_v42  ;;  %v4913_v38 = vpop.eup %4912  ;;  %v4709_v42 = vld [vmem:[%s5705_s11 + $0x18] sm:$0xff] }
 0x6e0   : > { %4914 = vtanh.f32 %v2779_v56  ;;  %v2796_v5 = vmul.f32 16.0, %v4913_v38  ;;  %vm2800_vm3 = vweird.f32 %v4913_v38 }
 0x6e1   : > { %v2784_v55 = vmul.f32 0.5, %v2782_v1  ;;  %2996 = vmatpush.bf16.msra.mxu2 %v4700_v20  ;;  %3164 = vmatpush.bf16.msrb.mxu3 %v4709_v42  ;;  %v4707_v1 = vld [vmem:[%s5705_s11 + $0x8] sm:$0xff] }
 0x6e2   : > { %v2797_v10 = vsub.f32 1.0, %v2796_v5 }
 0x6e3   : > { %v5528_v59 = vmul.f32 %v2784_v55, %v2776_v37  ;;  %v2444_v37 = vld [vmem:[%s5706_s0] sm:$0x1]  ;;  %s5711_s0 = sld [smem:[#allocation16_spill]] }
 0x6e4   : > { %v2798_v63 = vmul.f32 %v4913_v38, %v2797_v10 }
 0x6e5   : > { %2997 = vmatpush.bf16.msra.mxu2 %v4699_v33  ;;  %3165 = vmatpush.bf16.msrb.mxu3 %v4708_v49 }
 0x6e6   : > { %v4915_v61 = vpop.eup %4914  ;;  %v2799_v43 = vadd.f32 %v4913_v38, %v2798_v63 }
 0x6e7   : > { %v2783_v3 = vadd.f32 1.0, %v4915_v61  ;;  %v4842_v61 = vld [vmem:[%s5707_s18] ss:$0 sm:$0xff]  ;;  %s5712_s18 = sld [smem:[#allocation15_spill]] }
 0x6e8   : > { %v5534_v14 = vsel %vm2800_vm3, %v4913_v38, %v2799_v43  ;;  %v4706_v38 = vld [vmem:[%s5705_s11] sm:$0xff] }
 0x6e9   : > { %v2785_v7 = vmul.f32 0.5, %v2783_v3  ;;  %2998 = vmatpush.bf16.msra.mxu2 %v4698_v40  ;;  %3166 = vmatpush.bf16.msrb.mxu3 %v4707_v1  ;;  %v4848_v1 = vld [vmem:[%s5710_s10 + $0x4] ss:$0 sm:$0xff] }
 0x6eb   : > { %v5530_v9 = vmul.f32 %v2785_v7, %v2777_v36 }
 0x6ed   : > { %v2788_v11 = vadd.f32 %v5530_v9, %v5528_v59  ;;  %3167 = vmatpush.bf16.msrb.mxu3 %v4706_v38 }
 0x6ef   : > { %v2789_v51 = vrot.slane %v2788_v11, 4 }
 0x6f1   : > { %v2790_v2 = vadd.f32 %v2789_v51, %v2788_v11  ;;  %v4843_v51 = vld [vmem:[%s5708_s22] ss:$0 sm:$0xff]  ;;  %s5713_s22 = sld [smem:[#allocation18_spill]] }
 0x6f3   : > { %v2791_v13 = vrot.slane %v2790_v2, 2 }
 0x6f5   : > { %v2792_v0 = vadd.f32 %v2791_v13, %v2790_v2 }
 0x6f7   : > { %v2793_v6 = vrot.slane %v2792_v0, 1 }
 0x6f9   : > { %v2794_v15 = vadd.f32 %v2793_v6, %v2792_v0 }
 0x6fb   : > { %v2802_v53 = vmul.f32 %v5534_v14, %v2794_v15 }
 0x6fd   : > { %v2803_v4 = vpack.c.bf16 %v2802_v53, %v2802_v53 }
 0x6ff   : > { %2860 = vmatmul.bf16.vlgmr.msrb.gmra.mxu2 %v2803_v4 }
 0x782   : > { %v2861_v34 = vpop.f32.mrf.mxu2 }
 0x783   : > { %v2862_v12 = vadd.f32 %v2861_v34, %v2427_v8  ;;  %v4716_v8 = vld [vmem:[%s5709_s1 + $0x10] sm:$0xff]  ;;  %v4717_v34 = vld [vmem:[%s5709_s1 + $0x18] sm:$0xff] }
 0x785   : > { %v2865_v52 = vmul.f32 0.5, %v2862_v12 }
 0x787   : > { %4916 = vtanh.f32 %v2865_v52  ;;  %v4719_v52 = vld [vmem:[%s5709_s1 + $0x28] sm:$0xff] }
 0x78a   : > { %v2863_v26 = vpop.f32.mrf.mxu2 }
 0x78b   : > { %v4720_v26 = vld [vmem:[%s5709_s1 + $0x30] sm:$0xff] }
 0x78d   : > { %v4917_v27 = vpop.eup %4916 }
 0x78e   : > { %v2867_v28 = vadd.f32 1.0, %v4917_v27  ;;  %v4721_v27 = vld [vmem:[%s5709_s1 + $0x38] sm:$0xff] }
 0x790   : > { %v2868_v29 = vmul.f32 0.5, %v2867_v28  ;;  %v4722_v28 = vld [vmem:[%s5709_s1 + $0x40] sm:$0xff] }
 0x792   : > { %v2869_v30 = vmul.f32 %v2868_v29, %v2862_v12  ;;  %v4718_v12 = vld [vmem:[%s5709_s1 + $0x20] sm:$0xff]  ;;  %s5716_s1 = sld [smem:[#allocation22_spill]] }
 0x794   : > { %v2870_v32 = vpack.c.bf16 %v2869_v30, %v2869_v30 }
 0x796   : > { %2927 = vmatmul.bf16.vlgmr.msra.gmra.mxu3 %v2870_v32  ;;  %v4844_v32 = vld [vmem:[%s5710_s10] ss:$0 sm:$0xff] }
 0x819   : > { %v2928_v45 = vpop.f32.mrf.mxu3 }
 0x81a   : > { %v2929_v46 = vadd.f32 %v2928_v45, %v2444_v37  ;;  %v4846_v45 = vld [vmem:[%s5710_s10 + $0x2] ss:$0 sm:$0xff] }
 0x81c   : > { %v2932_v47 = vmul.f32 0.5, %v2929_v46 }
 0x81e   : > { %4918 = vtanh.f32 %v2932_v47 }
 0x821   : > { %v2930_v54 = vpop.f32.mrf.mxu3 }
 0x824   : > { %v4919_v50 = vpop.eup %4918 }
 0x825   : > { %v2934_v25 = vadd.f32 1.0, %v4919_v50 }
 0x827   : > { %v2935_v17 = vmul.f32 0.5, %v2934_v25 }
 0x829   : > { %v2936_v36 = vperm.slane %v2935_v17, 0  ;;  %v4847_v17 = vld [vmem:[%s5710_s10 + $0x3] ss:$0 sm:$0xff] }
 0x82b   : > { %v2937_v56 = vmul.f32 %v2936_v36, %v5528_v59  ;;  %v2938_v57 = vmul.f32 %v2936_v36, %v5530_v9 }
 0x82d   : > { %v2939_v62 = vpack.c.bf16 %v2938_v57, %v2937_v56 }
 0x82f   : > { %2999 = vmatmul.bf16.vlgmr.msra.gmra.mxu2 %v2939_v62 }
 0x8b2   : > { %v3000_v48 = vpop.f32.mrf.mxu2 }
 0x8b3   : > { %v3001_v55 = vadd.f32 %v4842_v61, %v3000_v48 }
 0x8b5   : > { %v5563_v5 = vpack.c.bf16 %v3001_v55, %v3001_v55 }
 0x8b7   : > { %v3108_v9 = vunpack.c.l.b16 %v5563_v5 }
 0x8ba   : > { %v3002_v3 = vpop.f32.mrf.mxu2 }
 0x8bb   : > { %v3003_v7 = vadd.f32 %v4842_v61, %v3002_v3 }
 0x8bd   : > { %v5565_v59 = vpack.c.bf16 %v3003_v7, %v3003_v7 }
 0x8bf   : > { %v3109_v10 = vunpack.c.l.b16 %v5565_v59 }
 0x8c1   : > { %v3110_v11 = vpack.c.b16 %v3109_v10, %v3108_v9 }
 0x8c3   : > { %3168 = vmatmul.bf16.vlgmr.msrb.gmra.mxu3 %v3110_v11 }
 0x946   : > { %v3169_v63 = vpop.f32.mrf.mxu3 }
 0x947   : > { %v3170_v2 = vadd.f32 %v4843_v51, %v3169_v63  ;;  %v4729_v63 = vld [vmem:[%s5711_s0 + $0x30] sm:$0xff] }
 0x949   : > { %v3174_v13 = vmul.f32 0.5, %v3170_v2 }
 0x94b   : > { %4920 = vtanh.f32 %v3174_v13  ;;  %v4850_v13 = vld [vmem:[%s5710_s10 + $0x6] ss:$0 sm:$0xff] }
 0x94e   : > { %v3171_v43 = vpop.f32.mrf.mxu3 }
 0x94f   : > { %v3172_v0 = vadd.f32 %v4843_v51, %v3171_v43  ;;  %v4730_v51 = vld [vmem:[%s5711_s0 + $0x38] sm:$0xff] }
 0x950   : > { %3445 = vmatpush.bf16.msra.mxu3 %v4730_v51  ;;  %v4732_v51 = vld [vmem:[%s5713_s22 + $0x8] sm:$0xff] }
 0x951   : > { %v3175_v6 = vmul.f32 0.5, %v3172_v0  ;;  %v4921_v15 = vpop.eup %4920 }
 0x952   : > { %v3178_v53 = vadd.f32 1.0, %v4921_v15  ;;  %v4851_v15 = vld [vmem:[%s5710_s10 + $0x7] ss:$0 sm:$0xff] }
 0x953   : > { %4922 = vtanh.f32 %v3175_v6 }
 0x954   : > { %v3180_v39 = vmul.f32 0.5, %v3178_v53  ;;  %3446 = vmatpush.bf16.msra.mxu3 %v4729_v63  ;;  %v4731_v63 = vld [vmem:[%s5713_s22] sm:$0xff] }
 0x956   : > { %v3182_v19 = vmul.f32 %v3180_v39, %v3170_v2  ;;  %v4849_v2 = vld [vmem:[%s5710_s10 + $0x5] ss:$0 sm:$0xff] }
 0x959   : > { %v4923_v4 = vpop.eup %4922 }
 0x95a   : > { %v3179_v16 = vadd.f32 1.0, %v4923_v4  ;;  %v4727_v4 = vld [vmem:[%s5711_s0 + $0x20] sm:$0xff] }
 0x95c   : > { %v3181_v18 = vmul.f32 0.5, %v3179_v16 }
 0x95e   : > { %v3183_v21 = vmul.f32 %v3181_v18, %v3172_v0  ;;  %v4728_v0 = vld [vmem:[%s5711_s0 + $0x28] sm:$0xff] }
 0x95f   : > { %3447 = vmatpush.bf16.msra.mxu3 %v4728_v0  ;;  %v4852_v18 = vld [vmem:[%s5710_s10 + $0x8] ss:$0 sm:$0xff] }
 0x960   : > { %v3184_v22 = vpack.c.bf16 %v3183_v21, %v3182_v19 }
 0x962   : > { %3265 = vmatpush.bf16.msrb.mxu2 %v3184_v22 }
 0x963   : > { %3448 = vmatpush.bf16.msra.mxu3 %v4727_v4 }
 0x965   : > { %4428 = vmatmul.msk.bf16.vlgmr.msrb.gmra.mxu2 %vm3230_vm4, %v4714_v24  ;;  %v4726_v24 = vld [vmem:[%s5711_s0 + $0x18] sm:$0xff] }
 0x967   : > { %3449 = vmatpush.bf16.msra.mxu3 %v4726_v24 }
 0x975   : > { %4429 = vmatmul.msk.bf16.gmra.mxu2 %vm3230_vm4, %v4715_v58 }
 0x985   : > { %4430 = vmatmul.msk.bf16.gmra.mxu2 %vm3230_vm4, %v4716_v8 }
 0x995   : > { %4431 = vmatmul.msk.bf16.gmra.mxu2 %vm3230_vm4, %v4717_v34 }
 0x9a5   : > { %4432 = vmatmul.msk.bf16.gmra.mxu2 %vm3230_vm4, %v4718_v12  ;;  %v4853_v12 = vld [vmem:[%s5712_s18] ss:$0 sm:$0xff]  ;;  %s5714_s18 = sld [smem:[#allocation20_spill]] }
 0x9ab   : > { %v4742_v24 = vld [vmem:[%s5714_s18 + $0x18] sm:$0xff] }
 0x9b5   : > { %4433 = vmatmul.msk.bf16.gmra.mxu2 %vm3230_vm4, %v4719_v52 }
 0x9c5   : > { %4434 = vmatmul.msk.bf16.gmra.mxu2 %vm3230_vm4, %v4720_v26 }
 0x9d5   : > { %4435 = vmatmul.msk.bf16.gmra.mxu2 %vm3230_vm4, %v4721_v27 }
 0x9e5   : > { %4436 = vmatmul.msk.bf16.gmra.mxu2 %vm3230_vm4, %v4722_v28  ;;  %v4725_v28 = vld [vmem:[%s5711_s0 + $0x10] sm:$0xff] }
 0x9e6   : > { %3450 = vmatpush.bf16.msra.mxu3 %v4725_v28 }
 0x9e8   : > { %v3267_v29 = vpop.f32.mrf.mxu2 }
 0x9e9   : > { %v3315_v20 = vmul.f32 %v4844_v32, %v3267_v29 }
 0x9f0   : > { %v3269_v30 = vpop.f32.mrf.mxu2 }
 0x9f1   : > { %v3316_v60 = vmul.f32 %v4844_v32, %v3269_v30 }
 0x9f8   : > { %v3272_v23 = vpop.f32.mrf.mxu2 }
 0x9f9   : > { %v3320_v33 = vmul.f32 %v4845_v35, %v3272_v23 }
 0x9fb   : > { %v3322_v40 = vadd.f32 %v3320_v33, %v3315_v20  ;;  %v4724_v33 = vld [vmem:[%s5711_s0 + $0x8] sm:$0xff] }
 0x9fc   : > { %3451 = vmatpush.bf16.msra.mxu3 %v4724_v33 }
 0xa00   : > { %v3274_v41 = vpop.f32.mrf.mxu2 }
 0xa01   : > { %v3321_v44 = vmul.f32 %v4845_v35, %v3274_v41 }
 0xa03   : > { %v3323_v37 = vadd.f32 %v3321_v44, %v3316_v60  ;;  %v4723_v60 = vld [vmem:[%s5711_s0] sm:$0xff]  ;;  %s5715_s0 = sld [smem:[#allocation17_spill]] }
 0xa04   : > { %3452 = vmatpush.bf16.msra.mxu3 %v4723_v60 }
 0xa08   : > { %v3277_v31 = vpop.f32.mrf.mxu2 }
 0xa09   : > { %v3327_v46 = vmul.f32 %v4846_v45, %v3277_v31  ;;  %v4738_v31 = vld [vmem:[%s5713_s22 + $0x38] sm:$0xff]  ;;  %v3068_v0 = vld [vmem:[%s5715_s0] sm:$0x1]  ;;  %s5718_s0 = sld [smem:[#allocation21_spill]] }
 0xa0a   : > { %3512 = vmatpush.bf16.msrb.mxu0 %v4738_v31  ;;  %v4748_v31 = vld [vmem:[%s5716_s1 + $0x8] sm:$0xff] }
 0xa0b   : > { %v3329_v47 = vadd.f32 %v3327_v46, %v3322_v40 }
 0xa10   : > { %v3279_v54 = vpop.f32.mrf.mxu2 }
 0xa11   : > { %v3328_v50 = vmul.f32 %v4846_v45, %v3279_v54 }
 0xa13   : > { %v3330_v25 = vadd.f32 %v3328_v50, %v3323_v37  ;;  %v4736_v50 = vld [vmem:[%s5713_s22 + $0x28] sm:$0xff] }
 0xa18   : > { %v3282_v36 = vpop.f32.mrf.mxu2 }
 0xa19   : > { %v3334_v56 = vmul.f32 %v4847_v17, %v3282_v36 }
 0xa1b   : > { %v3336_v57 = vadd.f32 %v3334_v56, %v3329_v47  ;;  %v4737_v47 = vld [vmem:[%s5713_s22 + $0x30] sm:$0xff] }
 0xa1c   : > { %3513 = vmatpush.bf16.msrb.mxu0 %v4737_v47 }
 0xa20   : > { %v3284_v62 = vpop.f32.mrf.mxu2  ;;  %3514 = vmatpush.bf16.msrb.mxu0 %v4736_v50 }
 0xa21   : > { %v3335_v42 = vmul.f32 %v4847_v17, %v3284_v62 }
 0xa23   : > { %v3337_v49 = vadd.f32 %v3335_v42, %v3330_v25 }
 0xa28   : > { %v3287_v38 = vpop.f32.mrf.mxu2 }
 0xa29   : > { %v3341_v48 = vmul.f32 %v4848_v1, %v3287_v38 }
 0xa2b   : > { %v3343_v61 = vadd.f32 %v3341_v48, %v3336_v57 }
 0xa30   : > { %v3289_v55 = vpop.f32.mrf.mxu2 }
 0xa31   : > { %v3342_v19 = vmul.f32 %v4848_v1, %v3289_v55 }
 0xa33   : > { %v3344_v52 = vadd.f32 %v3342_v19, %v3337_v49 }
 0xa38   : > { %v3292_v3 = vpop.f32.mrf.mxu2 }
 0xa39   : > { %v3348_v6 = vmul.f32 %v4849_v2, %v3292_v3 }
 0xa3b   : > { %v3350_v39 = vadd.f32 %v3348_v6, %v3343_v61 }
 0xa40   : > { %v3294_v7 = vpop.f32.mrf.mxu2 }
 0xa41   : > { %v3349_v58 = vmul.f32 %v4849_v2, %v3294_v7  ;;  %v4746_v2 = vld [vmem:[%s5714_s18 + $0x38] sm:$0xff] }
 0xa42   : > { %3584 = vmatpush.bf16.msrb.mxu3 %v4746_v2 }
 0xa43   : > { %v3351_v29 = vadd.f32 %v3349_v58, %v3344_v52  ;;  %v4741_v58 = vld [vmem:[%s5714_s18 + $0x10] sm:$0xff] }
 0xa44   : > { %v4753_v52 = vld [vmem:[%s5716_s1 + $0x30] sm:$0xff] }
 0xa48   : > { %v3297_v9 = vpop.f32.mrf.mxu2 }
 0xa49   : > { %v3355_v53 = vmul.f32 %v4850_v13, %v3297_v9  ;;  %v4735_v9 = vld [vmem:[%s5713_s22 + $0x20] sm:$0xff] }
 0xa4a   : > { %3515 = vmatpush.bf16.msrb.mxu0 %v4735_v9  ;;  %v4756_v9 = vld [vmem:[%s5172_s27 + $0x8] sm:$0xff] }
 0xa4b   : > { %v3357_v21 = vadd.f32 %v3355_v53, %v3350_v39 }
 0xa50   : > { %v3299_v10 = vpop.f32.mrf.mxu2 }
 0xa51   : > { %v3356_v26 = vmul.f32 %v4850_v13, %v3299_v10  ;;  %v4734_v10 = vld [vmem:[%s5713_s22 + $0x18] sm:$0xff]  ;;  %v4745_v13 = vld [vmem:[%s5714_s18 + $0x30] sm:$0xff] }
 0xa52   : > { %3516 = vmatpush.bf16.msrb.mxu0 %v4734_v10  ;;  %3585 = vmatpush.bf16.msrb.mxu3 %v4745_v13  ;;  %v4755_v10 = vld [vmem:[%s5172_s27] sm:$0xff] }
 0xa53   : > { %v3358_v35 = vadd.f32 %v3356_v26, %v3351_v29  ;;  %v4752_v26 = vld [vmem:[%s5716_s1 + $0x28] sm:$0xff]  ;;  %v4751_v29 = vld [vmem:[%s5716_s1 + $0x20] sm:$0xff] }
 0xa58   : > { %v3302_v11 = vpop.f32.mrf.mxu2 }
 0xa59   : > { %v3362_v16 = vmul.f32 %v4851_v15, %v3302_v11  ;;  %v4733_v11 = vld [vmem:[%s5713_s22 + $0x10] sm:$0xff] }
 0xa5a   : > { %3517 = vmatpush.bf16.msrb.mxu0 %v4733_v11 }
 0xa5b   : > { %v3364_v8 = vadd.f32 %v3362_v16, %v3357_v21 }
 0xa5e   : > { %3518 = vmatpush.bf16.msrb.mxu0 %v4732_v51 }
 0xa60   : > { %v3304_v43 = vpop.f32.mrf.mxu2 }
 0xa61   : > { %v3363_v30 = vmul.f32 %v4851_v15, %v3304_v43  ;;  %v4744_v43 = vld [vmem:[%s5714_s18 + $0x28] sm:$0xff] }
 0xa62   : > { %3519 = vmatpush.bf16.msrb.mxu0 %v4731_v63  ;;  %3586 = vmatpush.bf16.msrb.mxu3 %v4744_v43 }
 0xa63   : > { %v3365_v40 = vadd.f32 %v3363_v30, %v3358_v35 }
 0xa68   : > { %v3307_v22 = vpop.f32.mrf.mxu2 }
 0xa69   : > { %v3369_v34 = vmul.f32 %v4852_v18, %v3307_v22  ;;  %v4743_v22 = vld [vmem:[%s5714_s18 + $0x20] sm:$0xff] }
 0xa6a   : > { %3587 = vmatpush.bf16.msrb.mxu3 %v4743_v22 }
 0xa6b   : > { %v3371_v27 = vadd.f32 %v3369_v34, %v3364_v8  ;;  %v4740_v8 = vld [vmem:[%s5714_s18 + $0x8] sm:$0xff]  ;;  %v4739_v34 = vld [vmem:[%s5714_s18] sm:$0xff] }
 0xa6d   : > { %v3376_v32 = vadd.f32 %v4853_v12, %v3371_v27  ;;  %v3085_v27 = vld [vmem:[%s5717_s2] sm:$0x1]  ;;  %s3882_s2 = sshll.u32 %s5722_s16, 3 }
 0xa6e   : > { %3588 = vmatpush.bf16.msrb.mxu3 %v4742_v24 }
 0xa6f   : > { %v3378_v23 = vmul.f32 0.5, %v3376_v32 }
 0xa70   : > { %v3309_v20 = vpop.f32.mrf.mxu2 }
 0xa71   : > { %v3370_v41 = vmul.f32 %v4852_v18, %v3309_v20  ;;  %4924 = vtanh.f32 %v3378_v23 }
 0xa72   : > { %3589 = vmatpush.bf16.msrb.mxu3 %v4741_v58 }
 0xa73   : > { %v3372_v44 = vadd.f32 %v3370_v41, %v3365_v40 }
 0xa75   : > { %v3377_v37 = vadd.f32 %v4853_v12, %v3372_v44  ;;  %v4754_v12 = vld [vmem:[%s5716_s1 + $0x38] sm:$0xff] }
 0xa76   : > { %3590 = vmatpush.bf16.msrb.mxu3 %v4740_v8  ;;  %3671 = vmatpush.bf16.msra.mxu0 %v4754_v12 }
 0xa77   : > { %v3379_v45 = vmul.f32 0.5, %v3377_v37  ;;  %v4925_v46 = vpop.eup %4924 }
 0xa78   : > { %v3382_v54 = vadd.f32 1.0, %v4925_v46  ;;  %v4747_v46 = vld [vmem:[%s5716_s1] sm:$0xff] }
 0xa79   : > { %4926 = vtanh.f32 %v3379_v45  ;;  %v4749_v45 = vld [vmem:[%s5716_s1 + $0x10] sm:$0xff] }
 0xa7a   : > { %v3384_v17 = vmul.f32 0.5, %v3382_v54  ;;  %3591 = vmatpush.bf16.msrb.mxu3 %v4739_v34  ;;  %3672 = vmatpush.bf16.msra.mxu0 %v4753_v52  ;;  %v4854_v54 = vld [vmem:[%s5718_s0] ss:$0 sm:$0xff]  ;;  %s1154_s0 = scalar_lea.vmem %s5182_s12, %s3882_s2 }
 0xa7b   : > { %v3720_v34 = vld [vmem:[%s5177_s4] sm:$0x1] }
 0xa7c   : > { %v5609_v57 = vmul.f32 %v3384_v17, %v3376_v32  ;;  %v3598_v17 = vunpack.c.l.bf16 %v5563_v5  ;;  %v4758_v5 = vld [vmem:[%s5172_s27 + $0x18] sm:$0xff] }
 0xa7e   : > { %3673 = vmatpush.bf16.msra.mxu0 %v4752_v26 }
 0xa7f   : > { %v4927_v25 = vpop.eup %4926 }
 0xa80   : > { %v3383_v36 = vadd.f32 1.0, %v4927_v25 }
 0xa82   : > { %v3385_v56 = vmul.f32 0.5, %v3383_v36  ;;  %3674 = vmatpush.bf16.msra.mxu0 %v4751_v29  ;;  %v3599_v36 = vunpack.c.l.bf16 %v5565_v59 }
 0xa84   : > { %v5611_v62 = vmul.f32 %v3385_v56, %v3377_v37  ;;  %v4750_v37 = vld [vmem:[%s5716_s1 + $0x18] sm:$0xff] }
 0xa86   : > { %v3388_v42 = vadd.f32 %v5611_v62, %v5609_v57  ;;  %3675 = vmatpush.bf16.msra.mxu0 %v4750_v37 }
 0xa88   : > { %v3389_v49 = vrot.slane %v3388_v42, 4 }
 0xa8a   : > { %v3390_v1 = vadd.f32 %v3389_v49, %v3388_v42  ;;  %3676 = vmatpush.bf16.msra.mxu0 %v4749_v45  ;;  %v4762_v49 = vld [vmem:[%s5172_s27 + $0x38] sm:$0xff] }
 0xa8c   : > { %v3391_v38 = vrot.slane %v3390_v1, 2 }
 0xa8e   : > { %v3392_v48 = vadd.f32 %v3391_v38, %v3390_v1  ;;  %3677 = vmatpush.bf16.msra.mxu0 %v4748_v31  ;;  %v4761_v1 = vld [vmem:[%s5172_s27 + $0x30] sm:$0xff]  ;;  %v4760_v38 = vld [vmem:[%s5172_s27 + $0x28] sm:$0xff] }
 0xa90   : > { %v3393_v61 = vrot.slane %v3392_v48, 1 }
 0xa92   : > { %v3394_v55 = vadd.f32 %v3393_v61, %v3392_v48  ;;  %3678 = vmatpush.bf16.msra.mxu0 %v4747_v46  ;;  %v4759_v48 = vld [vmem:[%s5172_s27 + $0x20] sm:$0xff] }
 0xa93   : > { %v4855_v61 = vld [vmem:[%s5167_s20] ss:$0 sm:$0xff] }
 0xa94   : > { %v3395_v3 = vmul.f32 %v3394_v55, %v5534_v14  ;;  %v4757_v55 = vld [vmem:[%s5172_s27 + $0x10] sm:$0xff] }
 0xa96   : > { %v3396_v7 = vpack.c.bf16 %v3395_v3, %v3395_v3 }
 0xa98   : > { %3453 = vmatmul.bf16.vlgmr.msra.gmra.mxu3 %v3396_v7 }
 0xa99   : > { %3769 = vmatpush.bf16.msra.mxu3 %v4762_v49 }
 0xa9d   : > { %3770 = vmatpush.bf16.msra.mxu3 %v4761_v1 }
 0xaa1   : > { %3771 = vmatpush.bf16.msra.mxu3 %v4760_v38 }
 0xaa5   : > { %3772 = vmatpush.bf16.msra.mxu3 %v4759_v48 }
 0xaa9   : > { %3773 = vmatpush.bf16.msra.mxu3 %v4758_v5 }
 0xaad   : > { %3774 = vmatpush.bf16.msra.mxu3 %v4757_v55 }
 0xab1   : > { %3775 = vmatpush.bf16.msra.mxu3 %v4756_v9 }
 0xab5   : > { %3776 = vmatpush.bf16.msra.mxu3 %v4755_v10 }
 0xb1b   : > { %v3454_v6 = vpop.f32.mrf.mxu3 }
 0xb1c   : > { %v3455_v15 = vadd.f32 %v3454_v6, %v3068_v0 }
 0xb1e   : > { %v3458_v53 = vmul.f32 0.5, %v3455_v15 }
 0xb20   : > { %4928 = vtanh.f32 %v3458_v53 }
 0xb23   : > { %v3456_v4 = vpop.f32.mrf.mxu3 }
 0xb26   : > { %v4929_v39 = vpop.eup %4928 }
 0xb27   : > { %v3460_v16 = vadd.f32 1.0, %v4929_v39 }
 0xb29   : > { %v3461_v18 = vmul.f32 0.5, %v3460_v16 }
 0xb2b   : > { %v3462_v19 = vmul.f32 %v3461_v18, %v3455_v15 }
 0xb2d   : > { %v3463_v21 = vpack.c.bf16 %v3462_v19, %v3462_v19 }
 0xb2f   : > { %3520 = vmatmul.bf16.vlgmr.msrb.gmra.mxu0 %v3463_v21 }
 0xbac   : > { %v3521_v28 = vpop.f32.mrf.mxu0 }
 0xbad   : > { %v3522_v30 = vadd.f32 %v3521_v28, %v3085_v27 }
 0xbaf   : > { %v3525_v32 = vmul.f32 0.5, %v3522_v30 }
 0xbb1   : > { %4930 = vtanh.f32 %v3525_v32 }
 0xbb4   : > { %v3523_v35 = vpop.f32.mrf.mxu0 }
 0xbb7   : > { %v4931_v23 = vpop.eup %4930 }
 0xbb8   : > { %v3527_v20 = vadd.f32 1.0, %v4931_v23 }
 0xbba   : > { %v3528_v33 = vmul.f32 0.5, %v3527_v20 }
 0xbbc   : > { %v3529_v40 = vperm.slane %v3528_v33, 0 }
 0xbbe   : > { %v3530_v41 = vmul.f32 %v3529_v40, %v5609_v57  ;;  %v3531_v60 = vmul.f32 %v3529_v40, %v5611_v62 }
 0xbc0   : > { %v3532_v44 = vpack.c.bf16 %v3531_v60, %v3530_v41 }
 0xbc2   : > { %3592 = vmatmul.bf16.vlgmr.msrb.gmra.mxu3 %v3532_v44 }
 0xc45   : > { %v3593_v47 = vpop.f32.mrf.mxu3 }
 0xc46   : > { %v3594_v50 = vadd.f32 %v4854_v54, %v3593_v47 }
 0xc48   : > { %v3600_v57 = vadd.f32 %v3598_v17, %v3594_v50 }
 0xc4d   : > { %v3595_v25 = vpop.f32.mrf.mxu3 }
 0xc4e   : > { %v3596_v56 = vadd.f32 %v4854_v54, %v3595_v25 }
 0xc50   : > { %v3601_v62 = vadd.f32 %v3599_v36, %v3596_v56 }
 0xc52   : > { %v3602_v42 = vpack.c.bf16 %v3601_v62, %v3600_v57 }
 0xc54   : > { %3679 = vmatmul.bf16.vlgmr.msra.gmra.mxu0 %v3602_v42 }
 0xcd1   : > { %v3680_v59 = vpop.f32.mrf.mxu0 }
 0xcd2   : > { %v3681_v3 = vadd.f32 %v4855_v61, %v3680_v59 }
 0xcd4   : > { %v3685_v7 = vmul.f32 0.5, %v3681_v3 }
 0xcd6   : > { %4932 = vtanh.f32 %v3685_v7 }
 0xcd9   : > { %v3682_v11 = vpop.f32.mrf.mxu0 }
 0xcda   : > { %v3683_v51 = vadd.f32 %v4855_v61, %v3682_v11 }
 0xcdc   : > { %v3686_v63 = vmul.f32 0.5, %v3683_v51  ;;  %v4933_v2 = vpop.eup %4932 }
 0xcdd   : > { %v3689_v13 = vadd.f32 1.0, %v4933_v2 }
 0xcde   : > { %4934 = vtanh.f32 %v3686_v63 }
 0xcdf   : > { %v3691_v0 = vmul.f32 0.5, %v3689_v13 }
 0xce1   : > { %v3693_v53 = vmul.f32 %v3691_v0, %v3681_v3 }
 0xce4   : > { %v4935_v43 = vpop.eup %4934 }
 0xce5   : > { %v3690_v6 = vadd.f32 1.0, %v4935_v43 }
 0xce7   : > { %v3692_v15 = vmul.f32 0.5, %v3690_v6 }
 0xce9   : > { %v3694_v4 = vmul.f32 %v3692_v15, %v3683_v51 }
 0xceb   : > { %v3695_v39 = vadd.f32 %v3694_v4, %v3693_v53 }
 0xced   : > { %v3696_v16 = vrot.slane %v3695_v39, 4 }
 0xcef   : > { %v3697_v18 = vadd.f32 %v3696_v16, %v3695_v39 }
 0xcf1   : > { %v3698_v19 = vrot.slane %v3697_v18, 2 }
 0xcf3   : > { %v3699_v21 = vadd.f32 %v3698_v19, %v3697_v18 }
 0xcf5   : > { %v3700_v22 = vrot.slane %v3699_v21, 1 }
 0xcf7   : > { %v3701_v24 = vadd.f32 %v3700_v22, %v3699_v21 }
 0xcf9   : > { %v3702_v58 = vmul.f32 %v3701_v24, %v5534_v14 }
 0xcfb   : > { %v3703_v8 = vpack.c.bf16 %v3702_v58, %v3702_v58 }
 0xcfd   : > { %3777 = vmatmul.bf16.vlgmr.msra.gmra.mxu3 %v3703_v8 }
 0xd80   : > { %v3778_v12 = vpop.f32.mrf.mxu3 }
 0xd81   : > { %v3779_v52 = vadd.f32 %v3778_v12, %v3720_v34 }
 0xd83   : > { %v3782_v26 = vperm.slane %v3779_v52, 0 }
 0xd85   : > { %3783 = vst [vmem:[%s1154_s0] sm:$0xff] %v3782_v26 }
 0xd88   : > { %v3780_v27 = vpop.f32.mrf.mxu3 }
 0xd89 PF: > { %s87_s15 = sadd.s32 1, %s4942_s15  }
 0xd8a   : > { %p84_p5 = scmp.ge.s32.totalorder %s87_s15, 4  }
 0xd8c   :  { %86 = sbr.rel (!%p84_p5) target bundleno = 73 (0x49), region = 240 }

</bundles_post_ra>
